<compile_context>
chip_gen: v7x
topology: tpu7x:2x2x1
jax: 0.10.0
libtpu: 0.0.40
codegen_flags: <defaults>
</compile_context>

<pallas_src>
import numpy as np
import jax
import jax.numpy as jnp
from jax.experimental import pallas as pl
from jax.experimental.pallas import tpu as pltpu


def _round_up(x, m):
    return (x + m - 1) // m * m


# ----------------------------------------------------------------------------
# Kernel
# ----------------------------------------------------------------------------
def _make_kernel(num_layers, seq_len, Bp, D, Hp):
    L = num_layers
    T = seq_len

    def cell(gates, c_prev):
        # Hp is a multiple of 128 -> each gate slice is whole (8,128) vregs.
        i_g = jax.nn.sigmoid(gates[:, 0 * Hp:1 * Hp])
        f_g = jax.nn.sigmoid(gates[:, 1 * Hp:2 * Hp])
        g_g = jnp.tanh(gates[:, 2 * Hp:3 * Hp])
        o_g = jax.nn.sigmoid(gates[:, 3 * Hp:4 * Hp])
        c_new = f_g * c_prev + i_g * g_g
        h_new = o_g * jnp.tanh(c_new)
        return h_new, c_new

    def kernel(*refs):
        # inputs: x2 (T*Bp, D) bf16, w_ih0_T (D,4Hp) bf16, b0 (1,4Hp) f32,
        #         w_hh0_T (Hp,4Hp) bf16,
        #         w_ih[1..L-1] (Hp,4Hp) bf16, w_hh[1..L-1] (Hp,4Hp) bf16,
        #         b[1..L-1] (1,4Hp) f32, w_fc_T (Hp,Cp) bf16, b_fc (1,Cp) f32
        # outputs: out (Bp, Cp) f32 ; scratch: xproj (T*Bp, 4Hp) f32
        x_ref = refs[0]
        w_ih0 = refs[1]
        b0 = refs[2]
        w_hh0 = refs[3]
        off = 4
        w_ih_rest = refs[off:off + (L - 1)]; off += L - 1
        w_hh_rest = refs[off:off + (L - 1)]; off += L - 1
        b_rest = refs[off:off + (L - 1)]; off += L - 1
        w_fc = refs[off]
        b_fc = refs[off + 1]
        out_ref = refs[off + 2]
        xproj = refs[off + 3]            # VMEM scratch (T*Bp, 4Hp) f32

        # Hoisted layer-0 input projection for ALL timesteps: one bf16 MXU
        # matmul (f32 accumulation), bias folded in once. Off the critical path.
        xproj[...] = (
            jnp.dot(x_ref[...], w_ih0[...], preferred_element_type=jnp.float32)
            + b0[...]
        )

        h = [jnp.zeros((Bp, Hp), jnp.float32) for _ in range(L)]  # h0 = 0
        c = [jnp.zeros((Bp, Hp), jnp.float32) for _ in range(L)]  # c0 = 0

        # Statically unrolled recurrence (T is small) -> max ILP for the
        # serialized MXU chain; only the per-layer x_t @ W_ih dots (and the
        # layer-0 recurrent dot) sit on the dependence chain.
        for t in range(T):
            # layer 0: precomputed x-projection + recurrent term (bf16 MXU)
            hdot0 = jnp.dot(h[0].astype(jnp.bfloat16), w_hh0[...],
                            preferred_element_type=jnp.float32)
            gates0 = xproj[t * Bp:(t + 1) * Bp, :] + hdot0
            h[0], c[0] = cell(gates0, c[0])
            layer_in = h[0]

            # layers >= 1: split dots — h[l] is still the t-1 value here, so
            # its dot is off the serialized chain and can be issued early.
            for l in range(1, L):
                hdot = jnp.dot(h[l].astype(jnp.bfloat16), w_hh_rest[l - 1][...],
                               preferred_element_type=jnp.float32)
                xdot = jnp.dot(layer_in.astype(jnp.bfloat16),
                               w_ih_rest[l - 1][...],
                               preferred_element_type=jnp.float32)
                gates = xdot + hdot + b_rest[l - 1][...]
                h[l], c[l] = cell(gates, c[l])
                layer_in = h[l]

        # final FC on last-timestep top-layer h; lane-dense (Bp, Cp) store
        out_ref[...] = (
            jnp.dot(h[L - 1].astype(jnp.bfloat16), w_fc[...],
                    preferred_element_type=jnp.float32)
            + b_fc[...]
        )

    return kernel


# ----------------------------------------------------------------------------
# Parameter preparation (padding / transposing / bf16 casting for the kernel)
# ----------------------------------------------------------------------------
def _pad_gate_rows(w, H, Hp):
    """(4H, in) -> (4Hp, in): zero-pad each gate block's rows."""
    in_dim = w.shape[1]
    w4 = w.reshape(4, H, in_dim)
    w4 = jnp.pad(w4, ((0, 0), (0, Hp - H), (0, 0)))
    return w4.reshape(4 * Hp, in_dim)


def _pad_gate_vec(b, H, Hp):
    """(4H,) -> (1, 4Hp): zero-pad each gate block."""
    b4 = b.reshape(4, H)
    b4 = jnp.pad(b4, ((0, 0), (0, Hp - H)))
    return b4.reshape(1, 4 * Hp)


def _prepare_kernel_params(params, H, L, C, Hp, Cp):
    layers, w_fc, b_fc = params
    bf16 = jnp.bfloat16

    # layer 0
    w_ih0, w_hh0, b_ih0, b_hh0 = layers[0]
    w_ih0_t = _pad_gate_rows(w_ih0, H, Hp).T.astype(bf16)             # (D, 4Hp)
    w_hh0_t = jnp.pad(_pad_gate_rows(w_hh0, H, Hp),
                      ((0, 0), (0, Hp - H))).T.astype(bf16)           # (Hp, 4Hp)
    b0 = _pad_gate_vec(b_ih0 + b_hh0, H, Hp)                          # (1, 4Hp) f32

    # layers >= 1: separate (padded, transposed) input / recurrent weights
    w_ih_rest, w_hh_rest, b_rest = [], [], []
    for l in range(1, L):
        w_ih, w_hh, b_ih, b_hh = layers[l]
        w_ih_p = jnp.pad(_pad_gate_rows(w_ih, H, Hp), ((0, 0), (0, Hp - H)))
        w_hh_p = jnp.pad(_pad_gate_rows(w_hh, H, Hp), ((0, 0), (0, Hp - H)))
        w_ih_rest.append(w_ih_p.T.astype(bf16))                       # (Hp, 4Hp)
        w_hh_rest.append(w_hh_p.T.astype(bf16))                       # (Hp, 4Hp)
        b_rest.append(_pad_gate_vec(b_ih + b_hh, H, Hp))              # (1, 4Hp) f32

    # FC: pad hidden rows and class columns (lane-dense output)
    w_fc_t = jnp.pad(w_fc, ((0, Cp - C), (0, Hp - H))).T.astype(bf16)  # (Hp, Cp)
    b_fc_p = jnp.pad(b_fc, (0, Cp - C)).reshape(1, Cp)                 # (1, Cp) f32
    return (w_ih0_t, b0, w_hh0_t, tuple(w_ih_rest), tuple(w_hh_rest),
            tuple(b_rest), w_fc_t, b_fc_p)


def _full_spec(a):
    nd = a.ndim
    # TODO(synk): for production sizes, request single-buffering for these
    # resident (grid=(1,)) operands to halve weight VMEM on v7x.
    return pl.BlockSpec(a.shape, lambda i, _nd=nd: (0,) * _nd)


def _nbytes(a):
    return int(np.prod(a.shape)) * jnp.dtype(a.dtype).itemsize


def _pick_vmem_limit(total_bytes):
    """Derive vmem_limit_bytes from actual buffer sizes, per-generation cap."""
    need = int(2 * total_bytes) + (8 << 20)       # double-buffer + headroom
    cap = 100 << 20                               # v5e/v6e-style default cap
    try:
        info = pltpu.get_tpu_info()
        cap = min(cap, max(int(info.vmem_capacity_bytes) - (8 << 20), 32 << 20))
    except Exception:
        pass
    return min(max(need, 32 << 20), cap)


# ----------------------------------------------------------------------------
# Public forward
# ----------------------------------------------------------------------------
def lstm_model_forward(x, params, *, hidden_size, num_layers, num_classes):
    """x: (B, T, input_size) float32 -> (B, num_classes) float32."""
    B, T, D = x.shape
    Bp = _round_up(B, 8)               # f32 sublane alignment
    Hp = _round_up(hidden_size, 128)   # lane-dense gate slices
    Cp = _round_up(num_classes, 128)   # lane-dense output store

    (w_ih0_t, b0, w_hh0_t, w_ih_rest, w_hh_rest, b_rest,
     w_fc_t, b_fc) = _prepare_kernel_params(
        params, hidden_size, num_layers, num_classes, Hp, Cp)

    # batch-pad, transpose to time-major, flatten (T, Bp, D) -> (T*Bp, D), bf16
    x_p = jnp.pad(x.astype(jnp.float32), ((0, Bp - B), (0, 0), (0, 0)))
    x2 = jnp.transpose(x_p, (1, 0, 2)).reshape(T * Bp, D).astype(jnp.bfloat16)

    inputs = ([x2, w_ih0_t, b0, w_hh0_t]
              + list(w_ih_rest) + list(w_hh_rest) + list(b_rest)
              + [w_fc_t, b_fc])
    in_specs = [_full_spec(a) for a in inputs]
    out_spec = pl.BlockSpec((Bp, Cp), lambda i: (0, 0))

    scratch_bytes = T * Bp * 4 * Hp * 4
    total_bytes = sum(_nbytes(a) for a in inputs) + Bp * Cp * 4 + scratch_bytes
    vmem_limit = _pick_vmem_limit(total_bytes)

    kernel = _make_kernel(num_layers, T, Bp, D, Hp)

    out_padded = pl.pallas_call(
        kernel,
        out_shape=jax.ShapeDtypeStruct((Bp, Cp), jnp.float32),
        grid_spec=pltpu.PrefetchScalarGridSpec(
            num_scalar_prefetch=0,
            grid=(1,),  # whole recurrence runs inside one kernel invocation
            in_specs=in_specs,
            out_specs=out_spec,
            scratch_shapes=[
                # hoisted layer-0 x-projection (f32; keeps cell math exact)
                pltpu.VMEM((T * Bp, 4 * Hp), jnp.float32),
            ],
        ),
        compiler_params=pltpu.CompilerParams(
            dimension_semantics=("arbitrary",),
            vmem_limit_bytes=vmem_limit,
        ),
    )(*inputs)

    return out_padded[:B, :num_classes]


# ----------------------------------------------------------------------------
# Init + pure-jnp reference (PyTorch-style params)
# ----------------------------------------------------------------------------
def init_params(key, input_size, hidden_size, num_layers, num_classes):
    """Deterministic PyTorch-style uniform(-1/sqrt(H), 1/sqrt(H)) init."""
    H = hidden_size
    k = 1.0 / np.sqrt(H)
    layers = []
    for l in range(num_layers):
        in_dim = input_size if l == 0 else H
        key, k1, k2, k3, k4 = jax.random.split(key, 5)
        w_ih = jax.random.uniform(k1, (4 * H, in_dim), jnp.float32, -k, k)
        w_hh = jax.random.uniform(k2, (4 * H, H), jnp.float32, -k, k)
        b_ih = jax.random.uniform(k3, (4 * H,), jnp.float32, -k, k)
        b_hh = jax.random.uniform(k4, (4 * H,), jnp.float32, -k, k)
        layers.append((w_ih, w_hh, b_ih, b_hh))
    key, k5, k6 = jax.random.split(key, 3)
    w_fc = jax.random.uniform(k5, (num_classes, H), jnp.float32, -k, k)
    b_fc = jax.random.uniform(k6, (num_classes,), jnp.float32, -k, k)
    return layers, w_fc, b_fc


def lstm_ref(x, params, *, hidden_size, num_layers):
    """Pure-jnp f32 reference with identical semantics, for validation."""
    layers, w_fc, b_fc = params
    B, T, D = x.shape
    H = hidden_size
    h = [jnp.zeros((B, H), jnp.float32) for _ in range(num_layers)]
    c = [jnp.zeros((B, H), jnp.float32) for _ in range(num_layers)]
    for t in range(T):
        layer_in = x[:, t, :]
        for l in range(num_layers):
            w_ih, w_hh, b_ih, b_hh = layers[l]
            g = layer_in @ w_ih.T + h[l] @ w_hh.T + b_ih + b_hh
            i_g = jax.nn.sigmoid(g[:, 0 * H:1 * H])
            f_g = jax.nn.sigmoid(g[:, 1 * H:2 * H])
            g_g = jnp.tanh(g[:, 2 * H:3 * H])
            o_g = jax.nn.sigmoid(g[:, 3 * H:4 * H])
            c[l] = f_g * c[l] + i_g * g_g
            h[l] = o_g * jnp.tanh(c[l])
            layer_in = h[l]
    return h[-1] @ w_fc.T + b_fc


if __name__ == "__main__":
    B, T = 2, 8
    input_size, hidden_size, num_layers, num_classes = 16, 32, 2, 4

    key = jax.random.PRNGKey(0)
    key, kx = jax.random.split(key)
    x = jax.random.normal(kx, (B, T, input_size), jnp.float32)
    params = init_params(key, input_size, hidden_size, num_layers, num_classes)

    out = lstm_model_forward(x, params, hidden_size=hidden_size,
                             num_layers=num_layers, num_classes=num_classes)
    out = jax.block_until_ready(out)

    ref = lstm_ref(x, params, hidden_size=hidden_size, num_layers=num_layers)
    # bf16 MXU operands introduce small (~1e-3-level) drift vs the f32
    # reference that compounds over T; cell math / accumulation stay f32.
    if not np.allclose(np.asarray(out), np.asarray(ref), atol=2e-2, rtol=2e-2):
        raise AssertionError("Pallas LSTM output mismatch vs reference")
    print("KERNEL_OK")
</pallas_src>

<mosaic_0001>
module attributes {stable_mosaic.version = 11 : i64} {
  func.func @kernel(%arg0: i32, %arg1: memref<64x16xbf16, #tpu.memory_space<vmem>>, %arg2: memref<16x512xbf16, #tpu.memory_space<vmem>>, %arg3: memref<1x512xf32, #tpu.memory_space<vmem>>, %arg4: memref<128x512xbf16, #tpu.memory_space<vmem>>, %arg5: memref<128x512xbf16, #tpu.memory_space<vmem>>, %arg6: memref<128x512xbf16, #tpu.memory_space<vmem>>, %arg7: memref<1x512xf32, #tpu.memory_space<vmem>>, %arg8: memref<128x128xbf16, #tpu.memory_space<vmem>>, %arg9: memref<1x128xf32, #tpu.memory_space<vmem>>, %arg10: memref<8x128xf32, #tpu.memory_space<vmem>>, %arg11: memref<64x512xf32, #tpu.memory_space<vmem>>) attributes {dimension_semantics = [#tpu.dimension_semantics<arbitrary>], iteration_bounds = array<i64: 1>, scalar_prefetch = 0 : i64, scratch_operands = 1 : i64, tpu.core_type = #tpu.core_type<tc>, window_params = [{pipeline_mode = #tpu.pipeline_mode<synchronous>, transform_indices = @transform_0, window_bounds = array<i64: 64, 16>}, {pipeline_mode = #tpu.pipeline_mode<synchronous>, transform_indices = @transform_1, window_bounds = array<i64: 16, 512>}, {pipeline_mode = #tpu.pipeline_mode<synchronous>, transform_indices = @transform_2, window_bounds = array<i64: 1, 512>}, {pipeline_mode = #tpu.pipeline_mode<synchronous>, transform_indices = @transform_3, window_bounds = array<i64: 128, 512>}, {pipeline_mode = #tpu.pipeline_mode<synchronous>, transform_indices = @transform_4, window_bounds = array<i64: 128, 512>}, {pipeline_mode = #tpu.pipeline_mode<synchronous>, transform_indices = @transform_5, window_bounds = array<i64: 128, 512>}, {pipeline_mode = #tpu.pipeline_mode<synchronous>, transform_indices = @transform_6, window_bounds = array<i64: 1, 512>}, {pipeline_mode = #tpu.pipeline_mode<synchronous>, transform_indices = @transform_7, window_bounds = array<i64: 128, 128>}, {pipeline_mode = #tpu.pipeline_mode<synchronous>, transform_indices = @transform_8, window_bounds = array<i64: 1, 128>}, {pipeline_mode = #tpu.pipeline_mode<synchronous>, transform_indices = @transform_9, window_bounds = array<i64: 8, 128>}]} {
    %c0 = arith.constant 0 : index
    %c0_0 = arith.constant 0 : index
    %0 = vector.load %arg1[%c0, %c0_0] : memref<64x16xbf16, #tpu.memory_space<vmem>>, vector<64x16xbf16>
    %c0_1 = arith.constant 0 : index
    %c0_2 = arith.constant 0 : index
    %1 = vector.load %arg2[%c0_1, %c0_2] : memref<16x512xbf16, #tpu.memory_space<vmem>>, vector<16x512xbf16>
    %cst = arith.constant dense<0.000000e+00> : vector<64x512xf32>
    %2 = tpu.matmul %0, %1, %cst {dimension_numbers = #tpu.dot_dimension_numbers<[1], [0], [0], [1], [0, 0, 1, 1], [], []>} : vector<64x16xbf16>, vector<16x512xbf16>, vector<64x512xf32> -> vector<64x512xf32>
    %c0_3 = arith.constant 0 : index
    %c0_4 = arith.constant 0 : index
    %3 = vector.load %arg3[%c0_3, %c0_4] : memref<1x512xf32, #tpu.memory_space<vmem>>, vector<1x512xf32>
    %4 = vector.broadcast %3 : vector<1x512xf32> to vector<64x512xf32>
    %5 = arith.addf %2, %4 : vector<64x512xf32>
    %c0_5 = arith.constant 0 : index
    %c0_6 = arith.constant 0 : index
    %6 = vector.load %arg11[%c0_5, %c0_6] : memref<64x512xf32, #tpu.memory_space<vmem>>, vector<64x512xf32>
    tpu.vector_store %arg11[%c0_5, %c0_6], %5 {strides = array<i32>} : memref<64x512xf32, #tpu.memory_space<vmem>>, vector<64x512xf32>,
    %cst_7 = arith.constant 0.000000e+00 : f32
    %7 = vector.broadcast %cst_7 : f32 to vector<8x128xf32>
    %cst_8 = arith.constant 0.000000e+00 : f32
    %8 = vector.broadcast %cst_8 : f32 to vector<8x128xf32>
    %cst_9 = arith.constant 0.000000e+00 : f32
    %9 = vector.broadcast %cst_9 : f32 to vector<8x128xf32>
    %cst_10 = arith.constant 0.000000e+00 : f32
    %10 = vector.broadcast %cst_10 : f32 to vector<8x128xf32>
    %11 = arith.truncf %7 : vector<8x128xf32> to vector<8x128xbf16>
    %c0_11 = arith.constant 0 : index
    %c0_12 = arith.constant 0 : index
    %12 = vector.load %arg4[%c0_11, %c0_12] : memref<128x512xbf16, #tpu.memory_space<vmem>>, vector<128x512xbf16>
    %cst_13 = arith.constant dense<0.000000e+00> : vector<8x512xf32>
    %13 = tpu.matmul %11, %12, %cst_13 {dimension_numbers = #tpu.dot_dimension_numbers<[1], [0], [0], [1], [0, 0, 1, 1], [], []>} : vector<8x128xbf16>, vector<128x512xbf16>, vector<8x512xf32> -> vector<8x512xf32>
    %c0_14 = arith.constant 0 : index
    %c0_15 = arith.constant 0 : index
    %14 = vector.load %arg11[%c0_14, %c0_15] : memref<64x512xf32, #tpu.memory_space<vmem>>, vector<8x512xf32>
    %15 = arith.addf %14, %13 : vector<8x512xf32>
    %16 = vector.extract_strided_slice %15 {offsets = [0, 0], sizes = [8, 128], strides = [1, 1]} : vector<8x512xf32> to vector<8x128xf32>
    %17 = arith.negf %16 : vector<8x128xf32>
    %18 = math.exp %17 : vector<8x128xf32>
    %cst_16 = arith.constant 1.000000e+00 : f32
    %19 = vector.broadcast %cst_16 : f32 to vector<8x128xf32>
    %20 = arith.addf %19, %18 : vector<8x128xf32>
    %21 = arith.divf %19, %20 : vector<8x128xf32>
    %22 = vector.extract_strided_slice %15 {offsets = [0, 128], sizes = [8, 128], strides = [1, 1]} : vector<8x512xf32> to vector<8x128xf32>
    %23 = arith.negf %22 : vector<8x128xf32>
    %24 = math.exp %23 : vector<8x128xf32>
    %cst_17 = arith.constant 1.000000e+00 : f32
    %25 = vector.broadcast %cst_17 : f32 to vector<8x128xf32>
    %26 = arith.addf %25, %24 : vector<8x128xf32>
    %27 = arith.divf %25, %26 : vector<8x128xf32>
    %28 = vector.extract_strided_slice %15 {offsets = [0, 256], sizes = [8, 128], strides = [1, 1]} : vector<8x512xf32> to vector<8x128xf32>
    %29 = math.tanh %28 : vector<8x128xf32>
    %30 = vector.extract_strided_slice %15 {offsets = [0, 384], sizes = [8, 128], strides = [1, 1]} : vector<8x512xf32> to vector<8x128xf32>
    %31 = arith.negf %30 : vector<8x128xf32>
    %32 = math.exp %31 : vector<8x128xf32>
    %cst_18 = arith.constant 1.000000e+00 : f32
    %33 = vector.broadcast %cst_18 : f32 to vector<8x128xf32>
    %34 = arith.addf %33, %32 : vector<8x128xf32>
    %35 = arith.divf %33, %34 : vector<8x128xf32>
    %36 = arith.mulf %27, %9 : vector<8x128xf32>
    %37 = arith.mulf %21, %29 : vector<8x128xf32>
    %38 = arith.addf %36, %37 : vector<8x128xf32>
    %39 = math.tanh %38 : vector<8x128xf32>
    %40 = arith.mulf %35, %39 : vector<8x128xf32>
    %41 = arith.truncf %8 : vector<8x128xf32> to vector<8x128xbf16>
    %c0_19 = arith.constant 0 : index
    %c0_20 = arith.constant 0 : index
    %42 = vector.load %arg6[%c0_19, %c0_20] : memref<128x512xbf16, #tpu.memory_space<vmem>>, vector<128x512xbf16>
    %cst_21 = arith.constant dense<0.000000e+00> : vector<8x512xf32>
    %43 = tpu.matmul %41, %42, %cst_21 {dimension_numbers = #tpu.dot_dimension_numbers<[1], [0], [0], [1], [0, 0, 1, 1], [], []>} : vector<8x128xbf16>, vector<128x512xbf16>, vector<8x512xf32> -> vector<8x512xf32>
    %44 = arith.truncf %40 : vector<8x128xf32> to vector<8x128xbf16>
    %c0_22 = arith.constant 0 : index
    %c0_23 = arith.constant 0 : index
    %45 = vector.load %arg5[%c0_22, %c0_23] : memref<128x512xbf16, #tpu.memory_space<vmem>>, vector<128x512xbf16>
    %cst_24 = arith.constant dense<0.000000e+00> : vector<8x512xf32>
    %46 = tpu.matmul %44, %45, %cst_24 {dimension_numbers = #tpu.dot_dimension_numbers<[1], [0], [0], [1], [0, 0, 1, 1], [], []>} : vector<8x128xbf16>, vector<128x512xbf16>, vector<8x512xf32> -> vector<8x512xf32>
    %47 = arith.addf %46, %43 : vector<8x512xf32>
    %c0_25 = arith.constant 0 : index
    %c0_26 = arith.constant 0 : index
    %48 = vector.load %arg7[%c0_25, %c0_26] : memref<1x512xf32, #tpu.memory_space<vmem>>, vector<1x512xf32>
    %49 = vector.broadcast %48 : vector<1x512xf32> to vector<8x512xf32>
    %50 = arith.addf %47, %49 : vector<8x512xf32>
    %51 = vector.extract_strided_slice %50 {offsets = [0, 0], sizes = [8, 128], strides = [1, 1]} : vector<8x512xf32> to vector<8x128xf32>
    %52 = arith.negf %51 : vector<8x128xf32>
    %53 = math.exp %52 : vector<8x128xf32>
    %cst_27 = arith.constant 1.000000e+00 : f32
    %54 = vector.broadcast %cst_27 : f32 to vector<8x128xf32>
    %55 = arith.addf %54, %53 : vector<8x128xf32>
    %56 = arith.divf %54, %55 : vector<8x128xf32>
    %57 = vector.extract_strided_slice %50 {offsets = [0, 128], sizes = [8, 128], strides = [1, 1]} : vector<8x512xf32> to vector<8x128xf32>
    %58 = arith.negf %57 : vector<8x128xf32>
    %59 = math.exp %58 : vector<8x128xf32>
    %cst_28 = arith.constant 1.000000e+00 : f32
    %60 = vector.broadcast %cst_28 : f32 to vector<8x128xf32>
    %61 = arith.addf %60, %59 : vector<8x128xf32>
    %62 = arith.divf %60, %61 : vector<8x128xf32>
    %63 = vector.extract_strided_slice %50 {offsets = [0, 256], sizes = [8, 128], strides = [1, 1]} : vector<8x512xf32> to vector<8x128xf32>
    %64 = math.tanh %63 : vector<8x128xf32>
    %65 = vector.extract_strided_slice %50 {offsets = [0, 384], sizes = [8, 128], strides = [1, 1]} : vector<8x512xf32> to vector<8x128xf32>
    %66 = arith.negf %65 : vector<8x128xf32>
    %67 = math.exp %66 : vector<8x128xf32>
    %cst_29 = arith.constant 1.000000e+00 : f32
    %68 = vector.broadcast %cst_29 : f32 to vector<8x128xf32>
    %69 = arith.addf %68, %67 : vector<8x128xf32>
    %70 = arith.divf %68, %69 : vector<8x128xf32>
    %71 = arith.mulf %62, %10 : vector<8x128xf32>
    %72 = arith.mulf %56, %64 : vector<8x128xf32>
    %73 = arith.addf %71, %72 : vector<8x128xf32>
    %74 = math.tanh %73 : vector<8x128xf32>
    %75 = arith.mulf %70, %74 : vector<8x128xf32>
    %76 = arith.truncf %40 : vector<8x128xf32> to vector<8x128xbf16>
    %c0_30 = arith.constant 0 : index
    %c0_31 = arith.constant 0 : index
    %77 = vector.load %arg4[%c0_30, %c0_31] : memref<128x512xbf16, #tpu.memory_space<vmem>>, vector<128x512xbf16>
    %cst_32 = arith.constant dense<0.000000e+00> : vector<8x512xf32>
    %78 = tpu.matmul %76, %77, %cst_32 {dimension_numbers = #tpu.dot_dimension_numbers<[1], [0], [0], [1], [0, 0, 1, 1], [], []>} : vector<8x128xbf16>, vector<128x512xbf16>, vector<8x512xf32> -> vector<8x512xf32>
    %c8 = arith.constant 8 : index
    %c0_33 = arith.constant 0 : index
    %79 = vector.load %arg11[%c8, %c0_33] : memref<64x512xf32, #tpu.memory_space<vmem>>, vector<8x512xf32>
    %80 = arith.addf %79, %78 : vector<8x512xf32>
    %81 = vector.extract_strided_slice %80 {offsets = [0, 0], sizes = [8, 128], strides = [1, 1]} : vector<8x512xf32> to vector<8x128xf32>
    %82 = arith.negf %81 : vector<8x128xf32>
    %83 = math.exp %82 : vector<8x128xf32>
    %cst_34 = arith.constant 1.000000e+00 : f32
    %84 = vector.broadcast %cst_34 : f32 to vector<8x128xf32>
    %85 = arith.addf %84, %83 : vector<8x128xf32>
    %86 = arith.divf %84, %85 : vector<8x128xf32>
    %87 = vector.extract_strided_slice %80 {offsets = [0, 128], sizes = [8, 128], strides = [1, 1]} : vector<8x512xf32> to vector<8x128xf32>
    %88 = arith.negf %87 : vector<8x128xf32>
    %89 = math.exp %88 : vector<8x128xf32>
    %cst_35 = arith.constant 1.000000e+00 : f32
    %90 = vector.broadcast %cst_35 : f32 to vector<8x128xf32>
    %91 = arith.addf %90, %89 : vector<8x128xf32>
    %92 = arith.divf %90, %91 : vector<8x128xf32>
    %93 = vector.extract_strided_slice %80 {offsets = [0, 256], sizes = [8, 128], strides = [1, 1]} : vector<8x512xf32> to vector<8x128xf32>
    %94 = math.tanh %93 : vector<8x128xf32>
    %95 = vector.extract_strided_slice %80 {offsets = [0, 384], sizes = [8, 128], strides = [1, 1]} : vector<8x512xf32> to vector<8x128xf32>
    %96 = arith.negf %95 : vector<8x128xf32>
    %97 = math.exp %96 : vector<8x128xf32>
    %cst_36 = arith.constant 1.000000e+00 : f32
    %98 = vector.broadcast %cst_36 : f32 to vector<8x128xf32>
    %99 = arith.addf %98, %97 : vector<8x128xf32>
    %100 = arith.divf %98, %99 : vector<8x128xf32>
    %101 = arith.mulf %92, %38 : vector<8x128xf32>
    %102 = arith.mulf %86, %94 : vector<8x128xf32>
    %103 = arith.addf %101, %102 : vector<8x128xf32>
    %104 = math.tanh %103 : vector<8x128xf32>
    %105 = arith.mulf %100, %104 : vector<8x128xf32>
    %106 = arith.truncf %75 : vector<8x128xf32> to vector<8x128xbf16>
    %c0_37 = arith.constant 0 : index
    %c0_38 = arith.constant 0 : index
    %107 = vector.load %arg6[%c0_37, %c0_38] : memref<128x512xbf16, #tpu.memory_space<vmem>>, vector<128x512xbf16>
    %cst_39 = arith.constant dense<0.000000e+00> : vector<8x512xf32>
    %108 = tpu.matmul %106, %107, %cst_39 {dimension_numbers = #tpu.dot_dimension_numbers<[1], [0], [0], [1], [0, 0, 1, 1], [], []>} : vector<8x128xbf16>, vector<128x512xbf16>, vector<8x512xf32> -> vector<8x512xf32>
    %109 = arith.truncf %105 : vector<8x128xf32> to vector<8x128xbf16>
    %c0_40 = arith.constant 0 : index
    %c0_41 = arith.constant 0 : index
    %110 = vector.load %arg5[%c0_40, %c0_41] : memref<128x512xbf16, #tpu.memory_space<vmem>>, vector<128x512xbf16>
    %cst_42 = arith.constant dense<0.000000e+00> : vector<8x512xf32>
    %111 = tpu.matmul %109, %110, %cst_42 {dimension_numbers = #tpu.dot_dimension_numbers<[1], [0], [0], [1], [0, 0, 1, 1], [], []>} : vector<8x128xbf16>, vector<128x512xbf16>, vector<8x512xf32> -> vector<8x512xf32>
    %112 = arith.addf %111, %108 : vector<8x512xf32>
    %c0_43 = arith.constant 0 : index
    %c0_44 = arith.constant 0 : index
    %113 = vector.load %arg7[%c0_43, %c0_44] : memref<1x512xf32, #tpu.memory_space<vmem>>, vector<1x512xf32>
    %114 = vector.broadcast %113 : vector<1x512xf32> to vector<8x512xf32>
    %115 = arith.addf %112, %114 : vector<8x512xf32>
    %116 = vector.extract_strided_slice %115 {offsets = [0, 0], sizes = [8, 128], strides = [1, 1]} : vector<8x512xf32> to vector<8x128xf32>
    %117 = arith.negf %116 : vector<8x128xf32>
    %118 = math.exp %117 : vector<8x128xf32>
    %cst_45 = arith.constant 1.000000e+00 : f32
    %119 = vector.broadcast %cst_45 : f32 to vector<8x128xf32>
    %120 = arith.addf %119, %118 : vector<8x128xf32>
    %121 = arith.divf %119, %120 : vector<8x128xf32>
    %122 = vector.extract_strided_slice %115 {offsets = [0, 128], sizes = [8, 128], strides = [1, 1]} : vector<8x512xf32> to vector<8x128xf32>
    %123 = arith.negf %122 : vector<8x128xf32>
    %124 = math.exp %123 : vector<8x128xf32>
    %cst_46 = arith.constant 1.000000e+00 : f32
    %125 = vector.broadcast %cst_46 : f32 to vector<8x128xf32>
    %126 = arith.addf %125, %124 : vector<8x128xf32>
    %127 = arith.divf %125, %126 : vector<8x128xf32>
    %128 = vector.extract_strided_slice %115 {offsets = [0, 256], sizes = [8, 128], strides = [1, 1]} : vector<8x512xf32> to vector<8x128xf32>
    %129 = math.tanh %128 : vector<8x128xf32>
    %130 = vector.extract_strided_slice %115 {offsets = [0, 384], sizes = [8, 128], strides = [1, 1]} : vector<8x512xf32> to vector<8x128xf32>
    %131 = arith.negf %130 : vector<8x128xf32>
    %132 = math.exp %131 : vector<8x128xf32>
    %cst_47 = arith.constant 1.000000e+00 : f32
    %133 = vector.broadcast %cst_47 : f32 to vector<8x128xf32>
    %134 = arith.addf %133, %132 : vector<8x128xf32>
    %135 = arith.divf %133, %134 : vector<8x128xf32>
    %136 = arith.mulf %127, %73 : vector<8x128xf32>
    %137 = arith.mulf %121, %129 : vector<8x128xf32>
    %138 = arith.addf %136, %137 : vector<8x128xf32>
    %139 = math.tanh %138 : vector<8x128xf32>
    %140 = arith.mulf %135, %139 : vector<8x128xf32>
    %141 = arith.truncf %105 : vector<8x128xf32> to vector<8x128xbf16>
    %c0_48 = arith.constant 0 : index
    %c0_49 = arith.constant 0 : index
    %142 = vector.load %arg4[%c0_48, %c0_49] : memref<128x512xbf16, #tpu.memory_space<vmem>>, vector<128x512xbf16>
    %cst_50 = arith.constant dense<0.000000e+00> : vector<8x512xf32>
    %143 = tpu.matmul %141, %142, %cst_50 {dimension_numbers = #tpu.dot_dimension_numbers<[1], [0], [0], [1], [0, 0, 1, 1], [], []>} : vector<8x128xbf16>, vector<128x512xbf16>, vector<8x512xf32> -> vector<8x512xf32>
    %c16 = arith.constant 16 : index
    %c0_51 = arith.constant 0 : index
    %144 = vector.load %arg11[%c16, %c0_51] : memref<64x512xf32, #tpu.memory_space<vmem>>, vector<8x512xf32>
    %145 = arith.addf %144, %143 : vector<8x512xf32>
    %146 = vector.extract_strided_slice %145 {offsets = [0, 0], sizes = [8, 128], strides = [1, 1]} : vector<8x512xf32> to vector<8x128xf32>
    %147 = arith.negf %146 : vector<8x128xf32>
    %148 = math.exp %147 : vector<8x128xf32>
    %cst_52 = arith.constant 1.000000e+00 : f32
    %149 = vector.broadcast %cst_52 : f32 to vector<8x128xf32>
    %150 = arith.addf %149, %148 : vector<8x128xf32>
    %151 = arith.divf %149, %150 : vector<8x128xf32>
    %152 = vector.extract_strided_slice %145 {offsets = [0, 128], sizes = [8, 128], strides = [1, 1]} : vector<8x512xf32> to vector<8x128xf32>
    %153 = arith.negf %152 : vector<8x128xf32>
    %154 = math.exp %153 : vector<8x128xf32>
    %cst_53 = arith.constant 1.000000e+00 : f32
    %155 = vector.broadcast %cst_53 : f32 to vector<8x128xf32>
    %156 = arith.addf %155, %154 : vector<8x128xf32>
    %157 = arith.divf %155, %156 : vector<8x128xf32>
    %158 = vector.extract_strided_slice %145 {offsets = [0, 256], sizes = [8, 128], strides = [1, 1]} : vector<8x512xf32> to vector<8x128xf32>
    %159 = math.tanh %158 : vector<8x128xf32>
    %160 = vector.extract_strided_slice %145 {offsets = [0, 384], sizes = [8, 128], strides = [1, 1]} : vector<8x512xf32> to vector<8x128xf32>
    %161 = arith.negf %160 : vector<8x128xf32>
    %162 = math.exp %161 : vector<8x128xf32>
    %cst_54 = arith.constant 1.000000e+00 : f32
    %163 = vector.broadcast %cst_54 : f32 to vector<8x128xf32>
    %164 = arith.addf %163, %162 : vector<8x128xf32>
    %165 = arith.divf %163, %164 : vector<8x128xf32>
    %166 = arith.mulf %157, %103 : vector<8x128xf32>
    %167 = arith.mulf %151, %159 : vector<8x128xf32>
    %168 = arith.addf %166, %167 : vector<8x128xf32>
    %169 = math.tanh %168 : vector<8x128xf32>
    %170 = arith.mulf %165, %169 : vector<8x128xf32>
    %171 = arith.truncf %140 : vector<8x128xf32> to vector<8x128xbf16>
    %c0_55 = arith.constant 0 : index
    %c0_56 = arith.constant 0 : index
    %172 = vector.load %arg6[%c0_55, %c0_56] : memref<128x512xbf16, #tpu.memory_space<vmem>>, vector<128x512xbf16>
    %cst_57 = arith.constant dense<0.000000e+00> : vector<8x512xf32>
    %173 = tpu.matmul %171, %172, %cst_57 {dimension_numbers = #tpu.dot_dimension_numbers<[1], [0], [0], [1], [0, 0, 1, 1], [], []>} : vector<8x128xbf16>, vector<128x512xbf16>, vector<8x512xf32> -> vector<8x512xf32>
    %174 = arith.truncf %170 : vector<8x128xf32> to vector<8x128xbf16>
    %c0_58 = arith.constant 0 : index
    %c0_59 = arith.constant 0 : index
    %175 = vector.load %arg5[%c0_58, %c0_59] : memref<128x512xbf16, #tpu.memory_space<vmem>>, vector<128x512xbf16>
    %cst_60 = arith.constant dense<0.000000e+00> : vector<8x512xf32>
    %176 = tpu.matmul %174, %175, %cst_60 {dimension_numbers = #tpu.dot_dimension_numbers<[1], [0], [0], [1], [0, 0, 1, 1], [], []>} : vector<8x128xbf16>, vector<128x512xbf16>, vector<8x512xf32> -> vector<8x512xf32>
    %177 = arith.addf %176, %173 : vector<8x512xf32>
    %c0_61 = arith.constant 0 : index
    %c0_62 = arith.constant 0 : index
    %178 = vector.load %arg7[%c0_61, %c0_62] : memref<1x512xf32, #tpu.memory_space<vmem>>, vector<1x512xf32>
    %179 = vector.broadcast %178 : vector<1x512xf32> to vector<8x512xf32>
    %180 = arith.addf %177, %179 : vector<8x512xf32>
    %181 = vector.extract_strided_slice %180 {offsets = [0, 0], sizes = [8, 128], strides = [1, 1]} : vector<8x512xf32> to vector<8x128xf32>
    %182 = arith.negf %181 : vector<8x128xf32>
    %183 = math.exp %182 : vector<8x128xf32>
    %cst_63 = arith.constant 1.000000e+00 : f32
    %184 = vector.broadcast %cst_63 : f32 to vector<8x128xf32>
    %185 = arith.addf %184, %183 : vector<8x128xf32>
    %186 = arith.divf %184, %185 : vector<8x128xf32>
    %187 = vector.extract_strided_slice %180 {offsets = [0, 128], sizes = [8, 128], strides = [1, 1]} : vector<8x512xf32> to vector<8x128xf32>
    %188 = arith.negf %187 : vector<8x128xf32>
    %189 = math.exp %188 : vector<8x128xf32>
    %cst_64 = arith.constant 1.000000e+00 : f32
    %190 = vector.broadcast %cst_64 : f32 to vector<8x128xf32>
    %191 = arith.addf %190, %189 : vector<8x128xf32>
    %192 = arith.divf %190, %191 : vector<8x128xf32>
    %193 = vector.extract_strided_slice %180 {offsets = [0, 256], sizes = [8, 128], strides = [1, 1]} : vector<8x512xf32> to vector<8x128xf32>
    %194 = math.tanh %193 : vector<8x128xf32>
    %195 = vector.extract_strided_slice %180 {offsets = [0, 384], sizes = [8, 128], strides = [1, 1]} : vector<8x512xf32> to vector<8x128xf32>
    %196 = arith.negf %195 : vector<8x128xf32>
    %197 = math.exp %196 : vector<8x128xf32>
    %cst_65 = arith.constant 1.000000e+00 : f32
    %198 = vector.broadcast %cst_65 : f32 to vector<8x128xf32>
    %199 = arith.addf %198, %197 : vector<8x128xf32>
    %200 = arith.divf %198, %199 : vector<8x128xf32>
    %201 = arith.mulf %192, %138 : vector<8x128xf32>
    %202 = arith.mulf %186, %194 : vector<8x128xf32>
    %203 = arith.addf %201, %202 : vector<8x128xf32>
    %204 = math.tanh %203 : vector<8x128xf32>
    %205 = arith.mulf %200, %204 : vector<8x128xf32>
    %206 = arith.truncf %170 : vector<8x128xf32> to vector<8x128xbf16>
    %c0_66 = arith.constant 0 : index
    %c0_67 = arith.constant 0 : index
    %207 = vector.load %arg4[%c0_66, %c0_67] : memref<128x512xbf16, #tpu.memory_space<vmem>>, vector<128x512xbf16>
    %cst_68 = arith.constant dense<0.000000e+00> : vector<8x512xf32>
    %208 = tpu.matmul %206, %207, %cst_68 {dimension_numbers = #tpu.dot_dimension_numbers<[1], [0], [0], [1], [0, 0, 1, 1], [], []>} : vector<8x128xbf16>, vector<128x512xbf16>, vector<8x512xf32> -> vector<8x512xf32>
    %c24 = arith.constant 24 : index
    %c0_69 = arith.constant 0 : index
    %209 = vector.load %arg11[%c24, %c0_69] : memref<64x512xf32, #tpu.memory_space<vmem>>, vector<8x512xf32>
    %210 = arith.addf %209, %208 : vector<8x512xf32>
    %211 = vector.extract_strided_slice %210 {offsets = [0, 0], sizes = [8, 128], strides = [1, 1]} : vector<8x512xf32> to vector<8x128xf32>
    %212 = arith.negf %211 : vector<8x128xf32>
    %213 = math.exp %212 : vector<8x128xf32>
    %cst_70 = arith.constant 1.000000e+00 : f32
    %214 = vector.broadcast %cst_70 : f32 to vector<8x128xf32>
    %215 = arith.addf %214, %213 : vector<8x128xf32>
    %216 = arith.divf %214, %215 : vector<8x128xf32>
    %217 = vector.extract_strided_slice %210 {offsets = [0, 128], sizes = [8, 128], strides = [1, 1]} : vector<8x512xf32> to vector<8x128xf32>
    %218 = arith.negf %217 : vector<8x128xf32>
    %219 = math.exp %218 : vector<8x128xf32>
    %cst_71 = arith.constant 1.000000e+00 : f32
    %220 = vector.broadcast %cst_71 : f32 to vector<8x128xf32>
    %221 = arith.addf %220, %219 : vector<8x128xf32>
    %222 = arith.divf %220, %221 : vector<8x128xf32>
    %223 = vector.extract_strided_slice %210 {offsets = [0, 256], sizes = [8, 128], strides = [1, 1]} : vector<8x512xf32> to vector<8x128xf32>
    %224 = math.tanh %223 : vector<8x128xf32>
    %225 = vector.extract_strided_slice %210 {offsets = [0, 384], sizes = [8, 128], strides = [1, 1]} : vector<8x512xf32> to vector<8x128xf32>
    %226 = arith.negf %225 : vector<8x128xf32>
    %227 = math.exp %226 : vector<8x128xf32>
    %cst_72 = arith.constant 1.000000e+00 : f32
    %228 = vector.broadcast %cst_72 : f32 to vector<8x128xf32>
    %229 = arith.addf %228, %227 : vector<8x128xf32>
    %230 = arith.divf %228, %229 : vector<8x128xf32>
    %231 = arith.mulf %222, %168 : vector<8x128xf32>
    %232 = arith.mulf %216, %224 : vector<8x128xf32>
    %233 = arith.addf %231, %232 : vector<8x128xf32>
    %234 = math.tanh %233 : vector<8x128xf32>
    %235 = arith.mulf %230, %234 : vector<8x128xf32>
    %236 = arith.truncf %205 : vector<8x128xf32> to vector<8x128xbf16>
    %c0_73 = arith.constant 0 : index
    %c0_74 = arith.constant 0 : index
    %237 = vector.load %arg6[%c0_73, %c0_74] : memref<128x512xbf16, #tpu.memory_space<vmem>>, vector<128x512xbf16>
    %cst_75 = arith.constant dense<0.000000e+00> : vector<8x512xf32>
    %238 = tpu.matmul %236, %237, %cst_75 {dimension_numbers = #tpu.dot_dimension_numbers<[1], [0], [0], [1], [0, 0, 1, 1], [], []>} : vector<8x128xbf16>, vector<128x512xbf16>, vector<8x512xf32> -> vector<8x512xf32>
    %239 = arith.truncf %235 : vector<8x128xf32> to vector<8x128xbf16>
    %c0_76 = arith.constant 0 : index
    %c0_77 = arith.constant 0 : index
    %240 = vector.load %arg5[%c0_76, %c0_77] : memref<128x512xbf16, #tpu.memory_space<vmem>>, vector<128x512xbf16>
    %cst_78 = arith.constant dense<0.000000e+00> : vector<8x512xf32>
    %241 = tpu.matmul %239, %240, %cst_78 {dimension_numbers = #tpu.dot_dimension_numbers<[1], [0], [0], [1], [0, 0, 1, 1], [], []>} : vector<8x128xbf16>, vector<128x512xbf16>, vector<8x512xf32> -> vector<8x512xf32>
    %242 = arith.addf %241, %238 : vector<8x512xf32>
    %c0_79 = arith.constant 0 : index
    %c0_80 = arith.constant 0 : index
    %243 = vector.load %arg7[%c0_79, %c0_80] : memref<1x512xf32, #tpu.memory_space<vmem>>, vector<1x512xf32>
    %244 = vector.broadcast %243 : vector<1x512xf32> to vector<8x512xf32>
    %245 = arith.addf %242, %244 : vector<8x512xf32>
    %246 = vector.extract_strided_slice %245 {offsets = [0, 0], sizes = [8, 128], strides = [1, 1]} : vector<8x512xf32> to vector<8x128xf32>
    %247 = arith.negf %246 : vector<8x128xf32>
    %248 = math.exp %247 : vector<8x128xf32>
    %cst_81 = arith.constant 1.000000e+00 : f32
    %249 = vector.broadcast %cst_81 : f32 to vector<8x128xf32>
    %250 = arith.addf %249, %248 : vector<8x128xf32>
    %251 = arith.divf %249, %250 : vector<8x128xf32>
    %252 = vector.extract_strided_slice %245 {offsets = [0, 128], sizes = [8, 128], strides = [1, 1]} : vector<8x512xf32> to vector<8x128xf32>
    %253 = arith.negf %252 : vector<8x128xf32>
    %254 = math.exp %253 : vector<8x128xf32>
    %cst_82 = arith.constant 1.000000e+00 : f32
    %255 = vector.broadcast %cst_82 : f32 to vector<8x128xf32>
    %256 = arith.addf %255, %254 : vector<8x128xf32>
    %257 = arith.divf %255, %256 : vector<8x128xf32>
    %258 = vector.extract_strided_slice %245 {offsets = [0, 256], sizes = [8, 128], strides = [1, 1]} : vector<8x512xf32> to vector<8x128xf32>
    %259 = math.tanh %258 : vector<8x128xf32>
    %260 = vector.extract_strided_slice %245 {offsets = [0, 384], sizes = [8, 128], strides = [1, 1]} : vector<8x512xf32> to vector<8x128xf32>
    %261 = arith.negf %260 : vector<8x128xf32>
    %262 = math.exp %261 : vector<8x128xf32>
    %cst_83 = arith.constant 1.000000e+00 : f32
    %263 = vector.broadcast %cst_83 : f32 to vector<8x128xf32>
    %264 = arith.addf %263, %262 : vector<8x128xf32>
    %265 = arith.divf %263, %264 : vector<8x128xf32>
    %266 = arith.mulf %257, %203 : vector<8x128xf32>
    %267 = arith.mulf %251, %259 : vector<8x128xf32>
    %268 = arith.addf %266, %267 : vector<8x128xf32>
    %269 = math.tanh %268 : vector<8x128xf32>
    %270 = arith.mulf %265, %269 : vector<8x128xf32>
    %271 = arith.truncf %235 : vector<8x128xf32> to vector<8x128xbf16>
    %c0_84 = arith.constant 0 : index
    %c0_85 = arith.constant 0 : index
    %272 = vector.load %arg4[%c0_84, %c0_85] : memref<128x512xbf16, #tpu.memory_space<vmem>>, vector<128x512xbf16>
    %cst_86 = arith.constant dense<0.000000e+00> : vector<8x512xf32>
    %273 = tpu.matmul %271, %272, %cst_86 {dimension_numbers = #tpu.dot_dimension_numbers<[1], [0], [0], [1], [0, 0, 1, 1], [], []>} : vector<8x128xbf16>, vector<128x512xbf16>, vector<8x512xf32> -> vector<8x512xf32>
    %c32 = arith.constant 32 : index
    %c0_87 = arith.constant 0 : index
    %274 = vector.load %arg11[%c32, %c0_87] : memref<64x512xf32, #tpu.memory_space<vmem>>, vector<8x512xf32>
    %275 = arith.addf %274, %273 : vector<8x512xf32>
    %276 = vector.extract_strided_slice %275 {offsets = [0, 0], sizes = [8, 128], strides = [1, 1]} : vector<8x512xf32> to vector<8x128xf32>
    %277 = arith.negf %276 : vector<8x128xf32>
    %278 = math.exp %277 : vector<8x128xf32>
    %cst_88 = arith.constant 1.000000e+00 : f32
    %279 = vector.broadcast %cst_88 : f32 to vector<8x128xf32>
    %280 = arith.addf %279, %278 : vector<8x128xf32>
    %281 = arith.divf %279, %280 : vector<8x128xf32>
    %282 = vector.extract_strided_slice %275 {offsets = [0, 128], sizes = [8, 128], strides = [1, 1]} : vector<8x512xf32> to vector<8x128xf32>
    %283 = arith.negf %282 : vector<8x128xf32>
    %284 = math.exp %283 : vector<8x128xf32>
    %cst_89 = arith.constant 1.000000e+00 : f32
    %285 = vector.broadcast %cst_89 : f32 to vector<8x128xf32>
    %286 = arith.addf %285, %284 : vector<8x128xf32>
    %287 = arith.divf %285, %286 : vector<8x128xf32>
    %288 = vector.extract_strided_slice %275 {offsets = [0, 256], sizes = [8, 128], strides = [1, 1]} : vector<8x512xf32> to vector<8x128xf32>
    %289 = math.tanh %288 : vector<8x128xf32>
    %290 = vector.extract_strided_slice %275 {offsets = [0, 384], sizes = [8, 128], strides = [1, 1]} : vector<8x512xf32> to vector<8x128xf32>
    %291 = arith.negf %290 : vector<8x128xf32>
    %292 = math.exp %291 : vector<8x128xf32>
    %cst_90 = arith.constant 1.000000e+00 : f32
    %293 = vector.broadcast %cst_90 : f32 to vector<8x128xf32>
    %294 = arith.addf %293, %292 : vector<8x128xf32>
    %295 = arith.divf %293, %294 : vector<8x128xf32>
    %296 = arith.mulf %287, %233 : vector<8x128xf32>
    %297 = arith.mulf %281, %289 : vector<8x128xf32>
    %298 = arith.addf %296, %297 : vector<8x128xf32>
    %299 = math.tanh %298 : vector<8x128xf32>
    %300 = arith.mulf %295, %299 : vector<8x128xf32>
    %301 = arith.truncf %270 : vector<8x128xf32> to vector<8x128xbf16>
    %c0_91 = arith.constant 0 : index
    %c0_92 = arith.constant 0 : index
    %302 = vector.load %arg6[%c0_91, %c0_92] : memref<128x512xbf16, #tpu.memory_space<vmem>>, vector<128x512xbf16>
    %cst_93 = arith.constant dense<0.000000e+00> : vector<8x512xf32>
    %303 = tpu.matmul %301, %302, %cst_93 {dimension_numbers = #tpu.dot_dimension_numbers<[1], [0], [0], [1], [0, 0, 1, 1], [], []>} : vector<8x128xbf16>, vector<128x512xbf16>, vector<8x512xf32> -> vector<8x512xf32>
    %304 = arith.truncf %300 : vector<8x128xf32> to vector<8x128xbf16>
    %c0_94 = arith.constant 0 : index
    %c0_95 = arith.constant 0 : index
    %305 = vector.load %arg5[%c0_94, %c0_95] : memref<128x512xbf16, #tpu.memory_space<vmem>>, vector<128x512xbf16>
    %cst_96 = arith.constant dense<0.000000e+00> : vector<8x512xf32>
    %306 = tpu.matmul %304, %305, %cst_96 {dimension_numbers = #tpu.dot_dimension_numbers<[1], [0], [0], [1], [0, 0, 1, 1], [], []>} : vector<8x128xbf16>, vector<128x512xbf16>, vector<8x512xf32> -> vector<8x512xf32>
    %307 = arith.addf %306, %303 : vector<8x512xf32>
    %c0_97 = arith.constant 0 : index
    %c0_98 = arith.constant 0 : index
    %308 = vector.load %arg7[%c0_97, %c0_98] : memref<1x512xf32, #tpu.memory_space<vmem>>, vector<1x512xf32>
    %309 = vector.broadcast %308 : vector<1x512xf32> to vector<8x512xf32>
    %310 = arith.addf %307, %309 : vector<8x512xf32>
    %311 = vector.extract_strided_slice %310 {offsets = [0, 0], sizes = [8, 128], strides = [1, 1]} : vector<8x512xf32> to vector<8x128xf32>
    %312 = arith.negf %311 : vector<8x128xf32>
    %313 = math.exp %312 : vector<8x128xf32>
    %cst_99 = arith.constant 1.000000e+00 : f32
    %314 = vector.broadcast %cst_99 : f32 to vector<8x128xf32>
    %315 = arith.addf %314, %313 : vector<8x128xf32>
    %316 = arith.divf %314, %315 : vector<8x128xf32>
    %317 = vector.extract_strided_slice %310 {offsets = [0, 128], sizes = [8, 128], strides = [1, 1]} : vector<8x512xf32> to vector<8x128xf32>
    %318 = arith.negf %317 : vector<8x128xf32>
    %319 = math.exp %318 : vector<8x128xf32>
    %cst_100 = arith.constant 1.000000e+00 : f32
    %320 = vector.broadcast %cst_100 : f32 to vector<8x128xf32>
    %321 = arith.addf %320, %319 : vector<8x128xf32>
    %322 = arith.divf %320, %321 : vector<8x128xf32>
    %323 = vector.extract_strided_slice %310 {offsets = [0, 256], sizes = [8, 128], strides = [1, 1]} : vector<8x512xf32> to vector<8x128xf32>
    %324 = math.tanh %323 : vector<8x128xf32>
    %325 = vector.extract_strided_slice %310 {offsets = [0, 384], sizes = [8, 128], strides = [1, 1]} : vector<8x512xf32> to vector<8x128xf32>
    %326 = arith.negf %325 : vector<8x128xf32>
    %327 = math.exp %326 : vector<8x128xf32>
    %cst_101 = arith.constant 1.000000e+00 : f32
    %328 = vector.broadcast %cst_101 : f32 to vector<8x128xf32>
    %329 = arith.addf %328, %327 : vector<8x128xf32>
    %330 = arith.divf %328, %329 : vector<8x128xf32>
    %331 = arith.mulf %322, %268 : vector<8x128xf32>
    %332 = arith.mulf %316, %324 : vector<8x128xf32>
    %333 = arith.addf %331, %332 : vector<8x128xf32>
    %334 = math.tanh %333 : vector<8x128xf32>
    %335 = arith.mulf %330, %334 : vector<8x128xf32>
    %336 = arith.truncf %300 : vector<8x128xf32> to vector<8x128xbf16>
    %c0_102 = arith.constant 0 : index
    %c0_103 = arith.constant 0 : index
    %337 = vector.load %arg4[%c0_102, %c0_103] : memref<128x512xbf16, #tpu.memory_space<vmem>>, vector<128x512xbf16>
    %cst_104 = arith.constant dense<0.000000e+00> : vector<8x512xf32>
    %338 = tpu.matmul %336, %337, %cst_104 {dimension_numbers = #tpu.dot_dimension_numbers<[1], [0], [0], [1], [0, 0, 1, 1], [], []>} : vector<8x128xbf16>, vector<128x512xbf16>, vector<8x512xf32> -> vector<8x512xf32>
    %c40 = arith.constant 40 : index
    %c0_105 = arith.constant 0 : index
    %339 = vector.load %arg11[%c40, %c0_105] : memref<64x512xf32, #tpu.memory_space<vmem>>, vector<8x512xf32>
    %340 = arith.addf %339, %338 : vector<8x512xf32>
    %341 = vector.extract_strided_slice %340 {offsets = [0, 0], sizes = [8, 128], strides = [1, 1]} : vector<8x512xf32> to vector<8x128xf32>
    %342 = arith.negf %341 : vector<8x128xf32>
    %343 = math.exp %342 : vector<8x128xf32>
    %cst_106 = arith.constant 1.000000e+00 : f32
    %344 = vector.broadcast %cst_106 : f32 to vector<8x128xf32>
    %345 = arith.addf %344, %343 : vector<8x128xf32>
    %346 = arith.divf %344, %345 : vector<8x128xf32>
    %347 = vector.extract_strided_slice %340 {offsets = [0, 128], sizes = [8, 128], strides = [1, 1]} : vector<8x512xf32> to vector<8x128xf32>
    %348 = arith.negf %347 : vector<8x128xf32>
    %349 = math.exp %348 : vector<8x128xf32>
    %cst_107 = arith.constant 1.000000e+00 : f32
    %350 = vector.broadcast %cst_107 : f32 to vector<8x128xf32>
    %351 = arith.addf %350, %349 : vector<8x128xf32>
    %352 = arith.divf %350, %351 : vector<8x128xf32>
    %353 = vector.extract_strided_slice %340 {offsets = [0, 256], sizes = [8, 128], strides = [1, 1]} : vector<8x512xf32> to vector<8x128xf32>
    %354 = math.tanh %353 : vector<8x128xf32>
    %355 = vector.extract_strided_slice %340 {offsets = [0, 384], sizes = [8, 128], strides = [1, 1]} : vector<8x512xf32> to vector<8x128xf32>
    %356 = arith.negf %355 : vector<8x128xf32>
    %357 = math.exp %356 : vector<8x128xf32>
    %cst_108 = arith.constant 1.000000e+00 : f32
    %358 = vector.broadcast %cst_108 : f32 to vector<8x128xf32>
    %359 = arith.addf %358, %357 : vector<8x128xf32>
    %360 = arith.divf %358, %359 : vector<8x128xf32>
    %361 = arith.mulf %352, %298 : vector<8x128xf32>
    %362 = arith.mulf %346, %354 : vector<8x128xf32>
    %363 = arith.addf %361, %362 : vector<8x128xf32>
    %364 = math.tanh %363 : vector<8x128xf32>
    %365 = arith.mulf %360, %364 : vector<8x128xf32>
    %366 = arith.truncf %335 : vector<8x128xf32> to vector<8x128xbf16>
    %c0_109 = arith.constant 0 : index
    %c0_110 = arith.constant 0 : index
    %367 = vector.load %arg6[%c0_109, %c0_110] : memref<128x512xbf16, #tpu.memory_space<vmem>>, vector<128x512xbf16>
    %cst_111 = arith.constant dense<0.000000e+00> : vector<8x512xf32>
    %368 = tpu.matmul %366, %367, %cst_111 {dimension_numbers = #tpu.dot_dimension_numbers<[1], [0], [0], [1], [0, 0, 1, 1], [], []>} : vector<8x128xbf16>, vector<128x512xbf16>, vector<8x512xf32> -> vector<8x512xf32>
    %369 = arith.truncf %365 : vector<8x128xf32> to vector<8x128xbf16>
    %c0_112 = arith.constant 0 : index
    %c0_113 = arith.constant 0 : index
    %370 = vector.load %arg5[%c0_112, %c0_113] : memref<128x512xbf16, #tpu.memory_space<vmem>>, vector<128x512xbf16>
    %cst_114 = arith.constant dense<0.000000e+00> : vector<8x512xf32>
    %371 = tpu.matmul %369, %370, %cst_114 {dimension_numbers = #tpu.dot_dimension_numbers<[1], [0], [0], [1], [0, 0, 1, 1], [], []>} : vector<8x128xbf16>, vector<128x512xbf16>, vector<8x512xf32> -> vector<8x512xf32>
    %372 = arith.addf %371, %368 : vector<8x512xf32>
    %c0_115 = arith.constant 0 : index
    %c0_116 = arith.constant 0 : index
    %373 = vector.load %arg7[%c0_115, %c0_116] : memref<1x512xf32, #tpu.memory_space<vmem>>, vector<1x512xf32>
    %374 = vector.broadcast %373 : vector<1x512xf32> to vector<8x512xf32>
    %375 = arith.addf %372, %374 : vector<8x512xf32>
    %376 = vector.extract_strided_slice %375 {offsets = [0, 0], sizes = [8, 128], strides = [1, 1]} : vector<8x512xf32> to vector<8x128xf32>
    %377 = arith.negf %376 : vector<8x128xf32>
    %378 = math.exp %377 : vector<8x128xf32>
    %cst_117 = arith.constant 1.000000e+00 : f32
    %379 = vector.broadcast %cst_117 : f32 to vector<8x128xf32>
    %380 = arith.addf %379, %378 : vector<8x128xf32>
    %381 = arith.divf %379, %380 : vector<8x128xf32>
    %382 = vector.extract_strided_slice %375 {offsets = [0, 128], sizes = [8, 128], strides = [1, 1]} : vector<8x512xf32> to vector<8x128xf32>
    %383 = arith.negf %382 : vector<8x128xf32>
    %384 = math.exp %383 : vector<8x128xf32>
    %cst_118 = arith.constant 1.000000e+00 : f32
    %385 = vector.broadcast %cst_118 : f32 to vector<8x128xf32>
    %386 = arith.addf %385, %384 : vector<8x128xf32>
    %387 = arith.divf %385, %386 : vector<8x128xf32>
    %388 = vector.extract_strided_slice %375 {offsets = [0, 256], sizes = [8, 128], strides = [1, 1]} : vector<8x512xf32> to vector<8x128xf32>
    %389 = math.tanh %388 : vector<8x128xf32>
    %390 = vector.extract_strided_slice %375 {offsets = [0, 384], sizes = [8, 128], strides = [1, 1]} : vector<8x512xf32> to vector<8x128xf32>
    %391 = arith.negf %390 : vector<8x128xf32>
    %392 = math.exp %391 : vector<8x128xf32>
    %cst_119 = arith.constant 1.000000e+00 : f32
    %393 = vector.broadcast %cst_119 : f32 to vector<8x128xf32>
    %394 = arith.addf %393, %392 : vector<8x128xf32>
    %395 = arith.divf %393, %394 : vector<8x128xf32>
    %396 = arith.mulf %387, %333 : vector<8x128xf32>
    %397 = arith.mulf %381, %389 : vector<8x128xf32>
    %398 = arith.addf %396, %397 : vector<8x128xf32>
    %399 = math.tanh %398 : vector<8x128xf32>
    %400 = arith.mulf %395, %399 : vector<8x128xf32>
    %401 = arith.truncf %365 : vector<8x128xf32> to vector<8x128xbf16>
    %c0_120 = arith.constant 0 : index
    %c0_121 = arith.constant 0 : index
    %402 = vector.load %arg4[%c0_120, %c0_121] : memref<128x512xbf16, #tpu.memory_space<vmem>>, vector<128x512xbf16>
    %cst_122 = arith.constant dense<0.000000e+00> : vector<8x512xf32>
    %403 = tpu.matmul %401, %402, %cst_122 {dimension_numbers = #tpu.dot_dimension_numbers<[1], [0], [0], [1], [0, 0, 1, 1], [], []>} : vector<8x128xbf16>, vector<128x512xbf16>, vector<8x512xf32> -> vector<8x512xf32>
    %c48 = arith.constant 48 : index
    %c0_123 = arith.constant 0 : index
    %404 = vector.load %arg11[%c48, %c0_123] : memref<64x512xf32, #tpu.memory_space<vmem>>, vector<8x512xf32>
    %405 = arith.addf %404, %403 : vector<8x512xf32>
    %406 = vector.extract_strided_slice %405 {offsets = [0, 0], sizes = [8, 128], strides = [1, 1]} : vector<8x512xf32> to vector<8x128xf32>
    %407 = arith.negf %406 : vector<8x128xf32>
    %408 = math.exp %407 : vector<8x128xf32>
    %cst_124 = arith.constant 1.000000e+00 : f32
    %409 = vector.broadcast %cst_124 : f32 to vector<8x128xf32>
    %410 = arith.addf %409, %408 : vector<8x128xf32>
    %411 = arith.divf %409, %410 : vector<8x128xf32>
    %412 = vector.extract_strided_slice %405 {offsets = [0, 128], sizes = [8, 128], strides = [1, 1]} : vector<8x512xf32> to vector<8x128xf32>
    %413 = arith.negf %412 : vector<8x128xf32>
    %414 = math.exp %413 : vector<8x128xf32>
    %cst_125 = arith.constant 1.000000e+00 : f32
    %415 = vector.broadcast %cst_125 : f32 to vector<8x128xf32>
    %416 = arith.addf %415, %414 : vector<8x128xf32>
    %417 = arith.divf %415, %416 : vector<8x128xf32>
    %418 = vector.extract_strided_slice %405 {offsets = [0, 256], sizes = [8, 128], strides = [1, 1]} : vector<8x512xf32> to vector<8x128xf32>
    %419 = math.tanh %418 : vector<8x128xf32>
    %420 = vector.extract_strided_slice %405 {offsets = [0, 384], sizes = [8, 128], strides = [1, 1]} : vector<8x512xf32> to vector<8x128xf32>
    %421 = arith.negf %420 : vector<8x128xf32>
    %422 = math.exp %421 : vector<8x128xf32>
    %cst_126 = arith.constant 1.000000e+00 : f32
    %423 = vector.broadcast %cst_126 : f32 to vector<8x128xf32>
    %424 = arith.addf %423, %422 : vector<8x128xf32>
    %425 = arith.divf %423, %424 : vector<8x128xf32>
    %426 = arith.mulf %417, %363 : vector<8x128xf32>
    %427 = arith.mulf %411, %419 : vector<8x128xf32>
    %428 = arith.addf %426, %427 : vector<8x128xf32>
    %429 = math.tanh %428 : vector<8x128xf32>
    %430 = arith.mulf %425, %429 : vector<8x128xf32>
    %431 = arith.truncf %400 : vector<8x128xf32> to vector<8x128xbf16>
    %c0_127 = arith.constant 0 : index
    %c0_128 = arith.constant 0 : index
    %432 = vector.load %arg6[%c0_127, %c0_128] : memref<128x512xbf16, #tpu.memory_space<vmem>>, vector<128x512xbf16>
    %cst_129 = arith.constant dense<0.000000e+00> : vector<8x512xf32>
    %433 = tpu.matmul %431, %432, %cst_129 {dimension_numbers = #tpu.dot_dimension_numbers<[1], [0], [0], [1], [0, 0, 1, 1], [], []>} : vector<8x128xbf16>, vector<128x512xbf16>, vector<8x512xf32> -> vector<8x512xf32>
    %434 = arith.truncf %430 : vector<8x128xf32> to vector<8x128xbf16>
    %c0_130 = arith.constant 0 : index
    %c0_131 = arith.constant 0 : index
    %435 = vector.load %arg5[%c0_130, %c0_131] : memref<128x512xbf16, #tpu.memory_space<vmem>>, vector<128x512xbf16>
    %cst_132 = arith.constant dense<0.000000e+00> : vector<8x512xf32>
    %436 = tpu.matmul %434, %435, %cst_132 {dimension_numbers = #tpu.dot_dimension_numbers<[1], [0], [0], [1], [0, 0, 1, 1], [], []>} : vector<8x128xbf16>, vector<128x512xbf16>, vector<8x512xf32> -> vector<8x512xf32>
    %437 = arith.addf %436, %433 : vector<8x512xf32>
    %c0_133 = arith.constant 0 : index
    %c0_134 = arith.constant 0 : index
    %438 = vector.load %arg7[%c0_133, %c0_134] : memref<1x512xf32, #tpu.memory_space<vmem>>, vector<1x512xf32>
    %439 = vector.broadcast %438 : vector<1x512xf32> to vector<8x512xf32>
    %440 = arith.addf %437, %439 : vector<8x512xf32>
    %441 = vector.extract_strided_slice %440 {offsets = [0, 0], sizes = [8, 128], strides = [1, 1]} : vector<8x512xf32> to vector<8x128xf32>
    %442 = arith.negf %441 : vector<8x128xf32>
    %443 = math.exp %442 : vector<8x128xf32>
    %cst_135 = arith.constant 1.000000e+00 : f32
    %444 = vector.broadcast %cst_135 : f32 to vector<8x128xf32>
    %445 = arith.addf %444, %443 : vector<8x128xf32>
    %446 = arith.divf %444, %445 : vector<8x128xf32>
    %447 = vector.extract_strided_slice %440 {offsets = [0, 128], sizes = [8, 128], strides = [1, 1]} : vector<8x512xf32> to vector<8x128xf32>
    %448 = arith.negf %447 : vector<8x128xf32>
    %449 = math.exp %448 : vector<8x128xf32>
    %cst_136 = arith.constant 1.000000e+00 : f32
    %450 = vector.broadcast %cst_136 : f32 to vector<8x128xf32>
    %451 = arith.addf %450, %449 : vector<8x128xf32>
    %452 = arith.divf %450, %451 : vector<8x128xf32>
    %453 = vector.extract_strided_slice %440 {offsets = [0, 256], sizes = [8, 128], strides = [1, 1]} : vector<8x512xf32> to vector<8x128xf32>
    %454 = math.tanh %453 : vector<8x128xf32>
    %455 = vector.extract_strided_slice %440 {offsets = [0, 384], sizes = [8, 128], strides = [1, 1]} : vector<8x512xf32> to vector<8x128xf32>
    %456 = arith.negf %455 : vector<8x128xf32>
    %457 = math.exp %456 : vector<8x128xf32>
    %cst_137 = arith.constant 1.000000e+00 : f32
    %458 = vector.broadcast %cst_137 : f32 to vector<8x128xf32>
    %459 = arith.addf %458, %457 : vector<8x128xf32>
    %460 = arith.divf %458, %459 : vector<8x128xf32>
    %461 = arith.mulf %452, %398 : vector<8x128xf32>
    %462 = arith.mulf %446, %454 : vector<8x128xf32>
    %463 = arith.addf %461, %462 : vector<8x128xf32>
    %464 = math.tanh %463 : vector<8x128xf32>
    %465 = arith.mulf %460, %464 : vector<8x128xf32>
    %466 = arith.truncf %430 : vector<8x128xf32> to vector<8x128xbf16>
    %c0_138 = arith.constant 0 : index
    %c0_139 = arith.constant 0 : index
    %467 = vector.load %arg4[%c0_138, %c0_139] : memref<128x512xbf16, #tpu.memory_space<vmem>>, vector<128x512xbf16>
    %cst_140 = arith.constant dense<0.000000e+00> : vector<8x512xf32>
    %468 = tpu.matmul %466, %467, %cst_140 {dimension_numbers = #tpu.dot_dimension_numbers<[1], [0], [0], [1], [0, 0, 1, 1], [], []>} : vector<8x128xbf16>, vector<128x512xbf16>, vector<8x512xf32> -> vector<8x512xf32>
    %c56 = arith.constant 56 : index
    %c0_141 = arith.constant 0 : index
    %469 = vector.load %arg11[%c56, %c0_141] : memref<64x512xf32, #tpu.memory_space<vmem>>, vector<8x512xf32>
    %470 = arith.addf %469, %468 : vector<8x512xf32>
    %471 = vector.extract_strided_slice %470 {offsets = [0, 0], sizes = [8, 128], strides = [1, 1]} : vector<8x512xf32> to vector<8x128xf32>
    %472 = arith.negf %471 : vector<8x128xf32>
    %473 = math.exp %472 : vector<8x128xf32>
    %cst_142 = arith.constant 1.000000e+00 : f32
    %474 = vector.broadcast %cst_142 : f32 to vector<8x128xf32>
    %475 = arith.addf %474, %473 : vector<8x128xf32>
    %476 = arith.divf %474, %475 : vector<8x128xf32>
    %477 = vector.extract_strided_slice %470 {offsets = [0, 128], sizes = [8, 128], strides = [1, 1]} : vector<8x512xf32> to vector<8x128xf32>
    %478 = arith.negf %477 : vector<8x128xf32>
    %479 = math.exp %478 : vector<8x128xf32>
    %cst_143 = arith.constant 1.000000e+00 : f32
    %480 = vector.broadcast %cst_143 : f32 to vector<8x128xf32>
    %481 = arith.addf %480, %479 : vector<8x128xf32>
    %482 = arith.divf %480, %481 : vector<8x128xf32>
    %483 = vector.extract_strided_slice %470 {offsets = [0, 256], sizes = [8, 128], strides = [1, 1]} : vector<8x512xf32> to vector<8x128xf32>
    %484 = math.tanh %483 : vector<8x128xf32>
    %485 = vector.extract_strided_slice %470 {offsets = [0, 384], sizes = [8, 128], strides = [1, 1]} : vector<8x512xf32> to vector<8x128xf32>
    %486 = arith.negf %485 : vector<8x128xf32>
    %487 = math.exp %486 : vector<8x128xf32>
    %cst_144 = arith.constant 1.000000e+00 : f32
    %488 = vector.broadcast %cst_144 : f32 to vector<8x128xf32>
    %489 = arith.addf %488, %487 : vector<8x128xf32>
    %490 = arith.divf %488, %489 : vector<8x128xf32>
    %491 = arith.mulf %482, %428 : vector<8x128xf32>
    %492 = arith.mulf %476, %484 : vector<8x128xf32>
    %493 = arith.addf %491, %492 : vector<8x128xf32>
    %494 = math.tanh %493 : vector<8x128xf32>
    %495 = arith.mulf %490, %494 : vector<8x128xf32>
    %496 = arith.truncf %465 : vector<8x128xf32> to vector<8x128xbf16>
    %c0_145 = arith.constant 0 : index
    %c0_146 = arith.constant 0 : index
    %497 = vector.load %arg6[%c0_145, %c0_146] : memref<128x512xbf16, #tpu.memory_space<vmem>>, vector<128x512xbf16>
    %cst_147 = arith.constant dense<0.000000e+00> : vector<8x512xf32>
    %498 = tpu.matmul %496, %497, %cst_147 {dimension_numbers = #tpu.dot_dimension_numbers<[1], [0], [0], [1], [0, 0, 1, 1], [], []>} : vector<8x128xbf16>, vector<128x512xbf16>, vector<8x512xf32> -> vector<8x512xf32>
    %499 = arith.truncf %495 : vector<8x128xf32> to vector<8x128xbf16>
    %c0_148 = arith.constant 0 : index
    %c0_149 = arith.constant 0 : index
    %500 = vector.load %arg5[%c0_148, %c0_149] : memref<128x512xbf16, #tpu.memory_space<vmem>>, vector<128x512xbf16>
    %cst_150 = arith.constant dense<0.000000e+00> : vector<8x512xf32>
    %501 = tpu.matmul %499, %500, %cst_150 {dimension_numbers = #tpu.dot_dimension_numbers<[1], [0], [0], [1], [0, 0, 1, 1], [], []>} : vector<8x128xbf16>, vector<128x512xbf16>, vector<8x512xf32> -> vector<8x512xf32>
    %502 = arith.addf %501, %498 : vector<8x512xf32>
    %c0_151 = arith.constant 0 : index
    %c0_152 = arith.constant 0 : index
    %503 = vector.load %arg7[%c0_151, %c0_152] : memref<1x512xf32, #tpu.memory_space<vmem>>, vector<1x512xf32>
    %504 = vector.broadcast %503 : vector<1x512xf32> to vector<8x512xf32>
    %505 = arith.addf %502, %504 : vector<8x512xf32>
    %506 = vector.extract_strided_slice %505 {offsets = [0, 0], sizes = [8, 128], strides = [1, 1]} : vector<8x512xf32> to vector<8x128xf32>
    %507 = arith.negf %506 : vector<8x128xf32>
    %508 = math.exp %507 : vector<8x128xf32>
    %cst_153 = arith.constant 1.000000e+00 : f32
    %509 = vector.broadcast %cst_153 : f32 to vector<8x128xf32>
    %510 = arith.addf %509, %508 : vector<8x128xf32>
    %511 = arith.divf %509, %510 : vector<8x128xf32>
    %512 = vector.extract_strided_slice %505 {offsets = [0, 128], sizes = [8, 128], strides = [1, 1]} : vector<8x512xf32> to vector<8x128xf32>
    %513 = arith.negf %512 : vector<8x128xf32>
    %514 = math.exp %513 : vector<8x128xf32>
    %cst_154 = arith.constant 1.000000e+00 : f32
    %515 = vector.broadcast %cst_154 : f32 to vector<8x128xf32>
    %516 = arith.addf %515, %514 : vector<8x128xf32>
    %517 = arith.divf %515, %516 : vector<8x128xf32>
    %518 = vector.extract_strided_slice %505 {offsets = [0, 256], sizes = [8, 128], strides = [1, 1]} : vector<8x512xf32> to vector<8x128xf32>
    %519 = math.tanh %518 : vector<8x128xf32>
    %520 = vector.extract_strided_slice %505 {offsets = [0, 384], sizes = [8, 128], strides = [1, 1]} : vector<8x512xf32> to vector<8x128xf32>
    %521 = arith.negf %520 : vector<8x128xf32>
    %522 = math.exp %521 : vector<8x128xf32>
    %cst_155 = arith.constant 1.000000e+00 : f32
    %523 = vector.broadcast %cst_155 : f32 to vector<8x128xf32>
    %524 = arith.addf %523, %522 : vector<8x128xf32>
    %525 = arith.divf %523, %524 : vector<8x128xf32>
    %526 = arith.mulf %517, %463 : vector<8x128xf32>
    %527 = arith.mulf %511, %519 : vector<8x128xf32>
    %528 = arith.addf %526, %527 : vector<8x128xf32>
    %529 = math.tanh %528 : vector<8x128xf32>
    %530 = arith.mulf %525, %529 : vector<8x128xf32>
    %531 = arith.truncf %530 : vector<8x128xf32> to vector<8x128xbf16>
    %c0_156 = arith.constant 0 : index
    %c0_157 = arith.constant 0 : index
    %532 = vector.load %arg8[%c0_156, %c0_157] : memref<128x128xbf16, #tpu.memory_space<vmem>>, vector<128x128xbf16>
    %cst_158 = arith.constant dense<0.000000e+00> : vector<8x128xf32>
    %533 = tpu.matmul %531, %532, %cst_158 {dimension_numbers = #tpu.dot_dimension_numbers<[1], [0], [0], [1], [0, 0, 1, 1], [], []>} : vector<8x128xbf16>, vector<128x128xbf16>, vector<8x128xf32> -> vector<8x128xf32>
    %c0_159 = arith.constant 0 : index
    %c0_160 = arith.constant 0 : index
    %534 = vector.load %arg9[%c0_159, %c0_160] : memref<1x128xf32, #tpu.memory_space<vmem>>, vector<1x128xf32>
    %535 = vector.broadcast %534 : vector<1x128xf32> to vector<8x128xf32>
    %536 = arith.addf %533, %535 : vector<8x128xf32>
    %c0_161 = arith.constant 0 : index
    %c0_162 = arith.constant 0 : index
    %537 = vector.load %arg10[%c0_161, %c0_162] : memref<8x128xf32, #tpu.memory_space<vmem>>, vector<8x128xf32>
    tpu.vector_store %arg10[%c0_161, %c0_162], %536 {strides = array<i32>} : memref<8x128xf32, #tpu.memory_space<vmem>>, vector<8x128xf32>,
    return
  }
  func.func @transform_0(%arg0: i32) -> (i32, i32) {
    %c0_i32 = arith.constant 0 : i32
    %c0_i32_0 = arith.constant 0 : i32
    %c0_i32_1 = arith.constant 0 : i32
    return %c0_i32, %c0_i32_0 : i32, i32
  }
  func.func @transform_1(%arg0: i32) -> (i32, i32) {
    %c0_i32 = arith.constant 0 : i32
    %c0_i32_0 = arith.constant 0 : i32
    %c0_i32_1 = arith.constant 0 : i32
    return %c0_i32, %c0_i32_0 : i32, i32
  }
  func.func @transform_2(%arg0: i32) -> (i32, i32) {
    %c0_i32 = arith.constant 0 : i32
    %c0_i32_0 = arith.constant 0 : i32
    %c0_i32_1 = arith.constant 0 : i32
    return %c0_i32, %c0_i32_0 : i32, i32
  }
  func.func @transform_3(%arg0: i32) -> (i32, i32) {
    %c0_i32 = arith.constant 0 : i32
    %c0_i32_0 = arith.constant 0 : i32
    %c0_i32_1 = arith.constant 0 : i32
    return %c0_i32, %c0_i32_0 : i32, i32
  }
  func.func @transform_4(%arg0: i32) -> (i32, i32) {
    %c0_i32 = arith.constant 0 : i32
    %c0_i32_0 = arith.constant 0 : i32
    %c0_i32_1 = arith.constant 0 : i32
    return %c0_i32, %c0_i32_0 : i32, i32
  }
  func.func @transform_5(%arg0: i32) -> (i32, i32) {
    %c0_i32 = arith.constant 0 : i32
    %c0_i32_0 = arith.constant 0 : i32
    %c0_i32_1 = arith.constant 0 : i32
    return %c0_i32, %c0_i32_0 : i32, i32
  }
  func.func @transform_6(%arg0: i32) -> (i32, i32) {
    %c0_i32 = arith.constant 0 : i32
    %c0_i32_0 = arith.constant 0 : i32
    %c0_i32_1 = arith.constant 0 : i32
    return %c0_i32, %c0_i32_0 : i32, i32
  }
  func.func @transform_7(%arg0: i32) -> (i32, i32) {
    %c0_i32 = arith.constant 0 : i32
    %c0_i32_0 = arith.constant 0 : i32
    %c0_i32_1 = arith.constant 0 : i32
    return %c0_i32, %c0_i32_0 : i32, i32
  }
  func.func @transform_8(%arg0: i32) -> (i32, i32) {
    %c0_i32 = arith.constant 0 : i32
    %c0_i32_0 = arith.constant 0 : i32
    %c0_i32_1 = arith.constant 0 : i32
    return %c0_i32, %c0_i32_0 : i32, i32
  }
  func.func @transform_9(%arg0: i32) -> (i32, i32) {
    %c0_i32 = arith.constant 0 : i32
    %c0_i32_0 = arith.constant 0 : i32
    %c0_i32_1 = arith.constant 0 : i32
    return %c0_i32, %c0_i32_0 : i32, i32
  }
}

</mosaic_0001>

<bundles_post_ra>
// kernel: tpu_custom_call.1
= control target key start
LH: loop header
LB: loop body
LE: loop exit
PB: predicated region body
PF: predicated region fallthrough
CT: control target
= control target key end

     0   :  { %14 = vsyncpa [#allocation4], 0  ;;  %s6402_s0 = inlined_call_operand.vmem [shape: bf16[64,16], index: 0, kind: input, shape index: {}]   ;;  %s6403_s1 = inlined_call_operand.hbm [shape: bf16[16,512], index: 1, kind: input, shape index: {}]   ;;  %s6404_s2 = inlined_call_operand.hbm [shape: f32[1,512], index: 2, kind: input, shape index: {}]   ;;  %s6405_s3 = inlined_call_operand.hbm [shape: bf16[128,512], index: 3, kind: input, shape index: {}]   ;;  %s6406_s4 = inlined_call_operand.hbm [shape: bf16[128,512], index: 4, kind: input, shape index: {}]   ;;  %s6407_s5 = inlined_call_operand.hbm [shape: bf16[128,512], index: 5, kind: input, shape index: {}]   ;;  %s6408_s6 = inlined_call_operand.hbm [shape: f32[1,512], index: 6, kind: input, shape index: {}]   ;;  %s6409_s7 = inlined_call_operand.vmem [shape: bf16[128,128], index: 7, kind: input, shape index: {}]   ;;  %s6410_s8 = inlined_call_operand.vmem [shape: f32[1,128], index: 8, kind: input, shape index: {}]   ;;  %s6411_s9 = inlined_call_operand.hbm [shape: f32[8,128], index: 9, kind: output, shape index: {}]  }
   0x1   :  { %15 = vsyncpa [#allocation7], 0 }
   0x2   :  { %16 = vsyncpa [#allocation10], 0 }
   0x3   :  { %17 = vsyncpa [#allocation13], 0 }
   0x4   :  { %18 = vsyncpa [#allocation5], 0  ;;  %s4553_s30 = smov [#allocation6]   ;;  %s4389_s13 = scalar_lea.hbm %s6404_s2, 64 }
   0x5   :  { %s39_s10 = sshll.u32 %s4553_s30, 4  ;;  %p4390_p0 = scmp.ne.s32.totalorder %s6404_s2, %s4389_s13  ;;  %s40_s10 = int_to_ptr.vmem [resolvable:$true] %s39_s10 }
   0x6   :  { %p4393_p1 = scmp.lt.u32.totalorder %s4389_s13, %s6404_s2 }
   0x8   :  { %p4395_p2 = pnand %p4393_p1, %p4390_p0 }
   0xa   :  { %4398 = shalt.err (!%p4395_p2)
}
   0xb   :  { %s4399_s18 = scalar_lea.vmem %s40_s10, 64  ;;  %p4404_p4 = scmp.lt.s32.totalorder %s40_s10, %s40_s10 }
   0xc   :  { %p4400_p3 = scmp.ne.s32.totalorder %s40_s10, %s4399_s18  ;;  %p4405_p5 = scmp.lt.s32.totalorder %s4399_s18, %s4399_s18 }
   0xe   :  { %p4406_p6 = por %p4405_p5, %p4404_p4 }
  0x10   :  { %p4407_p7 = pnand %p4406_p6, %p4400_p3 }
  0x12   :  { %4410 = shalt.err (!%p4407_p7)
}
  0x13   :  { %42 = dma.hbm_to_vmem [thread:$0]  %s6404_s2, 64, %s40_s10, [#allocation7]  }
  0x14   :  { %s4554_s21 = smov [#allocation9]   ;;  %s4555_s23 = smov [#allocation3]  }
  0x15   :  { %s60_s22 = sshll.u32 %s4554_s21, 4  ;;  %s26_s24 = sshll.u32 %s4555_s23, 4  ;;  %s61_s22 = int_to_ptr.vmem [resolvable:$true] %s60_s22  ;;  %s27_s24 = int_to_ptr.vmem [resolvable:$true] %s26_s24 }
  0x16   :  { %s4411_s27 = scalar_lea.hbm %s6406_s4, 4096 }
  0x17   :  { %p4412_p8 = scmp.ne.s32.totalorder %s6406_s4, %s4411_s27  ;;  %p4415_p9 = scmp.lt.u32.totalorder %s4411_s27, %s6406_s4 }
  0x19   :  { %p4417_p10 = pnand %p4415_p9, %p4412_p8 }
  0x1b   :  { %4420 = shalt.err (!%p4417_p10)
}
  0x1c   :  { %s4421_s2 = scalar_lea.vmem %s61_s22, 4096  ;;  %p4426_p12 = scmp.lt.s32.totalorder %s61_s22, %s61_s22 }
  0x1d   :  { %p4422_p11 = scmp.ne.s32.totalorder %s61_s22, %s4421_s2  ;;  %p4427_p13 = scmp.lt.s32.totalorder %s4421_s2, %s4421_s2 }
  0x1f   :  { %p4428_p0 = por %p4427_p13, %p4426_p12 }
  0x21   :  { %p4429_p1 = pnand %p4428_p0, %p4422_p11 }
  0x23   :  { %4432 = shalt.err (!%p4429_p1)
}
  0x24   :  { %s4556_s10 = smov 256   ;;  %s4557_s12 = smov 16  }
  0x25   :  { %66 = dma.hbm_to_vmem [thread:$0]  %s6406_s4, 4096, %s61_s22, [#allocation10], %s4556_s10, %s4556_s10, %s4557_s12  }
  0x26   :  { %s4433_s17 = scalar_lea.hbm %s6403_s1, 512 }
  0x27   :  { %p4434_p2 = scmp.ne.s32.totalorder %s6403_s1, %s4433_s17  ;;  %p4437_p3 = scmp.lt.u32.totalorder %s4433_s17, %s6403_s1 }
  0x29   :  { %p4439_p4 = pnand %p4437_p3, %p4434_p2 }
  0x2b   :  { %4442 = shalt.err (!%p4439_p4)
}
  0x2c   :  { %s4443_s23 = scalar_lea.vmem %s27_s24, 512  ;;  %p4448_p6 = scmp.lt.s32.totalorder %s27_s24, %s27_s24 }
  0x2d   :  { %p4444_p5 = scmp.ne.s32.totalorder %s27_s24, %s4443_s23  ;;  %p4449_p7 = scmp.lt.s32.totalorder %s4443_s23, %s4443_s23 }
  0x2f   :  { %p4450_p8 = por %p4449_p7, %p4448_p6 }
  0x31   :  { %p4451_p9 = pnand %p4450_p8, %p4444_p5 }
  0x33   :  { %4454 = shalt.err (!%p4451_p9)
}
  0x34   :  { %32 = dma.hbm_to_vmem [thread:$0]  %s6403_s1, 512, %s27_s24, [#allocation4], %s4556_s10, %s4556_s10, %s4557_s12  }
  0x35   :  { %s4558_s25 = smov [#allocation8]   ;;  %s4559_s27 = smov [#allocation11]  }
  0x36   :  { %s48_s26 = sshll.u32 %s4558_s25, 4  ;;  %s72_s28 = sshll.u32 %s4559_s27, 4  ;;  %s49_s26 = int_to_ptr.vmem [resolvable:$true] %s48_s26  ;;  %s73_s28 = int_to_ptr.vmem [resolvable:$true] %s72_s28 }
  0x37   :  { %s4455_s11 = scalar_lea.hbm %s6405_s3, 4096 }
  0x38   :  { %p4456_p10 = scmp.ne.s32.totalorder %s6405_s3, %s4455_s11  ;;  %p4459_p11 = scmp.lt.u32.totalorder %s4455_s11, %s6405_s3 }
  0x3a   :  { %p4461_p12 = pnand %p4459_p11, %p4456_p10 }
  0x3c   :  { %4464 = shalt.err (!%p4461_p12)
}
  0x3d   :  { %s4465_s1 = scalar_lea.vmem %s49_s26, 4096  ;;  %p4470_p0 = scmp.lt.s32.totalorder %s49_s26, %s49_s26 }
  0x3e   :  { %p4466_p13 = scmp.ne.s32.totalorder %s49_s26, %s4465_s1  ;;  %p4471_p1 = scmp.lt.s32.totalorder %s4465_s1, %s4465_s1 }
  0x40   :  { %p4472_p2 = por %p4471_p1, %p4470_p0 }
  0x42   :  { %p4473_p3 = pnand %p4472_p2, %p4466_p13 }
  0x44   :  { %4476 = shalt.err (!%p4473_p3)
}
  0x45   :  { %54 = dma.hbm_to_vmem [thread:$0]  %s6405_s3, 4096, %s49_s26, [#allocation7], %s4556_s10, %s4556_s10, %s4557_s12  }
  0x46   :  { %s4477_s19 = scalar_lea.hbm %s6407_s5, 4096 }
  0x47   :  { %p4478_p4 = scmp.ne.s32.totalorder %s6407_s5, %s4477_s19  ;;  %p4481_p5 = scmp.lt.u32.totalorder %s4477_s19, %s6407_s5 }
  0x49   :  { %p4483_p6 = pnand %p4481_p5, %p4478_p4 }
  0x4b   :  { %4486 = shalt.err (!%p4483_p6)
}
  0x4c   :  { %s4487_s22 = scalar_lea.vmem %s73_s28, 4096  ;;  %p4492_p8 = scmp.lt.s32.totalorder %s73_s28, %s73_s28 }
  0x4d   :  { %p4488_p7 = scmp.ne.s32.totalorder %s73_s28, %s4487_s22  ;;  %p4493_p9 = scmp.lt.s32.totalorder %s4487_s22, %s4487_s22 }
  0x4f   :  { %p4494_p10 = por %p4493_p9, %p4492_p8 }
  0x51   :  { %p4495_p11 = pnand %p4494_p10, %p4488_p7 }
  0x53   :  { %4498 = shalt.err (!%p4495_p11)
}
  0x54   :  { %78 = dma.hbm_to_vmem [thread:$0]  %s6407_s5, 4096, %s73_s28, [#allocation10], %s4556_s10, %s4556_s10, %s4557_s12  }
  0x55   :  { %s4560_s26 = smov [#allocation12]   ;;  %s4499_s11 = scalar_lea.hbm %s6408_s6, 64 }
  0x56   :  { %s85_s27 = sshll.u32 %s4560_s26, 4  ;;  %p4500_p12 = scmp.ne.s32.totalorder %s6408_s6, %s4499_s11  ;;  %s86_s27 = int_to_ptr.vmem [resolvable:$true] %s85_s27 }
  0x57   :  { %p4503_p13 = scmp.lt.u32.totalorder %s4499_s11, %s6408_s6 }
  0x59   :  { %p4505_p0 = pnand %p4503_p13, %p4500_p12 }
  0x5b   :  { %4508 = shalt.err (!%p4505_p0)
}
  0x5c   :  { %s4509_s1 = scalar_lea.vmem %s86_s27, 64  ;;  %p4514_p2 = scmp.lt.s32.totalorder %s86_s27, %s86_s27 }
  0x5d   :  { %p4510_p1 = scmp.ne.s32.totalorder %s86_s27, %s4509_s1  ;;  %p4515_p3 = scmp.lt.s32.totalorder %s4509_s1, %s4509_s1 }
  0x5f   :  { %p4516_p4 = por %p4515_p3, %p4514_p2 }
  0x61   :  { %p4517_p5 = pnand %p4516_p4, %p4510_p1 }
  0x63   :  { %4520 = shalt.err (!%p4517_p5)
}
  0x64   :  { %88 = dma.hbm_to_vmem [thread:$0]  %s6408_s6, 64, %s86_s27, [#allocation13]  }
  0x65   :  { %4543 = dma.done.wait [#allocation4], 512  }
  0x66   :  { %4544 = vsyncadd [#allocation4], 4294966784 }
  0x67   :  { %4545 = dma.done.wait [#allocation7], 4160  }
  0x68   :  { %4546 = vsyncadd [#allocation7], 4294963136 }
  0x69   :  { %4547 = dma.done.wait [#allocation10], 8192  }
  0x6a   :  { %4548 = vsyncadd [#allocation10], 4294959104 }
  0x6b   :  { %4549 = dma.done.wait [#allocation13], 64  }
  0x6c   :  { %4550 = vsyncadd [#allocation13], 4294967232  ;;  %v6412_v0 = vmov 0   ;;  %v3779_v1 = vld [vmem:[#allocation3 + $0x4] ss:$16 sps:$4 sm:$0xff]   ;;  %vm186_vm0 = vcmask 130048  }
  0x6d   :  { %231 = vmatprep.mubr.bf16.mxu0 %v6412_v0  ;;  %304 = vmatprep.mubr.bf16.mxu1 %v6412_v0  ;;  %v3781_v2 = vld [vmem:[#allocation3 + $0xc] ss:$16 sps:$4 sm:$0xff]   ;;  %v3783_v3 = vld [vmem:[#allocation3] ss:$16 sps:$4 sm:$0xff]   ;;  %v3784_v4 = vld [vmem:[#allocation3 + $0x8] ss:$16 sps:$4 sm:$0xff]  }
  0x6e   :  { %199 = vmatprep.subr.bf16.mxu0 %v3779_v1  ;;  %272 = vmatprep.subr.bf16.mxu1 %v3781_v2  ;;  %v3785_v5 = vld [vmem:[%s6402_s0] sm:$0xff]   ;;  %v4704_v6 = vld [vmem:[#allocation8 + $0x4] ss:$16 sps:$4 sm:$0xff]   ;;  %v4711_v9 = vld [vmem:[#allocation8 + $0x8] ss:$16 sps:$4 sm:$0xff]   ;;  %vm4563_vm1 = vmmov 0  }
  0x6f   :  { %200 = vmatpush1.bf16.msra.mxu0 %v3783_v3  ;;  %273 = vmatpush1.bf16.msra.mxu1 %v3784_v4  ;;  %v4706_v7 = vld [vmem:[#allocation8 + $0xc] ss:$16 sps:$4 sm:$0xff]   ;;  %v4708_v8 = vld [vmem:[#allocation8] ss:$16 sps:$4 sm:$0xff]   ;;  %v4715_v10 = vld [vmem:[#allocation8 + $0x24] ss:$16 sps:$4 sm:$0xff]  }
  0x70   :  { %569 = vmatprep.subr.bf16.mxu0 %v4704_v6  ;;  %610 = vmatprep.subr.bf16.mxu1 %v4706_v7  ;;  %v4719_v11 = vld [vmem:[#allocation8 + $0x2c] ss:$16 sps:$4 sm:$0xff]   ;;  %v4721_v12 = vld [vmem:[#allocation8 + $0x20] ss:$16 sps:$4 sm:$0xff]   ;;  %v4723_v13 = vld [vmem:[#allocation8 + $0x28] ss:$16 sps:$4 sm:$0xff]  }
  0x71   :  { %v3798_v14 = vld [vmem:[%s6402_s0 + $0x8] sm:$0xff]   ;;  %v4735_v16 = vld [vmem:[#allocation8 + $0x4c] ss:$16 sps:$4 sm:$0xff]   ;;  %v4738_v17 = vld [vmem:[#allocation8 + $0x40] ss:$16 sps:$4 sm:$0xff]   ;;  %s4564_s1 = smov [#allocation14]  }
  0x72   :  { %3577 = vmatmul.mubr.msk.bf16.vlgmr.msra.gmra.mrb[0].mxu0 %vm186_vm0, %v3785_v5  ;;  %3581 = vmatmul.mubr.msk.bf16.vlgmr.msra.gmra.mrb[0].mxu1 %vm186_vm0, %v3785_v5  ;;  %v4732_v15 = vld [vmem:[#allocation8 + $0x44] ss:$16 sps:$4 sm:$0xff]   ;;  %v4740_v18 = vld [vmem:[#allocation8 + $0x48] ss:$16 sps:$4 sm:$0xff]   ;;  %v4747_v20 = vld [vmem:[#allocation8 + $0x6c] ss:$16 sps:$4 sm:$0xff]  }
  0x73   :  { %570 = vmatpush1.bf16.msra.mxu0 %v4708_v8  ;;  %611 = vmatpush1.bf16.msra.mxu1 %v4711_v9  ;;  %v4744_v19 = vld [vmem:[#allocation8 + $0x64] ss:$16 sps:$4 sm:$0xff]   ;;  %v4751_v21 = vld [vmem:[#allocation8 + $0x60] ss:$16 sps:$4 sm:$0xff]   ;;  %v4754_v22 = vld [vmem:[#allocation8 + $0x68] ss:$16 sps:$4 sm:$0xff]  }
  0x74   :  { %571 = vmatprep.subr.bf16.mxu0 %v4715_v10  ;;  %612 = vmatprep.subr.bf16.mxu1 %v4719_v11  ;;  %v4759_v23 = vld [vmem:[#allocation8 + $0x84] ss:$16 sps:$4 sm:$0xff]   ;;  %v4763_v24 = vld [vmem:[#allocation8 + $0x8c] ss:$16 sps:$4 sm:$0xff]   ;;  %v4769_v26 = vld [vmem:[#allocation8 + $0x80] ss:$16 sps:$4 sm:$0xff]  }
  0x75   :  { %241 = vmatprep.mubr.bf16.mxu0 %v6412_v0  ;;  %314 = vmatprep.mubr.bf16.mxu1 %v6412_v0  ;;  %v3811_v25 = vld [vmem:[%s6402_s0 + $0x10] sm:$0xff]   ;;  %v4773_v27 = vld [vmem:[#allocation8 + $0x88] ss:$16 sps:$4 sm:$0xff]   ;;  %v4775_v28 = vld [vmem:[#allocation8 + $0xa4] ss:$16 sps:$4 sm:$0xff]   ;;  %s3557_s5 = sshll.u32 %s4564_s1, 4  ;;  %s3558_s5 = int_to_ptr.vmem [resolvable:$true] %s3557_s5 }
  0x76   :  { %v4778_v29 = vld [vmem:[#allocation8 + $0xac] ss:$16 sps:$4 sm:$0xff]   ;;  %v4783_v30 = vld [vmem:[#allocation8 + $0xa0] ss:$16 sps:$4 sm:$0xff]   ;;  %v4785_v31 = vld [vmem:[#allocation8 + $0xa8] ss:$16 sps:$4 sm:$0xff]   ;;  %p4526_p7 = scmp.lt.s32.totalorder %s3558_s5, %s3558_s5 }
  0x77   :  { %572 = vmatpush1.bf16.msra.mxu0 %v4721_v12  ;;  %613 = vmatpush1.bf16.msra.mxu1 %v4723_v13  ;;  %v3824_v32 = vld [vmem:[%s6402_s0 + $0x18] sm:$0xff]   ;;  %v4797_v34 = vld [vmem:[#allocation8 + $0xcc] ss:$16 sps:$4 sm:$0xff]   ;;  %v4799_v35 = vld [vmem:[#allocation8 + $0xc0] ss:$16 sps:$4 sm:$0xff]   ;;  %s4521_s10 = scalar_lea.vmem %s3558_s5, 128 }
  0x78   :  { %573 = vmatprep.subr.bf16.mxu0 %v4732_v15  ;;  %614 = vmatprep.subr.bf16.mxu1 %v4735_v16  ;;  %v4793_v33 = vld [vmem:[#allocation8 + $0xc4] ss:$16 sps:$4 sm:$0xff]   ;;  %v4801_v36 = vld [vmem:[#allocation8 + $0xc8] ss:$16 sps:$4 sm:$0xff]   ;;  %v4806_v38 = vld [vmem:[#allocation8 + $0xec] ss:$16 sps:$4 sm:$0xff]   ;;  %p4522_p6 = scmp.ne.s32.totalorder %s3558_s5, %s4521_s10  ;;  %p4527_p8 = scmp.lt.s32.totalorder %s4521_s10, %s4521_s10 }
  0x79   :  { %v4803_v37 = vld [vmem:[#allocation8 + $0xe4] ss:$16 sps:$4 sm:$0xff]   ;;  %v4811_v39 = vld [vmem:[#allocation8 + $0xe0] ss:$16 sps:$4 sm:$0xff]   ;;  %v4815_v40 = vld [vmem:[#allocation8 + $0xe8] ss:$16 sps:$4 sm:$0xff]  }
  0x7a   :  { %3578 = vmatmul.mubr.msk.bf16.gmra.mrb[4].mxu0 %vm186_vm0, %v3798_v14  ;;  %3582 = vmatmul.mubr.msk.bf16.gmra.mrb[4].mxu1 %vm186_vm0, %v3798_v14  ;;  %v4829_v41 = vld [vmem:[#allocation11 + $0x4] ss:$16 sps:$4 sm:$0xff]   ;;  %v4831_v42 = vld [vmem:[#allocation11 + $0xc] ss:$16 sps:$4 sm:$0xff]   ;;  %v4833_v43 = vld [vmem:[#allocation11] ss:$16 sps:$4 sm:$0xff]   ;;  %p4528_p9 = por %p4527_p8, %p4526_p7 }
  0x7b   :  { %574 = vmatpush1.bf16.msra.mxu0 %v4738_v17  ;;  %251 = vmatprep.mubr.bf16.mxu0 %v6412_v0  ;;  %v4836_v44 = vld [vmem:[#allocation11 + $0x8] ss:$16 sps:$4 sm:$0xff]   ;;  %v4841_v45 = vld [vmem:[#allocation11 + $0x24] ss:$16 sps:$4 sm:$0xff]   ;;  %v4843_v46 = vld [vmem:[#allocation11 + $0x2c] ss:$16 sps:$4 sm:$0xff]  }
  0x7c   :  { %615 = vmatpush1.bf16.msra.mxu1 %v4740_v18  ;;  %575 = vmatprep.subr.bf16.mxu0 %v4744_v19  ;;  %v4845_v47 = vld [vmem:[#allocation11 + $0x20] ss:$16 sps:$4 sm:$0xff]   ;;  %v4848_v48 = vld [vmem:[#allocation11 + $0x28] ss:$16 sps:$4 sm:$0xff]   ;;  %v4853_v49 = vld [vmem:[#allocation11 + $0x44] ss:$16 sps:$4 sm:$0xff]   ;;  %p4529_p10 = pnand %p4528_p9, %p4522_p6 }
  0x7d   :  { %616 = vmatprep.subr.bf16.mxu1 %v4747_v20  ;;  %324 = vmatprep.mubr.bf16.mxu1 %v6412_v0  ;;  %6677 = vst [vmem:[#allocation20_spill] sm:$0xff] %v4853_v49  ;;  %v4855_v50 = vld [vmem:[#allocation11 + $0x4c] ss:$16 sps:$4 sm:$0xff]   ;;  %v4857_v51 = vld [vmem:[#allocation11 + $0x40] ss:$16 sps:$4 sm:$0xff]  }
  0x7e   :  { %6678 = vst [vmem:[#allocation21_spill] sm:$0xff] %v4855_v50  ;;  %6679 = vst [vmem:[#allocation22_spill] sm:$0xff] %v4857_v51  ;;  %v4860_v52 = vld [vmem:[#allocation11 + $0x48] ss:$16 sps:$4 sm:$0xff]   ;;  %v4865_v53 = vld [vmem:[#allocation11 + $0x64] ss:$16 sps:$4 sm:$0xff]  }
  0x7f   :  { %576 = vmatpush1.bf16.msra.mxu0 %v4751_v21  ;;  %6680 = vst [vmem:[#allocation23_spill] sm:$0xff] %v4860_v52  ;;  %6681 = vst [vmem:[#allocation24_spill] sm:$0xff] %v4865_v53  ;;  %v4867_v54 = vld [vmem:[#allocation11 + $0x6c] ss:$16 sps:$4 sm:$0xff]   ;;  %v4869_v55 = vld [vmem:[#allocation11 + $0x60] ss:$16 sps:$4 sm:$0xff]  }
  0x80   :  { %617 = vmatpush1.bf16.msra.mxu1 %v4754_v22  ;;  %577 = vmatprep.subr.bf16.mxu0 %v4759_v23  ;;  %6682 = vst [vmem:[#allocation25_spill] sm:$0xff] %v4867_v54  ;;  %6683 = vst [vmem:[#allocation26_spill] sm:$0xff] %v4869_v55  ;;  %v4872_v56 = vld [vmem:[#allocation11 + $0x68] ss:$16 sps:$4 sm:$0xff]   ;;  %v4877_v57 = vld [vmem:[#allocation11 + $0x84] ss:$16 sps:$4 sm:$0xff]  }
  0x81   :  { %618 = vmatprep.subr.bf16.mxu1 %v4763_v24  ;;  %6684 = vst [vmem:[#allocation27_spill] sm:$0xff] %v4872_v56  ;;  %6685 = vst [vmem:[#allocation28_spill] sm:$0xff] %v4877_v57  ;;  %v4879_v58 = vld [vmem:[#allocation11 + $0x8c] ss:$16 sps:$4 sm:$0xff]   ;;  %v4881_v59 = vld [vmem:[#allocation11 + $0x80] ss:$16 sps:$4 sm:$0xff]  }
  0x82   :  { %3579 = vmatmul.mubr.msk.bf16.gmra.mrb[8].mxu0 %vm186_vm0, %v3811_v25  ;;  %3583 = vmatmul.mubr.msk.bf16.gmra.mrb[8].mxu1 %vm186_vm0, %v3811_v25  ;;  %6686 = vst [vmem:[#allocation29_spill] sm:$0xff] %v4879_v58  ;;  %6687 = vst [vmem:[#allocation30_spill] sm:$0xff] %v4881_v59  ;;  %v4884_v60 = vld [vmem:[#allocation11 + $0x88] ss:$16 sps:$4 sm:$0xff]   ;;  %v4889_v61 = vld [vmem:[#allocation11 + $0xa4] ss:$16 sps:$4 sm:$0xff]  }
  0x83   :  { %578 = vmatpush1.bf16.msra.mxu0 %v4769_v26  ;;  %261 = vmatprep.mubr.bf16.mxu0 %v6412_v0  ;;  %6688 = vst [vmem:[#allocation31_spill] sm:$0xff] %v4884_v60  ;;  %6689 = vst [vmem:[#allocation32_spill] sm:$0xff] %v4889_v61  ;;  %v4891_v62 = vld [vmem:[#allocation11 + $0xac] ss:$16 sps:$4 sm:$0xff]   ;;  %v4893_v63 = vld [vmem:[#allocation11 + $0xa0] ss:$16 sps:$4 sm:$0xff]  }
  0x84   :  { %619 = vmatpush1.bf16.msra.mxu1 %v4773_v27  ;;  %579 = vmatprep.subr.bf16.mxu0 %v4775_v28  ;;  %6690 = vst [vmem:[#allocation33_spill] sm:$0xff] %v4891_v62  ;;  %6691 = vst [vmem:[#allocation34_spill] sm:$0xff] %v4893_v63  ;;  %v4896_v1 = vld [vmem:[#allocation11 + $0xa8] ss:$16 sps:$4 sm:$0xff]   ;;  %v4901_v2 = vld [vmem:[#allocation11 + $0xc4] ss:$16 sps:$4 sm:$0xff]  }
  0x85   :  { %620 = vmatprep.subr.bf16.mxu1 %v4778_v29  ;;  %334 = vmatprep.mubr.bf16.mxu1 %v6412_v0  ;;  %6692 = vst [vmem:[#allocation35_spill] sm:$0xff] %v4896_v1  ;;  %6693 = vst [vmem:[#allocation36_spill] sm:$0xff] %v4901_v2  ;;  %v4903_v3 = vld [vmem:[#allocation11 + $0xcc] ss:$16 sps:$4 sm:$0xff]   ;;  %v4905_v4 = vld [vmem:[#allocation11 + $0xc0] ss:$16 sps:$4 sm:$0xff]  }
  0x86   :  { %6694 = vst [vmem:[#allocation37_spill] sm:$0xff] %v4903_v3  ;;  %6695 = vst [vmem:[#allocation38_spill] sm:$0xff] %v4905_v4  ;;  %v4908_v5 = vld [vmem:[#allocation11 + $0xc8] ss:$16 sps:$4 sm:$0xff]   ;;  %v4913_v14 = vld [vmem:[#allocation11 + $0xe4] ss:$16 sps:$4 sm:$0xff]  }
  0x87   :  { %580 = vmatpush1.bf16.msra.mxu0 %v4783_v30  ;;  %6696 = vst [vmem:[#allocation39_spill] sm:$0xff] %v4908_v5  ;;  %6697 = vst [vmem:[#allocation40_spill] sm:$0xff] %v4913_v14  ;;  %v4915_v25 = vld [vmem:[#allocation11 + $0xec] ss:$16 sps:$4 sm:$0xff]  }
  0x88   :  { %621 = vmatpush1.bf16.msra.mxu1 %v4785_v31  ;;  %581 = vmatprep.subr.bf16.mxu0 %v4793_v33  ;;  %6698 = vst [vmem:[#allocation41_spill] sm:$0xff] %v4915_v25 }
  0x89   :  { %622 = vmatprep.subr.bf16.mxu1 %v4797_v34 }
  0x8a   :  { %3580 = vmatmul.mubr.msk.bf16.gmra.mrb[12].mxu0 %vm186_vm0, %v3824_v32  ;;  %3584 = vmatmul.mubr.msk.bf16.gmra.mrb[12].mxu1 %vm186_vm0, %v3824_v32  ;;  %v4917_v32 = vld [vmem:[#allocation11 + $0xe0] ss:$16 sps:$4 sm:$0xff]  }
  0x8b   :  { %582 = vmatpush1.bf16.msra.mxu0 %v4799_v35  ;;  %601 = vmatprep.mubr.bf16.mxu0 %v6412_v0  ;;  %6699 = vst [vmem:[#allocation42_spill] sm:$0xff] %v4917_v32 }
  0x8c   :  { %623 = vmatpush1.bf16.msra.mxu1 %v4801_v36  ;;  %583 = vmatprep.subr.bf16.mxu0 %v4803_v37 }
  0x8d   :  { %624 = vmatprep.subr.bf16.mxu1 %v4806_v38  ;;  %642 = vmatprep.mubr.bf16.mxu1 %v6412_v0 }
  0x8f   :  { %584 = vmatpush1.bf16.msra.mxu0 %v4811_v39 }
  0x90   :  { %625 = vmatpush1.bf16.msra.mxu1 %v4815_v40  ;;  %875 = vmatprep.subr.bf16.mxu0 %v4829_v41 }
  0x91   :  { %916 = vmatprep.subr.bf16.mxu1 %v4831_v42 }
  0x92   :  { %602 = vmatmul.mubr.bf16.vlgmr.msra.gmra.mrb[16].mxu0 %v6412_v0 }
  0x93   :  { %643 = vmatmul.mubr.bf16.vlgmr.msra.gmra.mrb[16].mxu1 %v6412_v0  ;;  %907 = vmatprep.mubr.bf16.mxu0 %v6412_v0 }
  0x94   :  { %948 = vmatprep.mubr.bf16.mxu1 %v6412_v0  ;;  %876 = vmatpush1.bf16.msra.mxu0 %v4833_v43  ;;  %v4920_v0 = vld [vmem:[#allocation11 + $0xe8] ss:$16 sps:$4 sm:$0xff]  }
  0x95   :  { %917 = vmatpush1.bf16.msra.mxu1 %v4836_v44  ;;  %877 = vmatprep.subr.bf16.mxu0 %v4841_v45  ;;  %6700 = vst [vmem:[#allocation43_spill] sm:$0xff] %v4920_v0 }
  0x96   :  { %918 = vmatprep.subr.bf16.mxu1 %v4843_v46 }
  0x98   :  { %878 = vmatpush1.bf16.msra.mxu0 %v4845_v47 }
  0x99   :  { %919 = vmatpush1.bf16.msra.mxu1 %v4848_v48  ;;  %879 = vmatprep.subr.bf16.mxu0 %v4853_v49 }
  0x9a   :  { %920 = vmatprep.subr.bf16.mxu1 %v4855_v50 }
  0x9c   :  { %880 = vmatpush1.bf16.msra.mxu0 %v4857_v51 }
  0x9d   :  { %921 = vmatpush1.bf16.msra.mxu1 %v4860_v52  ;;  %881 = vmatprep.subr.bf16.mxu0 %v4865_v53 }
  0x9e   :  { %922 = vmatprep.subr.bf16.mxu1 %v4867_v54 }
  0xa0   :  { %882 = vmatpush1.bf16.msra.mxu0 %v4869_v55 }
  0xa1   :  { %923 = vmatpush1.bf16.msra.mxu1 %v4872_v56  ;;  %883 = vmatprep.subr.bf16.mxu0 %v4877_v57 }
  0xa2   :  { %924 = vmatprep.subr.bf16.mxu1 %v4879_v58 }
  0xa4   :  { %884 = vmatpush1.bf16.msra.mxu0 %v4881_v59 }
  0xa5   :  { %925 = vmatpush1.bf16.msra.mxu1 %v4884_v60  ;;  %885 = vmatprep.subr.bf16.mxu0 %v4889_v61 }
  0xa6   :  { %926 = vmatprep.subr.bf16.mxu1 %v4891_v62  ;;  %v5013_v62 = vld [vmem:[#allocation9 + $0xec] ss:$16 sps:$4 sm:$0xff]  }
  0xa7   :  { %6731 = vst [vmem:[#allocation73_spill] sm:$0xff] %v5013_v62 }
  0xa8   :  { %886 = vmatpush1.bf16.msra.mxu0 %v4893_v63  ;;  %v4997_v63 = vld [vmem:[#allocation9 + $0xc4] ss:$16 sps:$4 sm:$0xff]  }
  0xa9   :  { %927 = vmatpush1.bf16.msra.mxu1 %v4896_v1  ;;  %887 = vmatprep.subr.bf16.mxu0 %v4901_v2  ;;  %v4930_v2 = vld [vmem:[#allocation9] ss:$16 sps:$4 sm:$0xff]   ;;  %v4932_v1 = vld [vmem:[#allocation9 + $0x8] ss:$16 sps:$4 sm:$0xff]   ;;  %6726 = vst [vmem:[#allocation68_spill] sm:$0xff] %v4997_v63 }
  0xaa   :  { %928 = vmatprep.subr.bf16.mxu1 %v4903_v3  ;;  %v4925_v3 = vld [vmem:[#allocation9 + $0x4] ss:$16 sps:$4 sm:$0xff]   ;;  %6704 = vst [vmem:[#allocation46_spill] sm:$0xff] %v4930_v2  ;;  %6705 = vst [vmem:[#allocation47_spill] sm:$0xff] %v4932_v1 }
  0xab   :  { %6701 = vst [vmem:[#allocation44_spill] sm:$0xff] %v4925_v3 }
  0xac   :  { %888 = vmatpush1.bf16.msra.mxu0 %v4905_v4  ;;  %v4927_v4 = vld [vmem:[#allocation9 + $0xc] ss:$16 sps:$4 sm:$0xff]  }
  0xad   :  { %929 = vmatpush1.bf16.msra.mxu1 %v4908_v5  ;;  %889 = vmatprep.subr.bf16.mxu0 %v4913_v14  ;;  %6702 = vst [vmem:[#allocation45_spill] sm:$0xff] %v4927_v4  ;;  %v6703_v5 = vmov 0   ;;  %v4946_v14 = vld [vmem:[#allocation9 + $0x28] ss:$16 sps:$4 sm:$0xff]  }
  0xae   :  { %930 = vmatprep.subr.bf16.mxu1 %v4915_v25  ;;  %v4944_v25 = vld [vmem:[#allocation9 + $0x20] ss:$16 sps:$4 sm:$0xff]   ;;  %6709 = vst [vmem:[#allocation51_spill] sm:$0xff] %v4946_v14 }
  0xaf   :  { %6708 = vst [vmem:[#allocation50_spill] sm:$0xff] %v4944_v25 }
  0xb0   :  { %890 = vmatpush1.bf16.msra.mxu0 %v4917_v32  ;;  %v4941_v32 = vld [vmem:[#allocation9 + $0x2c] ss:$16 sps:$4 sm:$0xff]  }
  0xb1   :  { %931 = vmatpush1.bf16.msra.mxu1 %v4920_v0  ;;  %1150 = vmatprep.subr.bf16.mxu0 %v4925_v3  ;;  %v4939_v0 = vld [vmem:[#allocation9 + $0x24] ss:$16 sps:$4 sm:$0xff]   ;;  %6707 = vst [vmem:[#allocation49_spill] sm:$0xff] %v4941_v32  ;;  %v4959_v3 = vld [vmem:[#allocation9 + $0x48] ss:$16 sps:$4 sm:$0xff]  }
  0xb2   :  { %1191 = vmatprep.subr.bf16.mxu1 %v4927_v4  ;;  %6706 = vst [vmem:[#allocation48_spill] sm:$0xff] %v4939_v0  ;;  %v4957_v4 = vld [vmem:[#allocation9 + $0x40] ss:$16 sps:$4 sm:$0xff]   ;;  %6713 = vst [vmem:[#allocation55_spill] sm:$0xff] %v4959_v3 }
  0xb3   :  { %908 = vmatmul.mubr.bf16.vlgmr.msra.gmra.mrb[20].mxu0 %v6703_v5  ;;  %6712 = vst [vmem:[#allocation54_spill] sm:$0xff] %v4957_v4 }
  0xb4   :  { %949 = vmatmul.mubr.bf16.vlgmr.msra.gmra.mrb[20].mxu1 %v6703_v5  ;;  %1151 = vmatpush1.bf16.msra.mxu0 %v4930_v2  ;;  %v4955_v2 = vld [vmem:[#allocation9 + $0x4c] ss:$16 sps:$4 sm:$0xff]  }
  0xb5   :  { %1192 = vmatpush1.bf16.msra.mxu1 %v4932_v1  ;;  %1182 = vmatprep.mubr.bf16.mxu0 %v6703_v5  ;;  %v4953_v1 = vld [vmem:[#allocation9 + $0x44] ss:$16 sps:$4 sm:$0xff]   ;;  %6711 = vst [vmem:[#allocation53_spill] sm:$0xff] %v4955_v2 }
  0xb6   :  { %1223 = vmatprep.mubr.bf16.mxu1 %v6703_v5  ;;  %1152 = vmatprep.subr.bf16.mxu0 %v4939_v0  ;;  %6710 = vst [vmem:[#allocation52_spill] sm:$0xff] %v4953_v1  ;;  %v4971_v0 = vld [vmem:[#allocation9 + $0x68] ss:$16 sps:$4 sm:$0xff]  }
  0xb7   :  { %1193 = vmatprep.subr.bf16.mxu1 %v4941_v32  ;;  %v4965_v32 = vld [vmem:[#allocation9 + $0x64] ss:$16 sps:$4 sm:$0xff]   ;;  %6717 = vst [vmem:[#allocation59_spill] sm:$0xff] %v4971_v0 }
  0xb8   :  { %1153 = vmatpush1.bf16.msra.mxu0 %v4944_v25  ;;  %6714 = vst [vmem:[#allocation56_spill] sm:$0xff] %v4965_v32  ;;  %v4967_v25 = vld [vmem:[#allocation9 + $0x6c] ss:$16 sps:$4 sm:$0xff]  }
  0xb9   :  { %1194 = vmatpush1.bf16.msra.mxu1 %v4946_v14  ;;  %1154 = vmatprep.subr.bf16.mxu0 %v4953_v1  ;;  %6715 = vst [vmem:[#allocation57_spill] sm:$0xff] %v4967_v25  ;;  %v4969_v14 = vld [vmem:[#allocation9 + $0x60] ss:$16 sps:$4 sm:$0xff]   ;;  %v4983_v1 = vld [vmem:[#allocation9 + $0x88] ss:$16 sps:$4 sm:$0xff]  }
  0xba   :  { %1195 = vmatprep.subr.bf16.mxu1 %v4955_v2  ;;  %6716 = vst [vmem:[#allocation58_spill] sm:$0xff] %v4969_v14  ;;  %v4977_v2 = vld [vmem:[#allocation9 + $0x84] ss:$16 sps:$4 sm:$0xff]   ;;  %6721 = vst [vmem:[#allocation63_spill] sm:$0xff] %v4983_v1 }
  0xbb   :  { %6718 = vst [vmem:[#allocation60_spill] sm:$0xff] %v4977_v2 }
  0xbc   :  { %1155 = vmatpush1.bf16.msra.mxu0 %v4957_v4  ;;  %v4979_v4 = vld [vmem:[#allocation9 + $0x8c] ss:$16 sps:$4 sm:$0xff]  }
  0xbd   :  { %1196 = vmatpush1.bf16.msra.mxu1 %v4959_v3  ;;  %1156 = vmatprep.subr.bf16.mxu0 %v4965_v32  ;;  %6719 = vst [vmem:[#allocation61_spill] sm:$0xff] %v4979_v4  ;;  %v4981_v3 = vld [vmem:[#allocation9 + $0x80] ss:$16 sps:$4 sm:$0xff]   ;;  %v4988_v32 = vld [vmem:[#allocation9 + $0xa4] ss:$16 sps:$4 sm:$0xff]  }
  0xbe   :  { %1197 = vmatprep.subr.bf16.mxu1 %v4967_v25  ;;  %6720 = vst [vmem:[#allocation62_spill] sm:$0xff] %v4981_v3  ;;  %6722 = vst [vmem:[#allocation64_spill] sm:$0xff] %v4988_v32  ;;  %v4990_v25 = vld [vmem:[#allocation9 + $0xac] ss:$16 sps:$4 sm:$0xff]  }
  0xbf   :  { %6723 = vst [vmem:[#allocation65_spill] sm:$0xff] %v4990_v25 }
  0xc0   :  { %1157 = vmatpush1.bf16.msra.mxu0 %v4969_v14  ;;  %v4992_v14 = vld [vmem:[#allocation9 + $0xa0] ss:$16 sps:$4 sm:$0xff]  }
  0xc1   :  { %1198 = vmatpush1.bf16.msra.mxu1 %v4971_v0  ;;  %1158 = vmatprep.subr.bf16.mxu0 %v4977_v2  ;;  %6724 = vst [vmem:[#allocation66_spill] sm:$0xff] %v4992_v14  ;;  %v4995_v0 = vld [vmem:[#allocation9 + $0xa8] ss:$16 sps:$4 sm:$0xff]   ;;  %v5001_v2 = vld [vmem:[#allocation9 + $0xcc] ss:$16 sps:$4 sm:$0xff]  }
  0xc2   :  { %1199 = vmatprep.subr.bf16.mxu1 %v4979_v4  ;;  %6725 = vst [vmem:[#allocation67_spill] sm:$0xff] %v4995_v0  ;;  %6727 = vst [vmem:[#allocation69_spill] sm:$0xff] %v5001_v2  ;;  %v5008_v4 = vld [vmem:[#allocation9 + $0xc8] ss:$16 sps:$4 sm:$0xff]  }
  0xc3   :  { %6729 = vst [vmem:[#allocation71_spill] sm:$0xff] %v5008_v4 }
  0xc4   :  { %1159 = vmatpush1.bf16.msra.mxu0 %v4981_v3  ;;  %v5004_v3 = vld [vmem:[#allocation9 + $0xc0] ss:$16 sps:$4 sm:$0xff]  }
  0xc5   :  { %1200 = vmatpush1.bf16.msra.mxu1 %v4983_v1  ;;  %1160 = vmatprep.subr.bf16.mxu0 %v4988_v32  ;;  %6728 = vst [vmem:[#allocation70_spill] sm:$0xff] %v5004_v3  ;;  %v5010_v1 = vld [vmem:[#allocation9 + $0xe4] ss:$16 sps:$4 sm:$0xff]  }
  0xc6   :  { %1201 = vmatprep.subr.bf16.mxu1 %v4990_v25  ;;  %6730 = vst [vmem:[#allocation72_spill] sm:$0xff] %v5010_v1  ;;  %v5016_v25 = vld [vmem:[#allocation9 + $0xe0] ss:$16 sps:$4 sm:$0xff]  }
  0xc7   :  { %6732 = vst [vmem:[#allocation74_spill] sm:$0xff] %v5016_v25 }
  0xc8   :  { %1161 = vmatpush1.bf16.msra.mxu0 %v4992_v14  ;;  %v5020_v14 = vld [vmem:[#allocation9 + $0xe8] ss:$16 sps:$4 sm:$0xff]  }
  0xc9   :  { %1202 = vmatpush1.bf16.msra.mxu1 %v4995_v0  ;;  %1162 = vmatprep.subr.bf16.mxu0 %v4997_v63  ;;  %6733 = vst [vmem:[#allocation75_spill] sm:$0xff] %v5020_v14  ;;  %v124_v0 = vld [vmem:[#allocation6] sm:$0xf] }
  0xca   :  { %1203 = vmatprep.subr.bf16.mxu1 %v5001_v2  ;;  %v126_v2 = vlaneseq }
  0xcc   :  { %1163 = vmatpush1.bf16.msra.mxu0 %v5004_v3  ;;  %v5027_v3 = vshrl.u32 %v126_v2, 7 }
  0xcd   :  { %1204 = vmatpush1.bf16.msra.mxu1 %v5008_v4  ;;  %1164 = vmatprep.subr.bf16.mxu0 %v5010_v1 }
  0xce   :  { %1205 = vmatprep.subr.bf16.mxu1 %v5013_v62  ;;  %6734 = vst [vmem:[#allocation76_spill] sm:$0xff] %v5027_v3  ;;  %v6478_v63 = vsub.s32 2, %v5027_v3  ;;  %v6487_v4 = vsub.s32 3, %v5027_v3  ;;  %v6488_v1 = vsub.s32 0, %v5027_v3  ;;  %v6495_v62 = vsub.s32 1, %v5027_v3 }
  0xd0   :  { %1165 = vmatpush1.bf16.msra.mxu0 %v5016_v25  ;;  %v5035_v25 = vrot.slane %v124_v0, %v6478_v63  ;;  %v129_v2 = vrot.slane %v124_v0, %v6488_v1  ;;  %v133_v60 = vrot.slane %v124_v0, %v6495_v62 }
  0xd1   :  { %1206 = vmatpush1.bf16.msra.mxu1 %v5020_v14  ;;  %1282 = vmatprep.subr.bf16.mxu0 %v4704_v6 }
  0xd2   :  { %1323 = vmatprep.subr.bf16.mxu1 %v4706_v7  ;;  %v5043_v7 = vrot.slane %v124_v0, %v6487_v4 }
 0x145   :  { %v5037_v14 = vpop.f32.mrb[0].mxu0  ;;  %v5039_v6 = vpop.f32.mrb[0].mxu1 }
 0x146   :  { %v235_v32 = vpop.f32.mrb[1].mxu0  ;;  %v308_v61 = vpop.f32.mrb[1].mxu1 }
 0x147   :  { %v237_v59 = vpop.f32.mrb[2].mxu0  ;;  %v310_v58 = vpop.f32.mrb[2].mxu1 }
 0x148   :  { %v5049_v63 = vadd.f32 %v237_v59, %v129_v2  ;;  %v239_v57 = vpop.f32.mrb[3].mxu0  ;;  %v5052_v56 = vadd.f32 %v310_v58, %v5035_v25  ;;  %v312_v55 = vpop.f32.mrb[3].mxu1 }
 0x149   :  { %v5054_v54 = vadd.f32 %v239_v57, %v133_v60  ;;  %v5057_v4 = vadd.f32 %v312_v55, %v5043_v7 }
 0x14a   :  { %6735 = vst [vmem:[#allocation77_spill] sm:$0xff] %v5049_v63  ;;  %6736 = vst [vmem:[#allocation78_spill] sm:$0xff] %v5052_v56 }
 0x14b   :  { %6737 = vst [vmem:[#allocation79_spill] sm:$0xff] %v5054_v54  ;;  %6738 = vst [vmem:[#allocation80_spill] sm:$0xff] %v5057_v4 }
 0x14d   :  { %v243_v1 = vpop.f32.mrb[4].mxu0  ;;  %v316_v53 = vpop.f32.mrb[4].mxu1 }
 0x14e   :  { %v5059_v52 = vadd.f32 %v243_v1, %v129_v2  ;;  %v245_v3 = vpop.f32.mrb[5].mxu0  ;;  %v5062_v0 = vadd.f32 %v316_v53, %v5035_v25  ;;  %v318_v59 = vpop.f32.mrb[5].mxu1 }
 0x14f   :  { %v5064_v62 = vadd.f32 %v245_v3, %v133_v60  ;;  %v247_v63 = vpop.f32.mrb[6].mxu0  ;;  %v5067_v58 = vadd.f32 %v318_v59, %v5043_v7  ;;  %v320_v57 = vpop.f32.mrb[6].mxu1 }
 0x150   :  { %6739 = vst [vmem:[#allocation81_spill] sm:$0xff] %v5059_v52  ;;  %6740 = vst [vmem:[#allocation82_spill] sm:$0xff] %v5062_v0  ;;  %v5069_v54 = vadd.f32 %v247_v63, %v129_v2  ;;  %v249_v55 = vpop.f32.mrb[7].mxu0  ;;  %v5072_v4 = vadd.f32 %v320_v57, %v5035_v25  ;;  %v322_v1 = vpop.f32.mrb[7].mxu1 }
 0x151   :  { %6741 = vst [vmem:[#allocation83_spill] sm:$0xff] %v5064_v62  ;;  %6742 = vst [vmem:[#allocation84_spill] sm:$0xff] %v5067_v58  ;;  %v5074_v52 = vadd.f32 %v249_v55, %v133_v60  ;;  %v5077_v53 = vadd.f32 %v322_v1, %v5043_v7 }
 0x152   :  { %6743 = vst [vmem:[#allocation85_spill] sm:$0xff] %v5069_v54  ;;  %6744 = vst [vmem:[#allocation86_spill] sm:$0xff] %v5072_v4 }
 0x153   :  { %6745 = vst [vmem:[#allocation87_spill] sm:$0xff] %v5074_v52  ;;  %6746 = vst [vmem:[#allocation88_spill] sm:$0xff] %v5077_v53 }
 0x155   :  { %v253_v0 = vpop.f32.mrb[8].mxu0  ;;  %v326_v3 = vpop.f32.mrb[8].mxu1 }
 0x156   :  { %v5079_v62 = vadd.f32 %v253_v0, %v129_v2  ;;  %v255_v56 = vpop.f32.mrb[9].mxu0  ;;  %v5082_v59 = vadd.f32 %v326_v3, %v5035_v25  ;;  %v328_v63 = vpop.f32.mrb[9].mxu1 }
 0x157   :  { %v5084_v54 = vadd.f32 %v255_v56, %v133_v60  ;;  %v257_v58 = vpop.f32.mrb[10].mxu0  ;;  %v5087_v57 = vadd.f32 %v328_v63, %v5043_v7  ;;  %v330_v55 = vpop.f32.mrb[10].mxu1 }
 0x158   :  { %6747 = vst [vmem:[#allocation89_spill] sm:$0xff] %v5079_v62  ;;  %6748 = vst [vmem:[#allocation90_spill] sm:$0xff] %v5082_v59  ;;  %v5089_v52 = vadd.f32 %v257_v58, %v129_v2  ;;  %v259_v1 = vpop.f32.mrb[11].mxu0  ;;  %v5092_v53 = vadd.f32 %v330_v55, %v5035_v25  ;;  %v332_v0 = vpop.f32.mrb[11].mxu1 }
 0x159   :  { %6749 = vst [vmem:[#allocation91_spill] sm:$0xff] %v5084_v54  ;;  %6750 = vst [vmem:[#allocation92_spill] sm:$0xff] %v5087_v57  ;;  %v5094_v62 = vadd.f32 %v259_v1, %v133_v60  ;;  %v5097_v3 = vadd.f32 %v332_v0, %v5043_v7 }
 0x15a   :  { %6751 = vst [vmem:[#allocation93_spill] sm:$0xff] %v5089_v52  ;;  %6752 = vst [vmem:[#allocation94_spill] sm:$0xff] %v5092_v53 }
 0x15b   :  { %6753 = vst [vmem:[#allocation95_spill] sm:$0xff] %v5094_v62  ;;  %6754 = vst [vmem:[#allocation96_spill] sm:$0xff] %v5097_v3 }
 0x15d   :  { %v263_v59 = vpop.f32.mrb[12].mxu0  ;;  %v336_v56 = vpop.f32.mrb[12].mxu1 }
 0x15e   :  { %v5099_v54 = vadd.f32 %v263_v59, %v129_v2  ;;  %v265_v4 = vpop.f32.mrb[13].mxu0  ;;  %v5102_v63 = vadd.f32 %v336_v56, %v5035_v25  ;;  %v338_v58 = vpop.f32.mrb[13].mxu1 }
 0x15f   :  { %v5104_v52 = vadd.f32 %v265_v4, %v133_v60  ;;  %v267_v57 = vpop.f32.mrb[14].mxu0  ;;  %v5107_v55 = vadd.f32 %v338_v58, %v5043_v7  ;;  %v340_v1 = vpop.f32.mrb[14].mxu1  ;;  %v234_v4 = vadd.f32 %v5037_v14, %v129_v2  ;;  %v307_v58 = vadd.f32 %v5039_v6, %v5035_v25 }
 0x160   :  { %6755 = vst [vmem:[#allocation97_spill] sm:$0xff] %v5099_v54  ;;  %6756 = vst [vmem:[#allocation98_spill] sm:$0xff] %v5102_v63  ;;  %v5109_v62 = vadd.f32 %v267_v57, %v129_v2  ;;  %v269_v0 = vpop.f32.mrb[15].mxu0  ;;  %v5112_v3 = vadd.f32 %v340_v1, %v5035_v25  ;;  %v342_v59 = vpop.f32.mrb[15].mxu1  ;;  %v309_v57 = vadd.f32 %v308_v61, %v5043_v7 }
 0x161   :  { %6757 = vst [vmem:[#allocation99_spill] sm:$0xff] %v5104_v52  ;;  %6758 = vst [vmem:[#allocation100_spill] sm:$0xff] %v5107_v55  ;;  %v5114_v54 = vadd.f32 %v269_v0, %v133_v60  ;;  %v5117_v56 = vadd.f32 %v342_v59, %v5043_v7  ;;  %v236_v52 = vadd.f32 %v235_v32, %v133_v60 }
 0x162   :  { %6759 = vst [vmem:[#allocation101_spill] sm:$0xff] %v5109_v62  ;;  %6760 = vst [vmem:[#allocation102_spill] sm:$0xff] %v5112_v3 }
 0x163   :  { %6761 = vst [vmem:[#allocation103_spill] sm:$0xff] %v5114_v54  ;;  %6762 = vst [vmem:[#allocation104_spill] sm:$0xff] %v5117_v56 }
 0x165   :  { %v603_v55 = vpop.f32.mrb[16].mxu0 }
 0x166   :  { %v655_v62 = vadd.f32 %v603_v55, %v234_v4  ;;  %v644_v63 = vpop.f32.mrb[16].mxu1  ;;  %v605_v53 = vpop.f32.mrb[17].mxu0  ;;  %v6786_v4 = vld [vmem:[#allocation43_spill] sm:$0xff] }
 0x167   :  { %v657_v1 = vadd.f32 %v644_v63, %v307_v58  ;;  %v656_v3 = vadd.f32 %v605_v53, %v236_v52  ;;  %v646_v51 = vpop.f32.mrb[17].mxu1  ;;  %v607_v0 = vpop.f32.mrb[18].mxu0  ;;  %v6787_v58 = vld [vmem:[#allocation44_spill] sm:$0xff] }
 0x168   :  { %v3617_v54 = vmul.f32 -1.442695, %v655_v62  ;;  %v658_v50 = vadd.f32 %v646_v51, %v309_v57  ;;  %v608_v59 = vpop.f32.mrb[19].mxu0  ;;  %v648_v56 = vpop.f32.mrb[18].mxu1  ;;  %v6788_v57 = vld [vmem:[#allocation45_spill] sm:$0xff]  ;;  %v6789_v0 = vld [vmem:[#allocation76_spill] sm:$0xff] }
 0x169   :  { %v3618_v49 = vmul.f32 -1.442695, %v656_v3  ;;  %v649_v14 = vpop.f32.mrb[19].mxu1  ;;  %v6785_v56 = vld [vmem:[#allocation42_spill] sm:$0xff]  ;;  %v6790_v59 = vsub.s32 0, %v6789_v0 }
 0x16a   :  { %3941 = vpow2.f32 %v3617_v54  ;;  %v3619_v60 = vmul.f32 -1.442695, %v658_v50 }
 0x16b   :  { %3943 = vpow2.f32 %v3618_v49 }
 0x16c   :  { %3945 = vpow2.f32 %v3619_v60 }
 0x16d   :  { %3947 = vtanh.f32 %v657_v1  ;;  %v1232_v1 = vld [vmem:[#allocation12] sm:$0xf] }
 0x16e   :  { %v5196_v14 = vrot.slane %v1232_v1, %v6790_v59 }
 0x174   :  { %v3942_v25 = vpop.eup %3941 }
 0x175   :  { %v3944_v32 = vpop.eup %3943  ;;  %v662_v6 = vadd.f32 1.0, %v3942_v25 }
 0x176   :  { %v668_v61 = vadd.f32 1.0, %v3944_v32  ;;  %v3946_v52 = vpop.eup %3945  ;;  %v6791_v32 = vsub.s32 1, %v6789_v0 }
 0x177   :  { %3949 = vrcp.f32 %v662_v6  ;;  %v3948_v7 = vpop.eup %3947  ;;  %v675_v53 = vadd.f32 1.0, %v3946_v52 }
 0x178   :  { %3951 = vrcp.f32 %v668_v61  ;;  %v5200_v6 = vrot.slane %v1232_v1, %v6791_v32 }
 0x179   :  { %3953 = vrcp.f32 %v675_v53 }
 0x181   :  { %v3950_v2 = vpop.eup %3949 }
 0x182   :  { %v3952_v62 = vpop.eup %3951  ;;  %v679_v51 = vmul.f32 %v3950_v2, %v3948_v7 }
 0x183   :  { %v678_v63 = vmul.f32 0.0, %v3952_v62  ;;  %v3954_v49 = vpop.eup %3953 }
 0x185   :  { %v5123_v3 = vadd.f32 %v679_v51, %v678_v63 }
 0x187   :  { %3955 = vtanh.f32 %v5123_v3 }
 0x191   :  { %v3956_v50 = vpop.eup %3955 }
 0x192   :  { %v682_v54 = vmul.f32 %v3956_v50, %v3954_v49 }
 0x194   :  { %v957_v55 = vpack.c.bf16 %v682_v54, %v682_v54 }
 0x196   :  { %1183 = vmatmul.mubr.bf16.vlgmr.msra.gmra.mrb[24].mxu0 %v957_v55  ;;  %1224 = vmatmul.mubr.bf16.vlgmr.msra.gmra.mrb[24].mxu1 %v957_v55 }
 0x197   :  { %1283 = vmatpush1.bf16.msra.mxu0 %v4708_v8  ;;  %1324 = vmatpush1.bf16.msra.mxu1 %v4711_v9  ;;  %v6763_v8 = vld [vmem:[#allocation20_spill] sm:$0xff]  ;;  %v6764_v9 = vld [vmem:[#allocation21_spill] sm:$0xff] }
 0x198   :  { %1284 = vmatprep.subr.bf16.mxu0 %v4715_v10  ;;  %1325 = vmatprep.subr.bf16.mxu1 %v4719_v11  ;;  %v6765_v10 = vld [vmem:[#allocation22_spill] sm:$0xff]  ;;  %v6766_v11 = vld [vmem:[#allocation23_spill] sm:$0xff] }
 0x199   :  { %1314 = vmatprep.mubr.bf16.mxu0 %v6703_v5  ;;  %1355 = vmatprep.mubr.bf16.mxu1 %v6703_v5 }
 0x19b   :  { %1285 = vmatpush1.bf16.msra.mxu0 %v4721_v12  ;;  %1326 = vmatpush1.bf16.msra.mxu1 %v4723_v13  ;;  %v6767_v12 = vld [vmem:[#allocation24_spill] sm:$0xff]  ;;  %v6768_v13 = vld [vmem:[#allocation25_spill] sm:$0xff] }
 0x19c   :  { %1286 = vmatprep.subr.bf16.mxu0 %v4732_v15  ;;  %1327 = vmatprep.subr.bf16.mxu1 %v4735_v16  ;;  %v6769_v15 = vld [vmem:[#allocation26_spill] sm:$0xff]  ;;  %v6770_v16 = vld [vmem:[#allocation27_spill] sm:$0xff] }
 0x19f   :  { %1287 = vmatpush1.bf16.msra.mxu0 %v4738_v17  ;;  %1328 = vmatpush1.bf16.msra.mxu1 %v4740_v18  ;;  %v6771_v17 = vld [vmem:[#allocation28_spill] sm:$0xff]  ;;  %v6772_v18 = vld [vmem:[#allocation29_spill] sm:$0xff] }
 0x1a0   :  { %1288 = vmatprep.subr.bf16.mxu0 %v4744_v19  ;;  %1329 = vmatprep.subr.bf16.mxu1 %v4747_v20  ;;  %v6773_v19 = vld [vmem:[#allocation30_spill] sm:$0xff]  ;;  %v6774_v20 = vld [vmem:[#allocation31_spill] sm:$0xff] }
 0x1a3   :  { %1289 = vmatpush1.bf16.msra.mxu0 %v4751_v21  ;;  %1330 = vmatpush1.bf16.msra.mxu1 %v4754_v22  ;;  %v909_v21 = vpop.f32.mrb[20].mxu0  ;;  %v6775_v22 = vld [vmem:[#allocation32_spill] sm:$0xff] }
 0x1a4   :  { %1290 = vmatprep.subr.bf16.mxu0 %v4759_v23  ;;  %1331 = vmatprep.subr.bf16.mxu1 %v4763_v24  ;;  %v6776_v23 = vld [vmem:[#allocation33_spill] sm:$0xff]  ;;  %v911_v24 = vpop.f32.mrb[21].mxu0 }
 0x1a7   :  { %1291 = vmatpush1.bf16.msra.mxu0 %v4769_v26  ;;  %1332 = vmatpush1.bf16.msra.mxu1 %v4773_v27  ;;  %v913_v26 = vpop.f32.mrb[22].mxu0  ;;  %v950_v27 = vpop.f32.mrb[20].mxu1 }
 0x1a8   :  { %1292 = vmatprep.subr.bf16.mxu0 %v4775_v28  ;;  %1333 = vmatprep.subr.bf16.mxu1 %v4778_v29  ;;  %v914_v28 = vpop.f32.mrb[23].mxu0  ;;  %v952_v29 = vpop.f32.mrb[21].mxu1 }
 0x1ab   :  { %1293 = vmatpush1.bf16.msra.mxu0 %v4783_v30  ;;  %1334 = vmatpush1.bf16.msra.mxu1 %v4785_v31  ;;  %v6777_v30 = vld [vmem:[#allocation34_spill] sm:$0xff]  ;;  %v6778_v31 = vld [vmem:[#allocation35_spill] sm:$0xff] }
 0x1ac   :  { %1294 = vmatprep.subr.bf16.mxu0 %v4793_v33  ;;  %1335 = vmatprep.subr.bf16.mxu1 %v4797_v34  ;;  %v954_v33 = vpop.f32.mrb[22].mxu1  ;;  %v6779_v34 = vld [vmem:[#allocation36_spill] sm:$0xff] }
 0x1ad   :  { %v6792_v33 = vsub.s32 3, %v6789_v0 }
 0x1af   :  { %1295 = vmatpush1.bf16.msra.mxu0 %v4799_v35  ;;  %1336 = vmatpush1.bf16.msra.mxu1 %v4801_v36  ;;  %v6780_v35 = vld [vmem:[#allocation37_spill] sm:$0xff]  ;;  %v955_v36 = vpop.f32.mrb[23].mxu1 }
 0x1b0   :  { %1296 = vmatprep.subr.bf16.mxu0 %v4803_v37  ;;  %1337 = vmatprep.subr.bf16.mxu1 %v4806_v38  ;;  %v6781_v37 = vld [vmem:[#allocation38_spill] sm:$0xff]  ;;  %v6782_v38 = vld [vmem:[#allocation39_spill] sm:$0xff]  ;;  %v5206_v36 = vrot.slane %v1232_v1, %v6792_v33 }
 0x1b3   :  { %1297 = vmatpush1.bf16.msra.mxu0 %v4811_v39  ;;  %1338 = vmatpush1.bf16.msra.mxu1 %v4815_v40  ;;  %v6783_v39 = vld [vmem:[#allocation40_spill] sm:$0xff]  ;;  %v6784_v40 = vld [vmem:[#allocation41_spill] sm:$0xff] }
 0x1b4   :  { %1397 = vmatprep.subr.bf16.mxu0 %v4829_v41  ;;  %1438 = vmatprep.subr.bf16.mxu1 %v4831_v42 }
 0x1b6   :  { %1315 = vmatmul.mubr.bf16.vlgmr.msra.gmra.mrb[28].mxu0 %v957_v55  ;;  %1356 = vmatmul.mubr.bf16.vlgmr.msra.gmra.mrb[28].mxu1 %v957_v55 }
 0x1b7   :  { %1398 = vmatpush1.bf16.msra.mxu0 %v4833_v43  ;;  %1439 = vmatpush1.bf16.msra.mxu1 %v4836_v44 }
 0x1b8   :  { %1399 = vmatprep.subr.bf16.mxu0 %v4841_v45  ;;  %1440 = vmatprep.subr.bf16.mxu1 %v4843_v46 }
 0x1b9   :  { %1429 = vmatprep.mubr.bf16.mxu0 %v6703_v5  ;;  %1470 = vmatprep.mubr.bf16.mxu1 %v6703_v5 }
 0x1bb   :  { %1400 = vmatpush1.bf16.msra.mxu0 %v4845_v47  ;;  %1441 = vmatpush1.bf16.msra.mxu1 %v4848_v48 }
 0x1bc   :  { %1401 = vmatprep.subr.bf16.mxu0 %v6763_v8  ;;  %1442 = vmatprep.subr.bf16.mxu1 %v6764_v9 }
 0x1bf   :  { %1402 = vmatpush1.bf16.msra.mxu0 %v6765_v10  ;;  %1443 = vmatpush1.bf16.msra.mxu1 %v6766_v11 }
 0x1c0   :  { %1403 = vmatprep.subr.bf16.mxu0 %v6767_v12  ;;  %1444 = vmatprep.subr.bf16.mxu1 %v6768_v13 }
 0x1c3   :  { %1404 = vmatpush1.bf16.msra.mxu0 %v6769_v15  ;;  %1445 = vmatpush1.bf16.msra.mxu1 %v6770_v16 }
 0x1c4   :  { %1405 = vmatprep.subr.bf16.mxu0 %v6771_v17  ;;  %1446 = vmatprep.subr.bf16.mxu1 %v6772_v18 }
 0x1c7   :  { %1406 = vmatpush1.bf16.msra.mxu0 %v6773_v19  ;;  %1447 = vmatpush1.bf16.msra.mxu1 %v6774_v20 }
 0x1c8   :  { %1407 = vmatprep.subr.bf16.mxu0 %v6775_v22  ;;  %1448 = vmatprep.subr.bf16.mxu1 %v6776_v23 }
 0x1cb   :  { %1408 = vmatpush1.bf16.msra.mxu0 %v6777_v30  ;;  %1449 = vmatpush1.bf16.msra.mxu1 %v6778_v31 }
 0x1cc   :  { %1409 = vmatprep.subr.bf16.mxu0 %v6779_v34  ;;  %1450 = vmatprep.subr.bf16.mxu1 %v6780_v35 }
 0x1cf   :  { %1410 = vmatpush1.bf16.msra.mxu0 %v6781_v37  ;;  %1451 = vmatpush1.bf16.msra.mxu1 %v6782_v38 }
 0x1d0   :  { %1411 = vmatprep.subr.bf16.mxu0 %v6783_v39  ;;  %1452 = vmatprep.subr.bf16.mxu1 %v6784_v40 }
 0x1d3   :  { %1412 = vmatpush1.bf16.msra.mxu0 %v6785_v56  ;;  %1453 = vmatpush1.bf16.msra.mxu1 %v6786_v4 }
 0x1d4   :  { %1480 = vmatprep.subr.bf16.mxu0 %v6787_v58  ;;  %1521 = vmatprep.subr.bf16.mxu1 %v6788_v57 }
 0x269   :  { %v1184_v60 = vpop.f32.mrb[24].mxu0  ;;  %v1225_v25 = vpop.f32.mrb[24].mxu1 }
 0x26a   :  { %v1185_v61 = vadd.f32 %v1184_v60, %v909_v21  ;;  %v1226_v52 = vadd.f32 %v1225_v25, %v950_v27  ;;  %v1186_v7 = vpop.f32.mrb[25].mxu0  ;;  %v1227_v2 = vpop.f32.mrb[25].mxu1 }
 0x26b   :  { %v1187_v62 = vadd.f32 %v1186_v7, %v911_v24  ;;  %v1228_v51 = vadd.f32 %v1227_v2, %v952_v29  ;;  %v1188_v53 = vpop.f32.mrb[26].mxu0  ;;  %v1229_v63 = vpop.f32.mrb[26].mxu1  ;;  %v6793_v24 = vsub.s32 2, %v6789_v0 }
 0x26c   :  { %v1254_v49 = vadd.f32 %v5196_v14, %v1185_v61  ;;  %v1189_v50 = vpop.f32.mrb[27].mxu0  ;;  %v1230_v54 = vpop.f32.mrb[27].mxu1 }
 0x26d   :  { %v1255_v55 = vadd.f32 %v5200_v6, %v1187_v62  ;;  %v1257_v21 = vadd.f32 %v5206_v36, %v1228_v51  ;;  %v5211_v27 = vrot.slane %v1232_v1, %v6793_v24  ;;  %v6794_v50 = vld [vmem:[#allocation77_spill] sm:$0xff] }
 0x26e   :  { %v3684_v26 = vmul.f32 -1.442695, %v1254_v49 }
 0x26f   :  { %v3685_v28 = vmul.f32 -1.442695, %v1255_v55  ;;  %v3686_v29 = vmul.f32 -1.442695, %v1257_v21  ;;  %v1256_v59 = vadd.f32 %v5211_v27, %v1226_v52  ;;  %v6795_v52 = vld [vmem:[#allocation78_spill] sm:$0xff]  ;;  %v6796_v21 = vld [vmem:[#allocation79_spill] sm:$0xff] }
 0x270   :  { %3957 = vpow2.f32 %v3684_v26 }
 0x271   :  { %3959 = vpow2.f32 %v3685_v28 }
 0x272   :  { %3961 = vpow2.f32 %v3686_v29  ;;  %v6797_v29 = vld [vmem:[#allocation80_spill] sm:$0xff] }
 0x273   :  { %3963 = vtanh.f32 %v1256_v59 }
 0x27a   :  { %v3958_v60 = vpop.eup %3957 }
 0x27b   :  { %v3960_v25 = vpop.eup %3959  ;;  %v1261_v32 = vadd.f32 1.0, %v3958_v60 }
 0x27c   :  { %v1267_v61 = vadd.f32 1.0, %v3960_v25  ;;  %v3962_v7 = vpop.eup %3961 }
 0x27d   :  { %3965 = vrcp.f32 %v1261_v32  ;;  %v3964_v2 = vpop.eup %3963  ;;  %v1274_v63 = vadd.f32 1.0, %v3962_v7 }
 0x27e   :  { %3967 = vrcp.f32 %v1267_v61 }
 0x27f   :  { %3969 = vrcp.f32 %v1274_v63  ;;  %v6798_v63 = vld [vmem:[#allocation46_spill] sm:$0xff] }
 0x287   :  { %v3966_v62 = vpop.eup %3965 }
 0x288   :  { %v3968_v53 = vpop.eup %3967  ;;  %v1278_v51 = vmul.f32 %v3966_v62, %v3964_v2 }
 0x289   :  { %v1277_v0 = vmul.f32 0.0, %v3968_v53  ;;  %v1316_v1 = vpop.f32.mrb[28].mxu0  ;;  %v1357_v49 = vpop.f32.mrb[28].mxu1 }
 0x28a   :  { %v1368_v54 = vadd.f32 %v1316_v1, %v6794_v50  ;;  %v1370_v55 = vadd.f32 %v1357_v49, %v6795_v52  ;;  %v1318_v26 = vpop.f32.mrb[29].mxu0  ;;  %v1359_v28 = vpop.f32.mrb[29].mxu1 }
 0x28b   :  { %v5216_v33 = vadd.f32 %v1278_v51, %v1277_v0  ;;  %v1369_v24 = vadd.f32 %v1318_v26, %v6796_v21  ;;  %v1371_v59 = vadd.f32 %v1359_v28, %v6797_v29  ;;  %v1320_v60 = vpop.f32.mrb[30].mxu0  ;;  %v1361_v25 = vpop.f32.mrb[30].mxu1  ;;  %v6800_v28 = vld [vmem:[#allocation48_spill] sm:$0xff]  ;;  %v6801_v21 = vld [vmem:[#allocation49_spill] sm:$0xff] }
 0x28c   :  { %v3687_v32 = vmul.f32 -1.442695, %v1368_v54  ;;  %v1321_v61 = vpop.f32.mrb[31].mxu0  ;;  %v1362_v7 = vpop.f32.mrb[31].mxu1  ;;  %v6799_v54 = vld [vmem:[#allocation47_spill] sm:$0xff]  ;;  %v6804_v29 = vld [vmem:[#allocation52_spill] sm:$0xff] }
 0x28d   :  { %3971 = vtanh.f32 %v5216_v33  ;;  %v3688_v2 = vmul.f32 -1.442695, %v1369_v24  ;;  %v3689_v62 = vmul.f32 -1.442695, %v1371_v59  ;;  %v3970_v53 = vpop.eup %3969  ;;  %v6802_v24 = vld [vmem:[#allocation50_spill] sm:$0xff]  ;;  %v6805_v59 = vld [vmem:[#allocation53_spill] sm:$0xff] }
 0x28e   :  { %3973 = vpow2.f32 %v3687_v32  ;;  %v6806_v61 = vld [vmem:[#allocation54_spill] sm:$0xff]  ;;  %v6807_v7 = vld [vmem:[#allocation55_spill] sm:$0xff] }
 0x28f   :  { %3975 = vpow2.f32 %v3688_v2 }
 0x290   :  { %3977 = vpow2.f32 %v3689_v62 }
 0x291   :  { %3979 = vtanh.f32 %v1370_v55  ;;  %v6803_v55 = vld [vmem:[#allocation51_spill] sm:$0xff] }
 0x297   :  { %v3972_v1 = vpop.eup %3971 }
 0x298   :  { %v3974_v51 = vpop.eup %3973  ;;  %v1281_v0 = vmul.f32 %v3972_v1, %v3970_v53  ;;  %v6808_v1 = vld [vmem:[#allocation56_spill] sm:$0xff] }
 0x299   :  { %v3976_v49 = vpop.eup %3975  ;;  %v1375_v50 = vadd.f32 1.0, %v3974_v51  ;;  %v6809_v51 = vld [vmem:[#allocation57_spill] sm:$0xff] }
 0x29a   :  { %v1381_v52 = vadd.f32 1.0, %v3976_v49  ;;  %v1396_v26 = vpack.c.bf16 %v1281_v0, %v1281_v0  ;;  %v3978_v60 = vpop.eup %3977 }
 0x29b   :  { %3981 = vrcp.f32 %v1375_v50  ;;  %v3980_v25 = vpop.eup %3979  ;;  %v1388_v53 = vadd.f32 1.0, %v3978_v60  ;;  %v6810_v50 = vld [vmem:[#allocation58_spill] sm:$0xff] }
 0x29c   :  { %3983 = vrcp.f32 %v1381_v52  ;;  %1430 = vmatmul.mubr.bf16.vlgmr.msra.gmra.mrb[32].mxu0 %v1396_v26  ;;  %1471 = vmatmul.mubr.bf16.vlgmr.msra.gmra.mrb[32].mxu1 %v1396_v26  ;;  %v6811_v52 = vld [vmem:[#allocation59_spill] sm:$0xff]  ;;  %v6812_v26 = vld [vmem:[#allocation60_spill] sm:$0xff] }
 0x29d   :  { %1481 = vmatpush1.bf16.msra.mxu0 %v6798_v63  ;;  %1522 = vmatpush1.bf16.msra.mxu1 %v6799_v54  ;;  %3985 = vrcp.f32 %v1388_v53  ;;  %v6813_v63 = vld [vmem:[#allocation61_spill] sm:$0xff]  ;;  %v6814_v54 = vld [vmem:[#allocation62_spill] sm:$0xff] }
 0x29e   :  { %1482 = vmatprep.subr.bf16.mxu0 %v6800_v28  ;;  %1523 = vmatprep.subr.bf16.mxu1 %v6801_v21  ;;  %v6815_v28 = vld [vmem:[#allocation63_spill] sm:$0xff]  ;;  %v6816_v21 = vld [vmem:[#allocation64_spill] sm:$0xff]  ;;  %v6826_v53 = vld [vmem:[#allocation74_spill] sm:$0xff] }
 0x29f   :  { %1512 = vmatprep.mubr.bf16.mxu0 %v6703_v5  ;;  %1553 = vmatprep.mubr.bf16.mxu1 %v6703_v5 }
 0x2a1   :  { %1483 = vmatpush1.bf16.msra.mxu0 %v6802_v24  ;;  %1524 = vmatpush1.bf16.msra.mxu1 %v6803_v55  ;;  %v6818_v24 = vld [vmem:[#allocation66_spill] sm:$0xff]  ;;  %v6819_v55 = vld [vmem:[#allocation67_spill] sm:$0xff] }
 0x2a2   :  { %1484 = vmatprep.subr.bf16.mxu0 %v6804_v29  ;;  %1525 = vmatprep.subr.bf16.mxu1 %v6805_v59  ;;  %v6820_v29 = vld [vmem:[#allocation68_spill] sm:$0xff]  ;;  %v6821_v59 = vld [vmem:[#allocation69_spill] sm:$0xff] }
 0x2a5   :  { %v3982_v32 = vpop.eup %3981  ;;  %1485 = vmatpush1.bf16.msra.mxu0 %v6806_v61  ;;  %1526 = vmatpush1.bf16.msra.mxu1 %v6807_v7  ;;  %v6823_v61 = vld [vmem:[#allocation71_spill] sm:$0xff]  ;;  %v6824_v7 = vld [vmem:[#allocation72_spill] sm:$0xff] }
 0x2a6   :  { %v3984_v2 = vpop.eup %3983  ;;  %v1392_v62 = vmul.f32 %v3982_v32, %v3980_v25  ;;  %1486 = vmatprep.subr.bf16.mxu0 %v6808_v1  ;;  %1527 = vmatprep.subr.bf16.mxu1 %v6809_v51  ;;  %v6822_v32 = vld [vmem:[#allocation70_spill] sm:$0xff]  ;;  %v6827_v1 = vld [vmem:[#allocation75_spill] sm:$0xff] }
 0x2a7   :  { %v1391_v0 = vmul.f32 %v3984_v2, %v5123_v3  ;;  %v6817_v3 = vld [vmem:[#allocation65_spill] sm:$0xff]  ;;  %v3986_v60 = vpop.eup %3985 }
 0x2a8   :  { %v6825_v2 = vld [vmem:[#allocation73_spill] sm:$0xff] }
 0x2a9   :  { %v5236_v49 = vadd.f32 %v1392_v62, %v1391_v0  ;;  %1487 = vmatpush1.bf16.msra.mxu0 %v6810_v50  ;;  %1528 = vmatpush1.bf16.msra.mxu1 %v6811_v52  ;;  %v5259_v0 = vld [vmem:[#allocation8 + $0x4] ss:$16 sps:$4 sm:$0xff]   ;;  %v5262_v50 = vld [vmem:[#allocation8 + $0xc] ss:$16 sps:$4 sm:$0xff]   ;;  %v5267_v52 = vld [vmem:[#allocation8] ss:$16 sps:$4 sm:$0xff]  }
 0x2aa   :  { %1488 = vmatprep.subr.bf16.mxu0 %v6812_v26  ;;  %1529 = vmatprep.subr.bf16.mxu1 %v6813_v63  ;;  %v5270_v26 = vld [vmem:[#allocation8 + $0x8] ss:$16 sps:$4 sm:$0xff]   ;;  %v5273_v63 = vld [vmem:[#allocation8 + $0x24] ss:$16 sps:$4 sm:$0xff]  }
 0x2ab   :  { %3987 = vtanh.f32 %v5236_v49 }
 0x2ad   :  { %1489 = vmatpush1.bf16.msra.mxu0 %v6814_v54  ;;  %1530 = vmatpush1.bf16.msra.mxu1 %v6815_v28  ;;  %v5276_v54 = vld [vmem:[#allocation8 + $0x2c] ss:$16 sps:$4 sm:$0xff]   ;;  %v5281_v28 = vld [vmem:[#allocation8 + $0x20] ss:$16 sps:$4 sm:$0xff]  }
 0x2ae   :  { %1490 = vmatprep.subr.bf16.mxu0 %v6816_v21  ;;  %1531 = vmatprep.subr.bf16.mxu1 %v6817_v3  ;;  %6828 = vst [vmem:[#allocation20_spill] sm:$0xff] %v5276_v54  ;;  %6829 = vst [vmem:[#allocation21_spill] sm:$0xff] %v5281_v28  ;;  %v5284_v21 = vld [vmem:[#allocation8 + $0x28] ss:$16 sps:$4 sm:$0xff]   ;;  %v5287_v3 = vld [vmem:[#allocation8 + $0x44] ss:$16 sps:$4 sm:$0xff]  }
 0x2af   :  { %6830 = vst [vmem:[#allocation22_spill] sm:$0xff] %v5284_v21  ;;  %6831 = vst [vmem:[#allocation23_spill] sm:$0xff] %v5287_v3 }
 0x2b1   :  { %1491 = vmatpush1.bf16.msra.mxu0 %v6818_v24  ;;  %1532 = vmatpush1.bf16.msra.mxu1 %v6819_v55  ;;  %v5290_v24 = vld [vmem:[#allocation8 + $0x4c] ss:$16 sps:$4 sm:$0xff]   ;;  %v5293_v55 = vld [vmem:[#allocation8 + $0x40] ss:$16 sps:$4 sm:$0xff]  }
 0x2b2   :  { %1492 = vmatprep.subr.bf16.mxu0 %v6820_v29  ;;  %1533 = vmatprep.subr.bf16.mxu1 %v6821_v59  ;;  %6832 = vst [vmem:[#allocation24_spill] sm:$0xff] %v5290_v24  ;;  %6833 = vst [vmem:[#allocation25_spill] sm:$0xff] %v5293_v55  ;;  %v5296_v29 = vld [vmem:[#allocation8 + $0x48] ss:$16 sps:$4 sm:$0xff]   ;;  %v5299_v59 = vld [vmem:[#allocation8 + $0x64] ss:$16 sps:$4 sm:$0xff]  }
 0x2b3   :  { %6834 = vst [vmem:[#allocation26_spill] sm:$0xff] %v5296_v29  ;;  %6835 = vst [vmem:[#allocation27_spill] sm:$0xff] %v5299_v59 }
 0x2b5   :  { %v3988_v25 = vpop.eup %3987  ;;  %1493 = vmatpush1.bf16.msra.mxu0 %v6822_v32  ;;  %1534 = vmatpush1.bf16.msra.mxu1 %v6823_v61  ;;  %v5308_v32 = vld [vmem:[#allocation8 + $0x68] ss:$16 sps:$4 sm:$0xff]   ;;  %v5311_v61 = vld [vmem:[#allocation8 + $0x84] ss:$16 sps:$4 sm:$0xff]  }
 0x2b6   :  { %1494 = vmatprep.subr.bf16.mxu0 %v6824_v7  ;;  %1535 = vmatprep.subr.bf16.mxu1 %v6825_v2  ;;  %v1395_v62 = vmul.f32 %v3988_v25, %v3986_v60  ;;  %v5302_v60 = vld [vmem:[#allocation8 + $0x6c] ss:$16 sps:$4 sm:$0xff]   ;;  %v5305_v25 = vld [vmem:[#allocation8 + $0x60] ss:$16 sps:$4 sm:$0xff]   ;;  %6838 = vst [vmem:[#allocation30_spill] sm:$0xff] %v5308_v32  ;;  %6839 = vst [vmem:[#allocation31_spill] sm:$0xff] %v5311_v61 }
 0x2b7   :  { %6836 = vst [vmem:[#allocation28_spill] sm:$0xff] %v5302_v60  ;;  %6837 = vst [vmem:[#allocation29_spill] sm:$0xff] %v5305_v25  ;;  %v5314_v7 = vld [vmem:[#allocation8 + $0x8c] ss:$16 sps:$4 sm:$0xff]   ;;  %v5317_v2 = vld [vmem:[#allocation8 + $0x80] ss:$16 sps:$4 sm:$0xff]  }
 0x2b8   :  { %v5257_v51 = vpack.c.bf16 %v1395_v62, %v1395_v62  ;;  %6840 = vst [vmem:[#allocation32_spill] sm:$0xff] %v5314_v7  ;;  %6841 = vst [vmem:[#allocation33_spill] sm:$0xff] %v5317_v2  ;;  %v5320_v62 = vld [vmem:[#allocation8 + $0x88] ss:$16 sps:$4 sm:$0xff]  }
 0x2b9   :  { %1495 = vmatpush1.bf16.msra.mxu0 %v6826_v53  ;;  %1536 = vmatpush1.bf16.msra.mxu1 %v6827_v1  ;;  %6842 = vst [vmem:[#allocation34_spill] sm:$0xff] %v5320_v62  ;;  %v5323_v53 = vld [vmem:[#allocation8 + $0xa4] ss:$16 sps:$4 sm:$0xff]   ;;  %v5326_v1 = vld [vmem:[#allocation8 + $0xac] ss:$16 sps:$4 sm:$0xff]  }
 0x2ba   :  { %1590 = vmatprep.subr.bf16.mxu0 %v5259_v0  ;;  %1631 = vmatprep.subr.bf16.mxu1 %v5262_v50  ;;  %6843 = vst [vmem:[#allocation35_spill] sm:$0xff] %v5323_v53  ;;  %6844 = vst [vmem:[#allocation36_spill] sm:$0xff] %v5326_v1 }
 0x2bc   :  { %1513 = vmatmul.mubr.bf16.vlgmr.msra.gmra.mrb[36].mxu0 %v5257_v51  ;;  %1554 = vmatmul.mubr.bf16.vlgmr.msra.gmra.mrb[36].mxu1 %v5257_v51 }
 0x2bd   :  { %1591 = vmatpush1.bf16.msra.mxu0 %v5267_v52  ;;  %1632 = vmatpush1.bf16.msra.mxu1 %v5270_v26 }
 0x2be   :  { %1592 = vmatprep.subr.bf16.mxu0 %v5273_v63  ;;  %1633 = vmatprep.subr.bf16.mxu1 %v5276_v54 }
 0x2bf   :  { %1622 = vmatprep.mubr.bf16.mxu0 %v6703_v5  ;;  %1663 = vmatprep.mubr.bf16.mxu1 %v6703_v5 }
 0x2c1   :  { %1593 = vmatpush1.bf16.msra.mxu0 %v5281_v28  ;;  %1634 = vmatpush1.bf16.msra.mxu1 %v5284_v21 }
 0x2c2   :  { %1594 = vmatprep.subr.bf16.mxu0 %v5287_v3  ;;  %1635 = vmatprep.subr.bf16.mxu1 %v5290_v24 }
 0x2c5   :  { %1595 = vmatpush1.bf16.msra.mxu0 %v5293_v55  ;;  %1636 = vmatpush1.bf16.msra.mxu1 %v5296_v29 }
 0x2c6   :  { %1596 = vmatprep.subr.bf16.mxu0 %v5299_v59  ;;  %1637 = vmatprep.subr.bf16.mxu1 %v5302_v60 }
 0x2c9   :  { %1597 = vmatpush1.bf16.msra.mxu0 %v5305_v25  ;;  %1638 = vmatpush1.bf16.msra.mxu1 %v5308_v32 }
 0x2ca   :  { %1598 = vmatprep.subr.bf16.mxu0 %v5311_v61  ;;  %1639 = vmatprep.subr.bf16.mxu1 %v5314_v7  ;;  %v5329_v61 = vld [vmem:[#allocation8 + $0xa0] ss:$16 sps:$4 sm:$0xff]   ;;  %v5332_v7 = vld [vmem:[#allocation8 + $0xa8] ss:$16 sps:$4 sm:$0xff]  }
 0x2cb   :  { %6845 = vst [vmem:[#allocation37_spill] sm:$0xff] %v5329_v61  ;;  %6846 = vst [vmem:[#allocation38_spill] sm:$0xff] %v5332_v7 }
 0x2cd   :  { %1599 = vmatpush1.bf16.msra.mxu0 %v5317_v2  ;;  %1640 = vmatpush1.bf16.msra.mxu1 %v5320_v62  ;;  %v5335_v2 = vld [vmem:[#allocation8 + $0xc4] ss:$16 sps:$4 sm:$0xff]   ;;  %v5338_v62 = vld [vmem:[#allocation8 + $0xcc] ss:$16 sps:$4 sm:$0xff]  }
 0x2ce   :  { %1600 = vmatprep.subr.bf16.mxu0 %v5323_v53  ;;  %1641 = vmatprep.subr.bf16.mxu1 %v5326_v1  ;;  %6847 = vst [vmem:[#allocation39_spill] sm:$0xff] %v5335_v2  ;;  %6848 = vst [vmem:[#allocation40_spill] sm:$0xff] %v5338_v62  ;;  %v5341_v53 = vld [vmem:[#allocation8 + $0xc0] ss:$16 sps:$4 sm:$0xff]   ;;  %v5344_v1 = vld [vmem:[#allocation8 + $0xc8] ss:$16 sps:$4 sm:$0xff]  }
 0x2cf   :  { %6849 = vst [vmem:[#allocation41_spill] sm:$0xff] %v5341_v53  ;;  %6850 = vst [vmem:[#allocation42_spill] sm:$0xff] %v5344_v1 }
 0x2d1   :  { %1601 = vmatpush1.bf16.msra.mxu0 %v5329_v61  ;;  %1642 = vmatpush1.bf16.msra.mxu1 %v5332_v7  ;;  %v5347_v61 = vld [vmem:[#allocation8 + $0xe4] ss:$16 sps:$4 sm:$0xff]   ;;  %v5350_v7 = vld [vmem:[#allocation8 + $0xec] ss:$16 sps:$4 sm:$0xff]  }
 0x2d2   :  { %1602 = vmatprep.subr.bf16.mxu0 %v5335_v2  ;;  %1643 = vmatprep.subr.bf16.mxu1 %v5338_v62  ;;  %6851 = vst [vmem:[#allocation43_spill] sm:$0xff] %v5347_v61  ;;  %6852 = vst [vmem:[#allocation44_spill] sm:$0xff] %v5350_v7  ;;  %v5353_v2 = vld [vmem:[#allocation8 + $0xe0] ss:$16 sps:$4 sm:$0xff]   ;;  %v5356_v62 = vld [vmem:[#allocation8 + $0xe8] ss:$16 sps:$4 sm:$0xff]  }
 0x2d3   :  { %6853 = vst [vmem:[#allocation45_spill] sm:$0xff] %v5353_v2  ;;  %6854 = vst [vmem:[#allocation76_spill] sm:$0xff] %v5356_v62 }
 0x2d5   :  { %1603 = vmatpush1.bf16.msra.mxu0 %v5341_v53  ;;  %1644 = vmatpush1.bf16.msra.mxu1 %v5344_v1 }
 0x2d6   :  { %1604 = vmatprep.subr.bf16.mxu0 %v5347_v61  ;;  %1645 = vmatprep.subr.bf16.mxu1 %v5350_v7 }
 0x2d9   :  { %1605 = vmatpush1.bf16.msra.mxu0 %v5353_v2  ;;  %1646 = vmatpush1.bf16.msra.mxu1 %v5356_v62 }
 0x2da   :  { %1705 = vmatprep.subr.bf16.mxu0 %v4829_v41  ;;  %1746 = vmatprep.subr.bf16.mxu1 %v4831_v42 }
 0x2dc   :  { %1623 = vmatmul.mubr.bf16.vlgmr.msra.gmra.mrb[40].mxu0 %v5257_v51  ;;  %1664 = vmatmul.mubr.bf16.vlgmr.msra.gmra.mrb[40].mxu1 %v5257_v51 }
 0x2dd   :  { %1706 = vmatpush1.bf16.msra.mxu0 %v4833_v43  ;;  %1747 = vmatpush1.bf16.msra.mxu1 %v4836_v44 }
 0x2de   :  { %1707 = vmatprep.subr.bf16.mxu0 %v4841_v45  ;;  %1748 = vmatprep.subr.bf16.mxu1 %v4843_v46 }
 0x2df   :  { %1737 = vmatprep.mubr.bf16.mxu0 %v6703_v5  ;;  %1778 = vmatprep.mubr.bf16.mxu1 %v6703_v5 }
 0x2e1   :  { %1708 = vmatpush1.bf16.msra.mxu0 %v4845_v47  ;;  %1749 = vmatpush1.bf16.msra.mxu1 %v4848_v48 }
 0x2e2   :  { %1709 = vmatprep.subr.bf16.mxu0 %v6763_v8  ;;  %1750 = vmatprep.subr.bf16.mxu1 %v6764_v9 }
 0x2e5   :  { %1710 = vmatpush1.bf16.msra.mxu0 %v6765_v10  ;;  %1751 = vmatpush1.bf16.msra.mxu1 %v6766_v11 }
 0x2e6   :  { %1711 = vmatprep.subr.bf16.mxu0 %v6767_v12  ;;  %1752 = vmatprep.subr.bf16.mxu1 %v6768_v13 }
 0x2e9   :  { %1712 = vmatpush1.bf16.msra.mxu0 %v6769_v15  ;;  %1753 = vmatpush1.bf16.msra.mxu1 %v6770_v16 }
 0x2ea   :  { %1713 = vmatprep.subr.bf16.mxu0 %v6771_v17  ;;  %1754 = vmatprep.subr.bf16.mxu1 %v6772_v18 }
 0x2ed   :  { %1714 = vmatpush1.bf16.msra.mxu0 %v6773_v19  ;;  %1755 = vmatpush1.bf16.msra.mxu1 %v6774_v20 }
 0x2ee   :  { %1715 = vmatprep.subr.bf16.mxu0 %v6775_v22  ;;  %1756 = vmatprep.subr.bf16.mxu1 %v6776_v23 }
 0x2f1   :  { %1716 = vmatpush1.bf16.msra.mxu0 %v6777_v30  ;;  %1757 = vmatpush1.bf16.msra.mxu1 %v6778_v31 }
 0x2f2   :  { %1717 = vmatprep.subr.bf16.mxu0 %v6779_v34  ;;  %1758 = vmatprep.subr.bf16.mxu1 %v6780_v35 }
 0x2f5   :  { %1718 = vmatpush1.bf16.msra.mxu0 %v6781_v37  ;;  %1759 = vmatpush1.bf16.msra.mxu1 %v6782_v38 }
 0x2f6   :  { %1719 = vmatprep.subr.bf16.mxu0 %v6783_v39  ;;  %1760 = vmatprep.subr.bf16.mxu1 %v6784_v40 }
 0x2f9   :  { %1720 = vmatpush1.bf16.msra.mxu0 %v6785_v56  ;;  %1761 = vmatpush1.bf16.msra.mxu1 %v6786_v4 }
 0x2fa   :  { %1788 = vmatprep.subr.bf16.mxu0 %v6787_v58  ;;  %1829 = vmatprep.subr.bf16.mxu1 %v6788_v57 }
 0x36f   :  { %v1431_v41 = vpop.f32.mrb[32].mxu0  ;;  %v1472_v42 = vpop.f32.mrb[32].mxu1 }
 0x370   :  { %v1433_v43 = vpop.f32.mrb[33].mxu0  ;;  %v1474_v44 = vpop.f32.mrb[33].mxu1 }
 0x371   :  { %v1435_v45 = vpop.f32.mrb[34].mxu0  ;;  %v1476_v46 = vpop.f32.mrb[34].mxu1 }
 0x372   :  { %v1436_v47 = vpop.f32.mrb[35].mxu0  ;;  %v1477_v48 = vpop.f32.mrb[35].mxu1  ;;  %v6855_v46 = vld [vmem:[#allocation81_spill] sm:$0xff] }
 0x373   :  { %v6856_v48 = vld [vmem:[#allocation82_spill] sm:$0xff] }
 0x38f   :  { %v1514_v8 = vpop.f32.mrb[36].mxu0  ;;  %v1555_v9 = vpop.f32.mrb[36].mxu1 }
 0x390   :  { %v1515_v10 = vadd.f32 %v1514_v8, %v1431_v41  ;;  %v1556_v11 = vadd.f32 %v1555_v9, %v1472_v42  ;;  %v1516_v12 = vpop.f32.mrb[37].mxu0  ;;  %v1557_v13 = vpop.f32.mrb[37].mxu1 }
 0x391   :  { %v1517_v15 = vadd.f32 %v1516_v12, %v1433_v43  ;;  %v1558_v16 = vadd.f32 %v1557_v13, %v1474_v44  ;;  %v1518_v17 = vpop.f32.mrb[38].mxu0  ;;  %v1559_v18 = vpop.f32.mrb[38].mxu1  ;;  %v6857_v12 = vld [vmem:[#allocation83_spill] sm:$0xff] }
 0x392   :  { %v1562_v19 = vadd.f32 %v1515_v10, %v5196_v14  ;;  %v1519_v20 = vpop.f32.mrb[39].mxu0  ;;  %v1560_v22 = vpop.f32.mrb[39].mxu1  ;;  %v1564_v37 = vadd.f32 %v1556_v11, %v5211_v27 }
 0x393   :  { %v1563_v23 = vadd.f32 %v1517_v15, %v5200_v6  ;;  %v1565_v34 = vadd.f32 %v1558_v16, %v5206_v36  ;;  %v6858_v15 = vld [vmem:[#allocation84_spill] sm:$0xff] }
 0x394   :  { %v3690_v30 = vmul.f32 -1.442695, %v1562_v19 }
 0x395   :  { %v3691_v31 = vmul.f32 -1.442695, %v1563_v23  ;;  %v3692_v35 = vmul.f32 -1.442695, %v1565_v34 }
 0x396   :  { %3989 = vpow2.f32 %v3690_v30 }
 0x397   :  { %3991 = vpow2.f32 %v3691_v31 }
 0x398   :  { %3993 = vpow2.f32 %v3692_v35 }
 0x399   :  { %3995 = vtanh.f32 %v1564_v37 }
 0x3a0   :  { %v3990_v38 = vpop.eup %3989 }
 0x3a1   :  { %v3992_v39 = vpop.eup %3991  ;;  %v1569_v40 = vadd.f32 1.0, %v3990_v38 }
 0x3a2   :  { %v1575_v56 = vadd.f32 1.0, %v3992_v39  ;;  %v3994_v4 = vpop.eup %3993 }
 0x3a3   :  { %3997 = vrcp.f32 %v1569_v40  ;;  %v3996_v58 = vpop.eup %3995  ;;  %v1582_v42 = vadd.f32 1.0, %v3994_v4  ;;  %v5412_v4 = vld [vmem:[#allocation9 + $0x8] ss:$16 sps:$4 sm:$0xff]  }
 0x3a4   :  { %3999 = vrcp.f32 %v1575_v56  ;;  %v5409_v56 = vld [vmem:[#allocation9] ss:$16 sps:$4 sm:$0xff]  }
 0x3a5   :  { %4001 = vrcp.f32 %v1582_v42  ;;  %v5429_v42 = vld [vmem:[#allocation9 + $0x44] ss:$16 sps:$4 sm:$0xff]  }
 0x3ad   :  { %v3998_v57 = vpop.eup %3997 }
 0x3ae   :  { %v4000_v51 = vpop.eup %3999  ;;  %v1586_v41 = vmul.f32 %v3998_v57, %v3996_v58  ;;  %v5415_v58 = vld [vmem:[#allocation9 + $0x24] ss:$16 sps:$4 sm:$0xff]   ;;  %v5418_v57 = vld [vmem:[#allocation9 + $0x2c] ss:$16 sps:$4 sm:$0xff]  }
 0x3af   :  { %v1585_v43 = vmul.f32 %v4000_v51, %v5216_v33  ;;  %v1624_v44 = vpop.f32.mrb[40].mxu0  ;;  %v1665_v45 = vpop.f32.mrb[40].mxu1  ;;  %v5423_v51 = vld [vmem:[#allocation9 + $0x20] ss:$16 sps:$4 sm:$0xff]  }
 0x3b0   :  { %v1676_v47 = vadd.f32 %v1624_v44, %v6855_v46  ;;  %v1678_v8 = vadd.f32 %v1665_v45, %v6856_v48  ;;  %v1626_v9 = vpop.f32.mrb[41].mxu0  ;;  %v1667_v10 = vpop.f32.mrb[41].mxu1  ;;  %v5438_v48 = vld [vmem:[#allocation9 + $0x48] ss:$16 sps:$4 sm:$0xff]  }
 0x3b1   :  { %v5404_v11 = vadd.f32 %v1586_v41, %v1585_v43  ;;  %v1677_v13 = vadd.f32 %v1626_v9, %v6857_v12  ;;  %v1679_v16 = vadd.f32 %v1667_v10, %v6858_v15  ;;  %v1628_v17 = vpop.f32.mrb[42].mxu0  ;;  %v1669_v18 = vpop.f32.mrb[42].mxu1  ;;  %v5426_v41 = vld [vmem:[#allocation9 + $0x28] ss:$16 sps:$4 sm:$0xff]   ;;  %v5432_v43 = vld [vmem:[#allocation9 + $0x4c] ss:$16 sps:$4 sm:$0xff]  }
 0x3b2   :  { %v3693_v19 = vmul.f32 -1.442695, %v1676_v47  ;;  %v1629_v20 = vpop.f32.mrb[43].mxu0  ;;  %v1670_v33 = vpop.f32.mrb[43].mxu1  ;;  %v5435_v47 = vld [vmem:[#allocation9 + $0x40] ss:$16 sps:$4 sm:$0xff]  }
 0x3b3   :  { %v3694_v22 = vmul.f32 -1.442695, %v1677_v13  ;;  %4003 = vtanh.f32 %v5404_v11  ;;  %v3695_v23 = vmul.f32 -1.442695, %v1679_v16  ;;  %v4002_v30 = vpop.eup %4001  ;;  %v5441_v12 = vld [vmem:[#allocation9 + $0x64] ss:$16 sps:$4 sm:$0xff]  }
 0x3b4   :  { %4005 = vpow2.f32 %v3693_v19  ;;  %v5444_v13 = vld [vmem:[#allocation9 + $0x6c] ss:$16 sps:$4 sm:$0xff]   ;;  %v5450_v17 = vld [vmem:[#allocation9 + $0x60] ss:$16 sps:$4 sm:$0xff]   ;;  %v5453_v18 = vld [vmem:[#allocation9 + $0x68] ss:$16 sps:$4 sm:$0xff]  }
 0x3b5   :  { %4007 = vpow2.f32 %v3694_v22  ;;  %v5456_v19 = vld [vmem:[#allocation9 + $0x84] ss:$16 sps:$4 sm:$0xff]   ;;  %v5459_v20 = vld [vmem:[#allocation9 + $0x8c] ss:$16 sps:$4 sm:$0xff]   ;;  %v5466_v33 = vld [vmem:[#allocation9 + $0x88] ss:$16 sps:$4 sm:$0xff]  }
 0x3b6   :  { %4009 = vpow2.f32 %v3695_v23  ;;  %v5469_v22 = vld [vmem:[#allocation9 + $0xa4] ss:$16 sps:$4 sm:$0xff]   ;;  %v5472_v23 = vld [vmem:[#allocation9 + $0xac] ss:$16 sps:$4 sm:$0xff]  }
 0x3b7   :  { %4011 = vtanh.f32 %v1678_v8 }
 0x3bd   :  { %v4004_v31 = vpop.eup %4003 }
 0x3be   :  { %v4006_v34 = vpop.eup %4005  ;;  %v1589_v35 = vmul.f32 %v4004_v31, %v4002_v30  ;;  %v5475_v30 = vld [vmem:[#allocation9 + $0xa0] ss:$16 sps:$4 sm:$0xff]   ;;  %v5478_v31 = vld [vmem:[#allocation9 + $0xa8] ss:$16 sps:$4 sm:$0xff]  }
 0x3bf   :  { %v4008_v37 = vpop.eup %4007  ;;  %v1683_v38 = vadd.f32 1.0, %v4006_v34  ;;  %v5481_v34 = vld [vmem:[#allocation9 + $0xc4] ss:$16 sps:$4 sm:$0xff]  }
 0x3c0   :  { %v1689_v39 = vadd.f32 1.0, %v4008_v37  ;;  %v1704_v40 = vpack.c.bf16 %v1589_v35, %v1589_v35  ;;  %v4010_v44 = vpop.eup %4009  ;;  %v5484_v35 = vld [vmem:[#allocation9 + $0xcc] ss:$16 sps:$4 sm:$0xff]  }
 0x3c1   :  { %4013 = vrcp.f32 %v1683_v38  ;;  %v4012_v45 = vpop.eup %4011  ;;  %v1696_v10 = vadd.f32 1.0, %v4010_v44  ;;  %v5493_v44 = vld [vmem:[#allocation9 + $0xe4] ss:$16 sps:$4 sm:$0xff]  }
 0x3c2   :  { %4015 = vrcp.f32 %v1689_v39  ;;  %1738 = vmatmul.mubr.bf16.vlgmr.msra.gmra.mrb[44].mxu0 %v1704_v40  ;;  %1779 = vmatmul.mubr.bf16.vlgmr.msra.gmra.mrb[44].mxu1 %v1704_v40  ;;  %v5487_v39 = vld [vmem:[#allocation9 + $0xc0] ss:$16 sps:$4 sm:$0xff]   ;;  %v5490_v40 = vld [vmem:[#allocation9 + $0xc8] ss:$16 sps:$4 sm:$0xff]  }
 0x3c3   :  { %1789 = vmatpush1.bf16.msra.mxu0 %v5409_v56  ;;  %1830 = vmatpush1.bf16.msra.mxu1 %v5412_v4  ;;  %4017 = vrcp.f32 %v1696_v10  ;;  %v5502_v10 = vld [vmem:[#allocation9 + $0xe8] ss:$16 sps:$4 sm:$0xff]  }
 0x3c4   :  { %1790 = vmatprep.subr.bf16.mxu0 %v5415_v58  ;;  %1831 = vmatprep.subr.bf16.mxu1 %v5418_v57 }
 0x3c5   :  { %1820 = vmatprep.mubr.bf16.mxu0 %v6703_v5  ;;  %1861 = vmatprep.mubr.bf16.mxu1 %v6703_v5 }
 0x3c7   :  { %1791 = vmatpush1.bf16.msra.mxu0 %v5423_v51  ;;  %1832 = vmatpush1.bf16.msra.mxu1 %v5426_v41 }
 0x3c8   :  { %1792 = vmatprep.subr.bf16.mxu0 %v5429_v42  ;;  %1833 = vmatprep.subr.bf16.mxu1 %v5432_v43 }
 0x3cb   :  { %v4014_v46 = vpop.eup %4013  ;;  %1793 = vmatpush1.bf16.msra.mxu0 %v5435_v47  ;;  %1834 = vmatpush1.bf16.msra.mxu1 %v5438_v48 }
 0x3cc   :  { %v4016_v8 = vpop.eup %4015  ;;  %v1700_v9 = vmul.f32 %v4014_v46, %v4012_v45  ;;  %1794 = vmatprep.subr.bf16.mxu0 %v5441_v12  ;;  %1835 = vmatprep.subr.bf16.mxu1 %v5444_v13  ;;  %v5496_v45 = vld [vmem:[#allocation9 + $0xec] ss:$16 sps:$4 sm:$0xff]  }
 0x3cd   :  { %v1699_v15 = vmul.f32 %v4016_v8, %v5236_v49  ;;  %v5463_v49 = vld [vmem:[#allocation9 + $0x80] ss:$16 sps:$4 sm:$0xff]   ;;  %v4018_v37 = vpop.eup %4017 }
 0x3cf   :  { %v5448_v16 = vadd.f32 %v1700_v9, %v1699_v15  ;;  %1795 = vmatpush1.bf16.msra.mxu0 %v5450_v17  ;;  %1836 = vmatpush1.bf16.msra.mxu1 %v5453_v18  ;;  %v5499_v9 = vld [vmem:[#allocation9 + $0xe0] ss:$16 sps:$4 sm:$0xff]   ;;  %v6859_v15 = vld [vmem:[#allocation31_spill] sm:$0xff] }
 0x3d0   :  { %1796 = vmatprep.subr.bf16.mxu0 %v5456_v19  ;;  %1837 = vmatprep.subr.bf16.mxu1 %v5459_v20 }
 0x3d1   :  { %4019 = vtanh.f32 %v5448_v16 }
 0x3d3   :  { %1797 = vmatpush1.bf16.msra.mxu0 %v5463_v49  ;;  %1838 = vmatpush1.bf16.msra.mxu1 %v5466_v33 }
 0x3d4   :  { %1798 = vmatprep.subr.bf16.mxu0 %v5469_v22  ;;  %1839 = vmatprep.subr.bf16.mxu1 %v5472_v23 }
 0x3d7   :  { %1799 = vmatpush1.bf16.msra.mxu0 %v5475_v30  ;;  %1840 = vmatpush1.bf16.msra.mxu1 %v5478_v31 }
 0x3d8   :  { %1800 = vmatprep.subr.bf16.mxu0 %v5481_v34  ;;  %1841 = vmatprep.subr.bf16.mxu1 %v5484_v35 }
 0x3db   :  { %v4020_v38 = vpop.eup %4019  ;;  %1801 = vmatpush1.bf16.msra.mxu0 %v5487_v39  ;;  %1842 = vmatpush1.bf16.msra.mxu1 %v5490_v40 }
 0x3dc   :  { %1802 = vmatprep.subr.bf16.mxu0 %v5493_v44  ;;  %1843 = vmatprep.subr.bf16.mxu1 %v5496_v45  ;;  %v1703_v46 = vmul.f32 %v4020_v38, %v4018_v37  ;;  %v6860_v37 = vld [vmem:[#allocation32_spill] sm:$0xff]  ;;  %v6861_v38 = vld [vmem:[#allocation33_spill] sm:$0xff] }
 0x3de   :  { %v1787_v8 = vpack.c.bf16 %v1703_v46, %v1703_v46  ;;  %v6862_v46 = vld [vmem:[#allocation34_spill] sm:$0xff] }
 0x3df   :  { %1803 = vmatpush1.bf16.msra.mxu0 %v5499_v9  ;;  %1844 = vmatpush1.bf16.msra.mxu1 %v5502_v10 }
 0x3e0   :  { %1898 = vmatprep.subr.bf16.mxu0 %v5259_v0  ;;  %1939 = vmatprep.subr.bf16.mxu1 %v5262_v50 }
 0x3e2   :  { %1821 = vmatmul.mubr.bf16.vlgmr.msra.gmra.mrb[48].mxu0 %v1787_v8  ;;  %1862 = vmatmul.mubr.bf16.vlgmr.msra.gmra.mrb[48].mxu1 %v1787_v8 }
 0x3e3   :  { %1899 = vmatpush1.bf16.msra.mxu0 %v5267_v52  ;;  %1940 = vmatpush1.bf16.msra.mxu1 %v5270_v26 }
 0x3e4   :  { %1900 = vmatprep.subr.bf16.mxu0 %v5273_v63  ;;  %1941 = vmatprep.subr.bf16.mxu1 %v5276_v54 }
 0x3e5   :  { %1930 = vmatprep.mubr.bf16.mxu0 %v6703_v5  ;;  %1971 = vmatprep.mubr.bf16.mxu1 %v6703_v5 }
 0x3e7   :  { %1901 = vmatpush1.bf16.msra.mxu0 %v5281_v28  ;;  %1942 = vmatpush1.bf16.msra.mxu1 %v5284_v21 }
 0x3e8   :  { %1902 = vmatprep.subr.bf16.mxu0 %v5287_v3  ;;  %1943 = vmatprep.subr.bf16.mxu1 %v5290_v24  ;;  %v6863_v24 = vld [vmem:[#allocation35_spill] sm:$0xff] }
 0x3eb   :  { %1903 = vmatpush1.bf16.msra.mxu0 %v5293_v55  ;;  %1944 = vmatpush1.bf16.msra.mxu1 %v5296_v29  ;;  %v6864_v55 = vld [vmem:[#allocation36_spill] sm:$0xff]  ;;  %v6865_v29 = vld [vmem:[#allocation37_spill] sm:$0xff] }
 0x3ec   :  { %1904 = vmatprep.subr.bf16.mxu0 %v5299_v59  ;;  %1945 = vmatprep.subr.bf16.mxu1 %v5302_v60  ;;  %v6866_v59 = vld [vmem:[#allocation38_spill] sm:$0xff]  ;;  %v6867_v60 = vld [vmem:[#allocation39_spill] sm:$0xff] }
 0x3ef   :  { %1905 = vmatpush1.bf16.msra.mxu0 %v5305_v25  ;;  %1946 = vmatpush1.bf16.msra.mxu1 %v5308_v32  ;;  %v6868_v25 = vld [vmem:[#allocation40_spill] sm:$0xff] }
 0x3f0   :  { %1906 = vmatprep.subr.bf16.mxu0 %v6859_v15  ;;  %1947 = vmatprep.subr.bf16.mxu1 %v6860_v37 }
 0x3f3   :  { %1907 = vmatpush1.bf16.msra.mxu0 %v6861_v38  ;;  %1948 = vmatpush1.bf16.msra.mxu1 %v6862_v46 }
 0x3f4   :  { %1908 = vmatprep.subr.bf16.mxu0 %v6863_v24  ;;  %1949 = vmatprep.subr.bf16.mxu1 %v6864_v55  ;;  %v5539_v55 = vld [vmem:[#allocation11 + $0x4] ss:$16 sps:$4 sm:$0xff]  }
 0x3f5   :  { %6869 = vst [vmem:[#allocation77_spill] sm:$0xff] %v5539_v55 }
 0x3f7   :  { %1909 = vmatpush1.bf16.msra.mxu0 %v6865_v29  ;;  %1950 = vmatpush1.bf16.msra.mxu1 %v6866_v59  ;;  %v5542_v59 = vld [vmem:[#allocation11 + $0xc] ss:$16 sps:$4 sm:$0xff]  }
 0x3f8   :  { %1910 = vmatprep.subr.bf16.mxu0 %v6867_v60  ;;  %1951 = vmatprep.subr.bf16.mxu1 %v6868_v25  ;;  %6870 = vst [vmem:[#allocation78_spill] sm:$0xff] %v5542_v59 }
 0x3fb   :  { %1911 = vmatpush1.bf16.msra.mxu0 %v5341_v53  ;;  %1952 = vmatpush1.bf16.msra.mxu1 %v5344_v1  ;;  %v5545_v53 = vld [vmem:[#allocation11] ss:$16 sps:$4 sm:$0xff]  }
 0x3fc   :  { %1912 = vmatprep.subr.bf16.mxu0 %v5347_v61  ;;  %1953 = vmatprep.subr.bf16.mxu1 %v5350_v7  ;;  %6871 = vst [vmem:[#allocation79_spill] sm:$0xff] %v5545_v53  ;;  %v5548_v61 = vld [vmem:[#allocation11 + $0x8] ss:$16 sps:$4 sm:$0xff]  }
 0x3fd   :  { %6872 = vst [vmem:[#allocation80_spill] sm:$0xff] %v5548_v61 }
 0x3ff   :  { %1913 = vmatpush1.bf16.msra.mxu0 %v5353_v2  ;;  %1954 = vmatpush1.bf16.msra.mxu1 %v5356_v62  ;;  %v5551_v2 = vld [vmem:[#allocation11 + $0x24] ss:$16 sps:$4 sm:$0xff]   ;;  %v5554_v62 = vld [vmem:[#allocation11 + $0x2c] ss:$16 sps:$4 sm:$0xff]  }
 0x400   :  { %2013 = vmatprep.subr.bf16.mxu0 %v5539_v55  ;;  %2054 = vmatprep.subr.bf16.mxu1 %v5542_v59  ;;  %6873 = vst [vmem:[#allocation46_spill] sm:$0xff] %v5551_v2  ;;  %6874 = vst [vmem:[#allocation47_spill] sm:$0xff] %v5554_v62  ;;  %v5574_v59 = vld [vmem:[#allocation11 + $0x48] ss:$16 sps:$4 sm:$0xff]  }
 0x401   :  { %6880 = vst [vmem:[#allocation53_spill] sm:$0xff] %v5574_v59 }
 0x402   :  { %1931 = vmatmul.mubr.bf16.vlgmr.msra.gmra.mrb[52].mxu0 %v1787_v8  ;;  %1972 = vmatmul.mubr.bf16.vlgmr.msra.gmra.mrb[52].mxu1 %v1787_v8  ;;  %v5559_v8 = vld [vmem:[#allocation11 + $0x20] ss:$16 sps:$4 sm:$0xff]  }
 0x403   :  { %2014 = vmatpush1.bf16.msra.mxu0 %v5545_v53  ;;  %2055 = vmatpush1.bf16.msra.mxu1 %v5548_v61  ;;  %6875 = vst [vmem:[#allocation48_spill] sm:$0xff] %v5559_v8  ;;  %v5562_v53 = vld [vmem:[#allocation11 + $0x28] ss:$16 sps:$4 sm:$0xff]   ;;  %v5565_v61 = vld [vmem:[#allocation11 + $0x44] ss:$16 sps:$4 sm:$0xff]  }
 0x404   :  { %2015 = vmatprep.subr.bf16.mxu0 %v5551_v2  ;;  %2056 = vmatprep.subr.bf16.mxu1 %v5554_v62  ;;  %6876 = vst [vmem:[#allocation49_spill] sm:$0xff] %v5562_v53  ;;  %6877 = vst [vmem:[#allocation50_spill] sm:$0xff] %v5565_v61  ;;  %v5568_v2 = vld [vmem:[#allocation11 + $0x4c] ss:$16 sps:$4 sm:$0xff]   ;;  %v5571_v62 = vld [vmem:[#allocation11 + $0x40] ss:$16 sps:$4 sm:$0xff]  }
 0x405   :  { %2045 = vmatprep.mubr.bf16.mxu0 %v6703_v5  ;;  %2086 = vmatprep.mubr.bf16.mxu1 %v6703_v5  ;;  %6878 = vst [vmem:[#allocation51_spill] sm:$0xff] %v5568_v2  ;;  %6879 = vst [vmem:[#allocation52_spill] sm:$0xff] %v5571_v62 }
 0x407   :  { %2016 = vmatpush1.bf16.msra.mxu0 %v5559_v8  ;;  %2057 = vmatpush1.bf16.msra.mxu1 %v5562_v53  ;;  %v5577_v8 = vld [vmem:[#allocation11 + $0x64] ss:$16 sps:$4 sm:$0xff]   ;;  %v5580_v53 = vld [vmem:[#allocation11 + $0x6c] ss:$16 sps:$4 sm:$0xff]  }
 0x408   :  { %2017 = vmatprep.subr.bf16.mxu0 %v5565_v61  ;;  %2058 = vmatprep.subr.bf16.mxu1 %v5568_v2  ;;  %6881 = vst [vmem:[#allocation54_spill] sm:$0xff] %v5577_v8  ;;  %6882 = vst [vmem:[#allocation55_spill] sm:$0xff] %v5580_v53  ;;  %v5583_v61 = vld [vmem:[#allocation11 + $0x60] ss:$16 sps:$4 sm:$0xff]   ;;  %v5586_v2 = vld [vmem:[#allocation11 + $0x68] ss:$16 sps:$4 sm:$0xff]  }
 0x409   :  { %6883 = vst [vmem:[#allocation56_spill] sm:$0xff] %v5583_v61  ;;  %6884 = vst [vmem:[#allocation57_spill] sm:$0xff] %v5586_v2 }
 0x40b   :  { %2018 = vmatpush1.bf16.msra.mxu0 %v5571_v62  ;;  %2059 = vmatpush1.bf16.msra.mxu1 %v5574_v59  ;;  %v5589_v62 = vld [vmem:[#allocation11 + $0x84] ss:$16 sps:$4 sm:$0xff]   ;;  %v5592_v59 = vld [vmem:[#allocation11 + $0x8c] ss:$16 sps:$4 sm:$0xff]  }
 0x40c   :  { %2019 = vmatprep.subr.bf16.mxu0 %v5577_v8  ;;  %2060 = vmatprep.subr.bf16.mxu1 %v5580_v53  ;;  %6885 = vst [vmem:[#allocation58_spill] sm:$0xff] %v5589_v62  ;;  %6886 = vst [vmem:[#allocation59_spill] sm:$0xff] %v5592_v59  ;;  %v5595_v8 = vld [vmem:[#allocation11 + $0x80] ss:$16 sps:$4 sm:$0xff]   ;;  %v5598_v53 = vld [vmem:[#allocation11 + $0x88] ss:$16 sps:$4 sm:$0xff]  }
 0x40d   :  { %6887 = vst [vmem:[#allocation60_spill] sm:$0xff] %v5595_v8  ;;  %6888 = vst [vmem:[#allocation61_spill] sm:$0xff] %v5598_v53 }
 0x40f   :  { %2020 = vmatpush1.bf16.msra.mxu0 %v5583_v61  ;;  %2061 = vmatpush1.bf16.msra.mxu1 %v5586_v2  ;;  %v5601_v61 = vld [vmem:[#allocation11 + $0xa4] ss:$16 sps:$4 sm:$0xff]   ;;  %v5604_v2 = vld [vmem:[#allocation11 + $0xac] ss:$16 sps:$4 sm:$0xff]  }
 0x410   :  { %2021 = vmatprep.subr.bf16.mxu0 %v5589_v62  ;;  %2062 = vmatprep.subr.bf16.mxu1 %v5592_v59  ;;  %6889 = vst [vmem:[#allocation62_spill] sm:$0xff] %v5601_v61  ;;  %6890 = vst [vmem:[#allocation63_spill] sm:$0xff] %v5604_v2  ;;  %v5607_v62 = vld [vmem:[#allocation11 + $0xa0] ss:$16 sps:$4 sm:$0xff]   ;;  %v5610_v59 = vld [vmem:[#allocation11 + $0xa8] ss:$16 sps:$4 sm:$0xff]  }
 0x411   :  { %6891 = vst [vmem:[#allocation64_spill] sm:$0xff] %v5607_v62  ;;  %6892 = vst [vmem:[#allocation65_spill] sm:$0xff] %v5610_v59 }
 0x413   :  { %2022 = vmatpush1.bf16.msra.mxu0 %v5595_v8  ;;  %2063 = vmatpush1.bf16.msra.mxu1 %v5598_v53  ;;  %v5613_v8 = vld [vmem:[#allocation11 + $0xc4] ss:$16 sps:$4 sm:$0xff]   ;;  %v5616_v53 = vld [vmem:[#allocation11 + $0xcc] ss:$16 sps:$4 sm:$0xff]  }
 0x414   :  { %2023 = vmatprep.subr.bf16.mxu0 %v5601_v61  ;;  %2064 = vmatprep.subr.bf16.mxu1 %v5604_v2  ;;  %6893 = vst [vmem:[#allocation66_spill] sm:$0xff] %v5613_v8  ;;  %6894 = vst [vmem:[#allocation67_spill] sm:$0xff] %v5616_v53  ;;  %v5619_v61 = vld [vmem:[#allocation11 + $0xc0] ss:$16 sps:$4 sm:$0xff]   ;;  %v5622_v2 = vld [vmem:[#allocation11 + $0xc8] ss:$16 sps:$4 sm:$0xff]  }
 0x415   :  { %6895 = vst [vmem:[#allocation68_spill] sm:$0xff] %v5619_v61  ;;  %6896 = vst [vmem:[#allocation69_spill] sm:$0xff] %v5622_v2 }
 0x417   :  { %2024 = vmatpush1.bf16.msra.mxu0 %v5607_v62  ;;  %2065 = vmatpush1.bf16.msra.mxu1 %v5610_v59  ;;  %v5625_v62 = vld [vmem:[#allocation11 + $0xe4] ss:$16 sps:$4 sm:$0xff]   ;;  %v5628_v59 = vld [vmem:[#allocation11 + $0xec] ss:$16 sps:$4 sm:$0xff]  }
 0x418   :  { %2025 = vmatprep.subr.bf16.mxu0 %v5613_v8  ;;  %2066 = vmatprep.subr.bf16.mxu1 %v5616_v53  ;;  %6897 = vst [vmem:[#allocation70_spill] sm:$0xff] %v5625_v62  ;;  %6898 = vst [vmem:[#allocation71_spill] sm:$0xff] %v5628_v59  ;;  %v5631_v8 = vld [vmem:[#allocation11 + $0xe0] ss:$16 sps:$4 sm:$0xff]   ;;  %v5634_v53 = vld [vmem:[#allocation11 + $0xe8] ss:$16 sps:$4 sm:$0xff]  }
 0x419   :  { %6899 = vst [vmem:[#allocation72_spill] sm:$0xff] %v5631_v8  ;;  %6900 = vst [vmem:[#allocation73_spill] sm:$0xff] %v5634_v53 }
 0x41b   :  { %2026 = vmatpush1.bf16.msra.mxu0 %v5619_v61  ;;  %2067 = vmatpush1.bf16.msra.mxu1 %v5622_v2  ;;  %v5637_v61 = vld [vmem:[#allocation9 + $0x4] ss:$16 sps:$4 sm:$0xff]   ;;  %v5640_v2 = vld [vmem:[#allocation9 + $0xc] ss:$16 sps:$4 sm:$0xff]  }
 0x41c   :  { %2027 = vmatprep.subr.bf16.mxu0 %v5625_v62  ;;  %2068 = vmatprep.subr.bf16.mxu1 %v5628_v59  ;;  %6901 = vst [vmem:[#allocation74_spill] sm:$0xff] %v5637_v61  ;;  %6902 = vst [vmem:[#allocation75_spill] sm:$0xff] %v5640_v2 }
 0x41f   :  { %2028 = vmatpush1.bf16.msra.mxu0 %v5631_v8  ;;  %2069 = vmatpush1.bf16.msra.mxu1 %v5634_v53 }
 0x420   :  { %2096 = vmatprep.subr.bf16.mxu0 %v5637_v61  ;;  %2137 = vmatprep.subr.bf16.mxu1 %v5640_v2 }
 0x495   :  { %v1739_v62 = vpop.f32.mrb[44].mxu0  ;;  %v1780_v55 = vpop.f32.mrb[44].mxu1 }
 0x496   :  { %v1741_v7 = vpop.f32.mrb[45].mxu0  ;;  %v1782_v59 = vpop.f32.mrb[45].mxu1 }
 0x497   :  { %v1743_v1 = vpop.f32.mrb[46].mxu0  ;;  %v1784_v25 = vpop.f32.mrb[46].mxu1 }
 0x498   :  { %v1744_v60 = vpop.f32.mrb[47].mxu0  ;;  %v1785_v8 = vpop.f32.mrb[47].mxu1 }
 0x4b5   :  { %v1822_v29 = vpop.f32.mrb[48].mxu0  ;;  %v1863_v24 = vpop.f32.mrb[48].mxu1 }
 0x4b6   :  { %v1823_v46 = vadd.f32 %v1822_v29, %v1739_v62  ;;  %v1864_v53 = vadd.f32 %v1863_v24, %v1780_v55  ;;  %v1824_v38 = vpop.f32.mrb[49].mxu0  ;;  %v1865_v37 = vpop.f32.mrb[49].mxu1 }
 0x4b7   :  { %v1825_v15 = vadd.f32 %v1824_v38, %v1741_v7  ;;  %v1866_v61 = vadd.f32 %v1865_v37, %v1782_v59  ;;  %v1826_v32 = vpop.f32.mrb[50].mxu0  ;;  %v1867_v3 = vpop.f32.mrb[50].mxu1  ;;  %v6903_v38 = vld [vmem:[#allocation85_spill] sm:$0xff] }
 0x4b8   :  { %v1870_v2 = vadd.f32 %v1823_v46, %v5196_v14  ;;  %v1827_v21 = vpop.f32.mrb[51].mxu0  ;;  %v1868_v28 = vpop.f32.mrb[51].mxu1  ;;  %v1872_v24 = vadd.f32 %v1864_v53, %v5211_v27  ;;  %v6904_v46 = vld [vmem:[#allocation86_spill] sm:$0xff] }
 0x4b9   :  { %v1871_v54 = vadd.f32 %v1825_v15, %v5200_v6  ;;  %v1873_v60 = vadd.f32 %v1866_v61, %v5206_v36 }
 0x4ba   :  { %v3696_v1 = vmul.f32 -1.442695, %v1870_v2 }
 0x4bb   :  { %v3697_v25 = vmul.f32 -1.442695, %v1871_v54  ;;  %v3698_v29 = vmul.f32 -1.442695, %v1873_v60 }
 0x4bc   :  { %4021 = vpow2.f32 %v3696_v1 }
 0x4bd   :  { %4023 = vpow2.f32 %v3697_v25 }
 0x4be   :  { %4025 = vpow2.f32 %v3698_v29  ;;  %v6905_v29 = vld [vmem:[#allocation87_spill] sm:$0xff] }
 0x4bf   :  { %4027 = vtanh.f32 %v1872_v24 }
 0x4c6   :  { %v4022_v55 = vpop.eup %4021 }
 0x4c7   :  { %v4024_v7 = vpop.eup %4023  ;;  %v1877_v59 = vadd.f32 1.0, %v4022_v55  ;;  %v6906_v55 = vld [vmem:[#allocation88_spill] sm:$0xff] }
 0x4c8   :  { %v1883_v3 = vadd.f32 1.0, %v4024_v7  ;;  %v4026_v28 = vpop.eup %4025 }
 0x4c9   :  { %4029 = vrcp.f32 %v1877_v59  ;;  %v4028_v21 = vpop.eup %4027  ;;  %v1890_v62 = vadd.f32 1.0, %v4026_v28 }
 0x4ca   :  { %4031 = vrcp.f32 %v1883_v3 }
 0x4cb   :  { %4033 = vrcp.f32 %v1890_v62 }
 0x4d3   :  { %v4030_v32 = vpop.eup %4029 }
 0x4d4   :  { %v4032_v2 = vpop.eup %4031  ;;  %v1894_v54 = vmul.f32 %v4030_v32, %v4028_v21 }
 0x4d5   :  { %v1893_v15 = vmul.f32 %v4032_v2, %v5404_v11  ;;  %v1932_v61 = vpop.f32.mrb[52].mxu0  ;;  %v1973_v37 = vpop.f32.mrb[52].mxu1 }
 0x4d6   :  { %v1984_v53 = vadd.f32 %v1932_v61, %v6903_v38  ;;  %v1986_v8 = vadd.f32 %v1973_v37, %v6904_v46  ;;  %v1934_v1 = vpop.f32.mrb[53].mxu0  ;;  %v1975_v25 = vpop.f32.mrb[53].mxu1 }
 0x4d7   :  { %v5650_v60 = vadd.f32 %v1894_v54, %v1893_v15  ;;  %v1985_v24 = vadd.f32 %v1934_v1, %v6905_v29  ;;  %v1987_v7 = vadd.f32 %v1975_v25, %v6906_v55  ;;  %v1936_v59 = vpop.f32.mrb[54].mxu0  ;;  %v1977_v3 = vpop.f32.mrb[54].mxu1 }
 0x4d8   :  { %v3699_v28 = vmul.f32 -1.442695, %v1984_v53  ;;  %v1937_v21 = vpop.f32.mrb[55].mxu0  ;;  %v1978_v11 = vpop.f32.mrb[55].mxu1 }
 0x4d9   :  { %v3700_v32 = vmul.f32 -1.442695, %v1985_v24  ;;  %4035 = vtanh.f32 %v5650_v60  ;;  %v3701_v2 = vmul.f32 -1.442695, %v1987_v7  ;;  %v4034_v61 = vpop.eup %4033  ;;  %v6907_v11 = vld [vmem:[#allocation20_spill] sm:$0xff] }
 0x4da   :  { %4037 = vpow2.f32 %v3699_v28 }
 0x4db   :  { %4039 = vpow2.f32 %v3700_v32  ;;  %v6908_v32 = vld [vmem:[#allocation21_spill] sm:$0xff] }
 0x4dc   :  { %4041 = vpow2.f32 %v3701_v2  ;;  %v6909_v2 = vld [vmem:[#allocation22_spill] sm:$0xff] }
 0x4dd   :  { %4043 = vtanh.f32 %v1986_v8 }
 0x4e3   :  { %v4036_v37 = vpop.eup %4035 }
 0x4e4   :  { %v4038_v54 = vpop.eup %4037  ;;  %v1897_v15 = vmul.f32 %v4036_v37, %v4034_v61  ;;  %v6912_v61 = vld [vmem:[#allocation25_spill] sm:$0xff] }
 0x4e5   :  { %v4040_v38 = vpop.eup %4039  ;;  %v1991_v46 = vadd.f32 1.0, %v4038_v54  ;;  %v6916_v37 = vld [vmem:[#allocation29_spill] sm:$0xff]  ;;  %v6917_v54 = vld [vmem:[#allocation30_spill] sm:$0xff] }
 0x4e6   :  { %v1997_v1 = vadd.f32 1.0, %v4040_v38  ;;  %v2012_v25 = vpack.c.bf16 %v1897_v15, %v1897_v15  ;;  %v4042_v62 = vpop.eup %4041  ;;  %v6918_v15 = vld [vmem:[#allocation31_spill] sm:$0xff]  ;;  %v6919_v38 = vld [vmem:[#allocation32_spill] sm:$0xff] }
 0x4e7   :  { %4045 = vrcp.f32 %v1991_v46  ;;  %v4044_v53 = vpop.eup %4043  ;;  %v2004_v55 = vadd.f32 1.0, %v4042_v62  ;;  %v6920_v46 = vld [vmem:[#allocation33_spill] sm:$0xff]  ;;  %v6923_v62 = vld [vmem:[#allocation36_spill] sm:$0xff] }
 0x4e8   :  { %4047 = vrcp.f32 %v1997_v1  ;;  %2046 = vmatmul.mubr.bf16.vlgmr.msra.gmra.mrb[56].mxu0 %v2012_v25  ;;  %2087 = vmatmul.mubr.bf16.vlgmr.msra.gmra.mrb[56].mxu1 %v2012_v25  ;;  %v6921_v1 = vld [vmem:[#allocation34_spill] sm:$0xff]  ;;  %v6922_v25 = vld [vmem:[#allocation35_spill] sm:$0xff] }
 0x4e9   :  { %2097 = vmatpush1.bf16.msra.mxu0 %v5409_v56  ;;  %2138 = vmatpush1.bf16.msra.mxu1 %v5412_v4  ;;  %4049 = vrcp.f32 %v2004_v55  ;;  %v6928_v55 = vld [vmem:[#allocation41_spill] sm:$0xff] }
 0x4ea   :  { %2098 = vmatprep.subr.bf16.mxu0 %v5415_v58  ;;  %2139 = vmatprep.subr.bf16.mxu1 %v5418_v57 }
 0x4eb   :  { %2128 = vmatprep.mubr.bf16.mxu0 %v6703_v5  ;;  %2169 = vmatprep.mubr.bf16.mxu1 %v6703_v5 }
 0x4ed   :  { %2099 = vmatpush1.bf16.msra.mxu0 %v5423_v51  ;;  %2140 = vmatpush1.bf16.msra.mxu1 %v5426_v41 }
 0x4ee   :  { %2100 = vmatprep.subr.bf16.mxu0 %v5429_v42  ;;  %2141 = vmatprep.subr.bf16.mxu1 %v5432_v43 }
 0x4f1   :  { %v4046_v8 = vpop.eup %4045  ;;  %2101 = vmatpush1.bf16.msra.mxu0 %v5435_v47  ;;  %2142 = vmatpush1.bf16.msra.mxu1 %v5438_v48 }
 0x4f2   :  { %v4048_v29 = vpop.eup %4047  ;;  %v2008_v24 = vmul.f32 %v4046_v8, %v4044_v53  ;;  %2102 = vmatprep.subr.bf16.mxu0 %v5441_v12  ;;  %2143 = vmatprep.subr.bf16.mxu1 %v5444_v13  ;;  %v6924_v53 = vld [vmem:[#allocation37_spill] sm:$0xff]  ;;  %v6925_v8 = vld [vmem:[#allocation38_spill] sm:$0xff] }
 0x4f3   :  { %v2007_v7 = vmul.f32 %v4048_v29, %v5448_v16  ;;  %v4050_v16 = vpop.eup %4049  ;;  %v6926_v29 = vld [vmem:[#allocation39_spill] sm:$0xff] }
 0x4f5   :  { %v5670_v59 = vadd.f32 %v2008_v24, %v2007_v7  ;;  %2103 = vmatpush1.bf16.msra.mxu0 %v5450_v17  ;;  %2144 = vmatpush1.bf16.msra.mxu1 %v5453_v18  ;;  %v6927_v24 = vld [vmem:[#allocation40_spill] sm:$0xff]  ;;  %v6929_v7 = vld [vmem:[#allocation42_spill] sm:$0xff] }
 0x4f6   :  { %2104 = vmatprep.subr.bf16.mxu0 %v5456_v19  ;;  %2145 = vmatprep.subr.bf16.mxu1 %v5459_v20 }
 0x4f7   :  { %4051 = vtanh.f32 %v5670_v59 }
 0x4f9   :  { %2105 = vmatpush1.bf16.msra.mxu0 %v5463_v49  ;;  %2146 = vmatpush1.bf16.msra.mxu1 %v5466_v33 }
 0x4fa   :  { %2106 = vmatprep.subr.bf16.mxu0 %v5469_v22  ;;  %2147 = vmatprep.subr.bf16.mxu1 %v5472_v23 }
 0x4fd   :  { %2107 = vmatpush1.bf16.msra.mxu0 %v5475_v30  ;;  %2148 = vmatpush1.bf16.msra.mxu1 %v5478_v31 }
 0x4fe   :  { %2108 = vmatprep.subr.bf16.mxu0 %v5481_v34  ;;  %2149 = vmatprep.subr.bf16.mxu1 %v5484_v35 }
 0x501   :  { %v4052_v3 = vpop.eup %4051  ;;  %2109 = vmatpush1.bf16.msra.mxu0 %v5487_v39  ;;  %2150 = vmatpush1.bf16.msra.mxu1 %v5490_v40 }
 0x502   :  { %2110 = vmatprep.subr.bf16.mxu0 %v5493_v44  ;;  %2151 = vmatprep.subr.bf16.mxu1 %v5496_v45  ;;  %v2011_v28 = vmul.f32 %v4052_v3, %v4050_v16  ;;  %v6930_v16 = vld [vmem:[#allocation43_spill] sm:$0xff]  ;;  %v6931_v3 = vld [vmem:[#allocation44_spill] sm:$0xff] }
 0x504   :  { %v2095_v21 = vpack.c.bf16 %v2011_v28, %v2011_v28  ;;  %v6932_v28 = vld [vmem:[#allocation45_spill] sm:$0xff] }
 0x505   :  { %2111 = vmatpush1.bf16.msra.mxu0 %v5499_v9  ;;  %2152 = vmatpush1.bf16.msra.mxu1 %v5502_v10 }
 0x506   :  { %2206 = vmatprep.subr.bf16.mxu0 %v5259_v0  ;;  %2247 = vmatprep.subr.bf16.mxu1 %v5262_v50  ;;  %v6910_v0 = vld [vmem:[#allocation23_spill] sm:$0xff]  ;;  %v6911_v50 = vld [vmem:[#allocation24_spill] sm:$0xff] }
 0x508   :  { %2129 = vmatmul.mubr.bf16.vlgmr.msra.gmra.mrb[60].mxu0 %v2095_v21  ;;  %2170 = vmatmul.mubr.bf16.vlgmr.msra.gmra.mrb[60].mxu1 %v2095_v21 }
 0x509   :  { %2207 = vmatpush1.bf16.msra.mxu0 %v5267_v52  ;;  %2248 = vmatpush1.bf16.msra.mxu1 %v5270_v26  ;;  %v6913_v52 = vld [vmem:[#allocation26_spill] sm:$0xff]  ;;  %v6914_v26 = vld [vmem:[#allocation27_spill] sm:$0xff] }
 0x50a   :  { %2208 = vmatprep.subr.bf16.mxu0 %v5273_v63  ;;  %2249 = vmatprep.subr.bf16.mxu1 %v6907_v11  ;;  %v6915_v63 = vld [vmem:[#allocation28_spill] sm:$0xff] }
 0x50b   :  { %2238 = vmatprep.mubr.bf16.mxu0 %v6703_v5  ;;  %2279 = vmatprep.mubr.bf16.mxu1 %v6703_v5  ;;  %v6933_v11 = vld [vmem:[#allocation76_spill] sm:$0xff] }
 0x50d   :  { %2209 = vmatpush1.bf16.msra.mxu0 %v6908_v32  ;;  %2250 = vmatpush1.bf16.msra.mxu1 %v6909_v2  ;;  %v6934_v32 = vld [vmem:[#allocation77_spill] sm:$0xff]  ;;  %v6935_v2 = vld [vmem:[#allocation78_spill] sm:$0xff] }
 0x50e   :  { %2210 = vmatprep.subr.bf16.mxu0 %v6910_v0  ;;  %2251 = vmatprep.subr.bf16.mxu1 %v6911_v50  ;;  %v6936_v0 = vld [vmem:[#allocation79_spill] sm:$0xff]  ;;  %v6937_v50 = vld [vmem:[#allocation80_spill] sm:$0xff] }
 0x511   :  { %2211 = vmatpush1.bf16.msra.mxu0 %v6912_v61  ;;  %2252 = vmatpush1.bf16.msra.mxu1 %v6913_v52  ;;  %v6938_v61 = vld [vmem:[#allocation46_spill] sm:$0xff]  ;;  %v6939_v52 = vld [vmem:[#allocation47_spill] sm:$0xff] }
 0x512   :  { %2212 = vmatprep.subr.bf16.mxu0 %v6914_v26  ;;  %2253 = vmatprep.subr.bf16.mxu1 %v6915_v63  ;;  %v6940_v26 = vld [vmem:[#allocation48_spill] sm:$0xff]  ;;  %v6941_v63 = vld [vmem:[#allocation49_spill] sm:$0xff] }
 0x515   :  { %2213 = vmatpush1.bf16.msra.mxu0 %v6916_v37  ;;  %2254 = vmatpush1.bf16.msra.mxu1 %v6917_v54  ;;  %v6942_v37 = vld [vmem:[#allocation50_spill] sm:$0xff]  ;;  %v6943_v54 = vld [vmem:[#allocation51_spill] sm:$0xff] }
 0x516   :  { %2214 = vmatprep.subr.bf16.mxu0 %v6918_v15  ;;  %2255 = vmatprep.subr.bf16.mxu1 %v6919_v38  ;;  %v6945_v15 = vld [vmem:[#allocation53_spill] sm:$0xff]  ;;  %v6946_v38 = vld [vmem:[#allocation54_spill] sm:$0xff] }
 0x519   :  { %2215 = vmatpush1.bf16.msra.mxu0 %v6920_v46  ;;  %2256 = vmatpush1.bf16.msra.mxu1 %v6921_v1  ;;  %v6947_v46 = vld [vmem:[#allocation55_spill] sm:$0xff]  ;;  %v6948_v1 = vld [vmem:[#allocation56_spill] sm:$0xff] }
 0x51a   :  { %2216 = vmatprep.subr.bf16.mxu0 %v6922_v25  ;;  %2257 = vmatprep.subr.bf16.mxu1 %v6923_v62  ;;  %v6949_v25 = vld [vmem:[#allocation57_spill] sm:$0xff]  ;;  %v6950_v62 = vld [vmem:[#allocation58_spill] sm:$0xff] }
 0x51d   :  { %2217 = vmatpush1.bf16.msra.mxu0 %v6924_v53  ;;  %2258 = vmatpush1.bf16.msra.mxu1 %v6925_v8  ;;  %v6951_v53 = vld [vmem:[#allocation59_spill] sm:$0xff]  ;;  %v6952_v8 = vld [vmem:[#allocation60_spill] sm:$0xff] }
 0x51e   :  { %2218 = vmatprep.subr.bf16.mxu0 %v6926_v29  ;;  %2259 = vmatprep.subr.bf16.mxu1 %v6927_v24  ;;  %v6953_v29 = vld [vmem:[#allocation61_spill] sm:$0xff]  ;;  %v6954_v24 = vld [vmem:[#allocation62_spill] sm:$0xff] }
 0x521   :  { %2219 = vmatpush1.bf16.msra.mxu0 %v6928_v55  ;;  %2260 = vmatpush1.bf16.msra.mxu1 %v6929_v7  ;;  %v6955_v55 = vld [vmem:[#allocation63_spill] sm:$0xff]  ;;  %v6956_v7 = vld [vmem:[#allocation64_spill] sm:$0xff] }
 0x522   :  { %2220 = vmatprep.subr.bf16.mxu0 %v6930_v16  ;;  %2261 = vmatprep.subr.bf16.mxu1 %v6931_v3  ;;  %v6957_v16 = vld [vmem:[#allocation65_spill] sm:$0xff]  ;;  %v6958_v3 = vld [vmem:[#allocation66_spill] sm:$0xff] }
 0x525   :  { %2221 = vmatpush1.bf16.msra.mxu0 %v6932_v28  ;;  %2262 = vmatpush1.bf16.msra.mxu1 %v6933_v11  ;;  %v6959_v28 = vld [vmem:[#allocation67_spill] sm:$0xff]  ;;  %v6960_v11 = vld [vmem:[#allocation68_spill] sm:$0xff] }
 0x526   :  { %2321 = vmatprep.subr.bf16.mxu0 %v6934_v32  ;;  %2362 = vmatprep.subr.bf16.mxu1 %v6935_v2 }
 0x528   :  { %2239 = vmatmul.mubr.bf16.vlgmr.msra.gmra.mrb[64].mxu0 %v2095_v21  ;;  %2280 = vmatmul.mubr.bf16.vlgmr.msra.gmra.mrb[64].mxu1 %v2095_v21  ;;  %v6944_v21 = vld [vmem:[#allocation52_spill] sm:$0xff] }
 0x529   :  { %2322 = vmatpush1.bf16.msra.mxu0 %v6936_v0  ;;  %2363 = vmatpush1.bf16.msra.mxu1 %v6937_v50 }
 0x52a   :  { %2323 = vmatprep.subr.bf16.mxu0 %v6938_v61  ;;  %2364 = vmatprep.subr.bf16.mxu1 %v6939_v52 }
 0x52b   :  { %2353 = vmatprep.mubr.bf16.mxu0 %v6703_v5  ;;  %2394 = vmatprep.mubr.bf16.mxu1 %v6703_v5 }
 0x52d   :  { %2324 = vmatpush1.bf16.msra.mxu0 %v6940_v26  ;;  %2365 = vmatpush1.bf16.msra.mxu1 %v6941_v63 }
 0x52e   :  { %2325 = vmatprep.subr.bf16.mxu0 %v6942_v37  ;;  %2366 = vmatprep.subr.bf16.mxu1 %v6943_v54 }
 0x531   :  { %2326 = vmatpush1.bf16.msra.mxu0 %v6944_v21  ;;  %2367 = vmatpush1.bf16.msra.mxu1 %v6945_v15 }
 0x532   :  { %2327 = vmatprep.subr.bf16.mxu0 %v6946_v38  ;;  %2368 = vmatprep.subr.bf16.mxu1 %v6947_v46 }
 0x535   :  { %2328 = vmatpush1.bf16.msra.mxu0 %v6948_v1  ;;  %2369 = vmatpush1.bf16.msra.mxu1 %v6949_v25 }
 0x536   :  { %2329 = vmatprep.subr.bf16.mxu0 %v6950_v62  ;;  %2370 = vmatprep.subr.bf16.mxu1 %v6951_v53  ;;  %v6961_v62 = vld [vmem:[#allocation69_spill] sm:$0xff]  ;;  %v6962_v53 = vld [vmem:[#allocation70_spill] sm:$0xff] }
 0x539   :  { %2330 = vmatpush1.bf16.msra.mxu0 %v6952_v8  ;;  %2371 = vmatpush1.bf16.msra.mxu1 %v6953_v29  ;;  %v6963_v8 = vld [vmem:[#allocation71_spill] sm:$0xff]  ;;  %v6964_v29 = vld [vmem:[#allocation72_spill] sm:$0xff] }
 0x53a   :  { %2331 = vmatprep.subr.bf16.mxu0 %v6954_v24  ;;  %2372 = vmatprep.subr.bf16.mxu1 %v6955_v55  ;;  %v6965_v24 = vld [vmem:[#allocation73_spill] sm:$0xff]  ;;  %v6966_v55 = vld [vmem:[#allocation74_spill] sm:$0xff] }
 0x53d   :  { %2332 = vmatpush1.bf16.msra.mxu0 %v6956_v7  ;;  %2373 = vmatpush1.bf16.msra.mxu1 %v6957_v16  ;;  %v6967_v7 = vld [vmem:[#allocation75_spill] sm:$0xff] }
 0x53e   :  { %2333 = vmatprep.subr.bf16.mxu0 %v6958_v3  ;;  %2374 = vmatprep.subr.bf16.mxu1 %v6959_v28 }
 0x541   :  { %2334 = vmatpush1.bf16.msra.mxu0 %v6960_v11  ;;  %2375 = vmatpush1.bf16.msra.mxu1 %v6961_v62 }
 0x542   :  { %2335 = vmatprep.subr.bf16.mxu0 %v6962_v53  ;;  %2376 = vmatprep.subr.bf16.mxu1 %v6963_v8 }
 0x545   :  { %2336 = vmatpush1.bf16.msra.mxu0 %v6964_v29  ;;  %2377 = vmatpush1.bf16.msra.mxu1 %v6965_v24 }
 0x546   :  { %2404 = vmatprep.subr.bf16.mxu0 %v6966_v55  ;;  %2445 = vmatprep.subr.bf16.mxu1 %v6967_v7 }
 0x5bb   :  { %v2047_v16 = vpop.f32.mrb[56].mxu0  ;;  %v2088_v3 = vpop.f32.mrb[56].mxu1 }
 0x5bc   :  { %v2049_v25 = vpop.f32.mrb[57].mxu0  ;;  %v2090_v28 = vpop.f32.mrb[57].mxu1 }
 0x5bd   :  { %v2051_v1 = vpop.f32.mrb[58].mxu0  ;;  %v2092_v11 = vpop.f32.mrb[58].mxu1 }
 0x5be   :  { %v2052_v46 = vpop.f32.mrb[59].mxu0  ;;  %v2093_v62 = vpop.f32.mrb[59].mxu1 }
 0x5db   :  { %v2130_v38 = vpop.f32.mrb[60].mxu0  ;;  %v2171_v53 = vpop.f32.mrb[60].mxu1 }
 0x5dc   :  { %v2131_v15 = vadd.f32 %v2130_v38, %v2047_v16  ;;  %v2172_v8 = vadd.f32 %v2171_v53, %v2088_v3  ;;  %v2132_v21 = vpop.f32.mrb[61].mxu0  ;;  %v2173_v29 = vpop.f32.mrb[61].mxu1  ;;  %v6968_v16 = vld [vmem:[#allocation89_spill] sm:$0xff]  ;;  %v6969_v3 = vld [vmem:[#allocation90_spill] sm:$0xff] }
 0x5dd   :  { %v2133_v54 = vadd.f32 %v2132_v21, %v2049_v25  ;;  %v2174_v24 = vadd.f32 %v2173_v29, %v2090_v28  ;;  %v2134_v37 = vpop.f32.mrb[62].mxu0  ;;  %v2175_v55 = vpop.f32.mrb[62].mxu1 }
 0x5de   :  { %v2178_v7 = vadd.f32 %v2131_v15, %v5196_v14  ;;  %v2135_v63 = vpop.f32.mrb[63].mxu0  ;;  %v2176_v26 = vpop.f32.mrb[63].mxu1  ;;  %v2180_v62 = vadd.f32 %v2172_v8, %v5211_v27 }
 0x5df   :  { %v2179_v52 = vadd.f32 %v2133_v54, %v5200_v6  ;;  %v2181_v46 = vadd.f32 %v2174_v24, %v5206_v36 }
 0x5e0   :  { %v3702_v1 = vmul.f32 -1.442695, %v2178_v7 }
 0x5e1   :  { %v3703_v11 = vmul.f32 -1.442695, %v2179_v52  ;;  %v3704_v38 = vmul.f32 -1.442695, %v2181_v46 }
 0x5e2   :  { %4053 = vpow2.f32 %v3702_v1 }
 0x5e3   :  { %4055 = vpow2.f32 %v3703_v11 }
 0x5e4   :  { %4057 = vpow2.f32 %v3704_v38  ;;  %v6970_v38 = vld [vmem:[#allocation91_spill] sm:$0xff] }
 0x5e5   :  { %4059 = vtanh.f32 %v2180_v62 }
 0x5ec   :  { %v4054_v53 = vpop.eup %4053 }
 0x5ed   :  { %v4056_v21 = vpop.eup %4055  ;;  %v2185_v25 = vadd.f32 1.0, %v4054_v53  ;;  %v6971_v53 = vld [vmem:[#allocation92_spill] sm:$0xff] }
 0x5ee   :  { %v2191_v37 = vadd.f32 1.0, %v4056_v21  ;;  %v4058_v26 = vpop.eup %4057 }
 0x5ef   :  { %4061 = vrcp.f32 %v2185_v25  ;;  %v4060_v63 = vpop.eup %4059  ;;  %v2198_v29 = vadd.f32 1.0, %v4058_v26 }
 0x5f0   :  { %4063 = vrcp.f32 %v2191_v37 }
 0x5f1   :  { %4065 = vrcp.f32 %v2198_v29 }
 0x5f9   :  { %v4062_v54 = vpop.eup %4061 }
 0x5fa   :  { %v4064_v15 = vpop.eup %4063  ;;  %v2202_v52 = vmul.f32 %v4062_v54, %v4060_v63 }
 0x5fb   :  { %v2201_v55 = vmul.f32 %v4064_v15, %v5650_v60  ;;  %v2240_v24 = vpop.f32.mrb[64].mxu0  ;;  %v2281_v7 = vpop.f32.mrb[64].mxu1 }
 0x5fc   :  { %v2292_v8 = vadd.f32 %v2240_v24, %v6968_v16  ;;  %v2294_v28 = vadd.f32 %v2281_v7, %v6969_v3  ;;  %v2242_v1 = vpop.f32.mrb[65].mxu0  ;;  %v2283_v11 = vpop.f32.mrb[65].mxu1 }
 0x5fd   :  { %v5768_v46 = vadd.f32 %v2202_v52, %v2201_v55  ;;  %v2293_v62 = vadd.f32 %v2242_v1, %v6970_v38  ;;  %v2295_v21 = vadd.f32 %v2283_v11, %v6971_v53  ;;  %v2244_v25 = vpop.f32.mrb[66].mxu0  ;;  %v2285_v37 = vpop.f32.mrb[66].mxu1  ;;  %v5881_v38 = vld [vmem:[#allocation8 + $0xa0] ss:$16 sps:$4 sm:$0xff]   ;;  %v5887_v53 = vld [vmem:[#allocation8 + $0xc4] ss:$16 sps:$4 sm:$0xff]  }
 0x5fe   :  { %v3705_v26 = vmul.f32 -1.442695, %v2292_v8  ;;  %v2245_v63 = vpop.f32.mrb[67].mxu0  ;;  %v2286_v60 = vpop.f32.mrb[67].mxu1  ;;  %6980 = vst [vmem:[#allocation20_spill] sm:$0xff] %v5881_v38  ;;  %6982 = vst [vmem:[#allocation22_spill] sm:$0xff] %v5887_v53 }
 0x5ff   :  { %v3706_v54 = vmul.f32 -1.442695, %v2293_v62  ;;  %4067 = vtanh.f32 %v5768_v46  ;;  %v3707_v15 = vmul.f32 -1.442695, %v2295_v21  ;;  %v4066_v24 = vpop.eup %4065  ;;  %v5884_v62 = vld [vmem:[#allocation8 + $0xa8] ss:$16 sps:$4 sm:$0xff]  }
 0x600   :  { %4069 = vpow2.f32 %v3705_v26  ;;  %6981 = vst [vmem:[#allocation21_spill] sm:$0xff] %v5884_v62  ;;  %v5890_v21 = vld [vmem:[#allocation8 + $0xcc] ss:$16 sps:$4 sm:$0xff]   ;;  %v5893_v25 = vld [vmem:[#allocation8 + $0xc0] ss:$16 sps:$4 sm:$0xff]  }
 0x601   :  { %4071 = vpow2.f32 %v3706_v54  ;;  %6983 = vst [vmem:[#allocation23_spill] sm:$0xff] %v5890_v21  ;;  %6984 = vst [vmem:[#allocation24_spill] sm:$0xff] %v5893_v25  ;;  %v5896_v37 = vld [vmem:[#allocation8 + $0xc8] ss:$16 sps:$4 sm:$0xff]   ;;  %v5899_v26 = vld [vmem:[#allocation8 + $0xe4] ss:$16 sps:$4 sm:$0xff]  }
 0x602   :  { %4073 = vpow2.f32 %v3707_v15  ;;  %6985 = vst [vmem:[#allocation25_spill] sm:$0xff] %v5896_v37  ;;  %6986 = vst [vmem:[#allocation26_spill] sm:$0xff] %v5899_v26  ;;  %v5902_v63 = vld [vmem:[#allocation8 + $0xec] ss:$16 sps:$4 sm:$0xff]   ;;  %v5905_v60 = vld [vmem:[#allocation8 + $0xe0] ss:$16 sps:$4 sm:$0xff]  }
 0x603   :  { %4075 = vtanh.f32 %v2294_v28  ;;  %v5878_v28 = vld [vmem:[#allocation8 + $0xac] ss:$16 sps:$4 sm:$0xff]   ;;  %6987 = vst [vmem:[#allocation27_spill] sm:$0xff] %v5902_v63  ;;  %6988 = vst [vmem:[#allocation28_spill] sm:$0xff] %v5905_v60  ;;  %v5908_v54 = vld [vmem:[#allocation8 + $0xe8] ss:$16 sps:$4 sm:$0xff]  }
 0x604   :  { %6979 = vst [vmem:[#allocation88_spill] sm:$0xff] %v5878_v28  ;;  %6989 = vst [vmem:[#allocation29_spill] sm:$0xff] %v5908_v54  ;;  %v6990_v15 = vld [vmem:[#allocation47_spill] sm:$0xff] }
 0x609   :  { %v4068_v7 = vpop.eup %4067 }
 0x60a   :  { %v4070_v52 = vpop.eup %4069  ;;  %v2205_v55 = vmul.f32 %v4068_v7, %v4066_v24  ;;  %v6991_v24 = vld [vmem:[#allocation48_spill] sm:$0xff]  ;;  %v6994_v7 = vld [vmem:[#allocation51_spill] sm:$0xff] }
 0x60b   :  { %v4072_v16 = vpop.eup %4071  ;;  %v2299_v3 = vadd.f32 1.0, %v4070_v52  ;;  %v6995_v52 = vld [vmem:[#allocation52_spill] sm:$0xff] }
 0x60c   :  { %v2305_v1 = vadd.f32 1.0, %v4072_v16  ;;  %v2320_v11 = vpack.c.bf16 %v2205_v55, %v2205_v55  ;;  %v4074_v29 = vpop.eup %4073  ;;  %v6999_v55 = vld [vmem:[#allocation56_spill] sm:$0xff]  ;;  %v7000_v16 = vld [vmem:[#allocation57_spill] sm:$0xff] }
 0x60d   :  { %4077 = vrcp.f32 %v2299_v3  ;;  %v7001_v3 = vld [vmem:[#allocation58_spill] sm:$0xff] }
 0x60e   :  { %4079 = vrcp.f32 %v2305_v1  ;;  %2354 = vmatmul.mubr.bf16.vlgmr.msra.gmra.mrb[68].mxu0 %v2320_v11  ;;  %2395 = vmatmul.mubr.bf16.vlgmr.msra.gmra.mrb[68].mxu1 %v2320_v11  ;;  %v7002_v1 = vld [vmem:[#allocation59_spill] sm:$0xff]  ;;  %v7003_v11 = vld [vmem:[#allocation60_spill] sm:$0xff] }
 0x60f   :  { %2405 = vmatpush1.bf16.msra.mxu0 %v5409_v56  ;;  %2446 = vmatpush1.bf16.msra.mxu1 %v5412_v4  ;;  %v4076_v56 = vpop.eup %4075 }
 0x610   :  { %2406 = vmatprep.subr.bf16.mxu0 %v5415_v58  ;;  %2447 = vmatprep.subr.bf16.mxu1 %v5418_v57  ;;  %v2312_v57 = vadd.f32 1.0, %v4074_v29  ;;  %v7004_v29 = vld [vmem:[#allocation61_spill] sm:$0xff] }
 0x611   :  { %2436 = vmatprep.mubr.bf16.mxu0 %v6703_v5  ;;  %2477 = vmatprep.mubr.bf16.mxu1 %v6703_v5 }
 0x612   :  { %4081 = vrcp.f32 %v2312_v57  ;;  %v7009_v57 = vld [vmem:[#allocation66_spill] sm:$0xff] }
 0x613   :  { %2407 = vmatpush1.bf16.msra.mxu0 %v5423_v51  ;;  %2448 = vmatpush1.bf16.msra.mxu1 %v5426_v41 }
 0x614   :  { %2408 = vmatprep.subr.bf16.mxu0 %v5429_v42  ;;  %2449 = vmatprep.subr.bf16.mxu1 %v5432_v43 }
 0x617   :  { %v4078_v8 = vpop.eup %4077  ;;  %2409 = vmatpush1.bf16.msra.mxu0 %v5435_v47  ;;  %2450 = vmatpush1.bf16.msra.mxu1 %v5438_v48 }
 0x618   :  { %v4080_v4 = vpop.eup %4079  ;;  %v2316_v58 = vmul.f32 %v4078_v8, %v4076_v56  ;;  %2410 = vmatprep.subr.bf16.mxu0 %v5441_v12  ;;  %2451 = vmatprep.subr.bf16.mxu1 %v5444_v13  ;;  %v5811_v12 = vld [vmem:[#allocation8 + $0x4] ss:$16 sps:$4 sm:$0xff]   ;;  %v5814_v13 = vld [vmem:[#allocation8 + $0xc] ss:$16 sps:$4 sm:$0xff]  }
 0x619   :  { %v2315_v51 = vmul.f32 %v4080_v4, %v5670_v59  ;;  %v5875_v59 = vld [vmem:[#allocation8 + $0xa4] ss:$16 sps:$4 sm:$0xff]   ;;  %v7005_v56 = vld [vmem:[#allocation62_spill] sm:$0xff]  ;;  %v7007_v4 = vld [vmem:[#allocation64_spill] sm:$0xff] }
 0x61a   :  { %6978 = vst [vmem:[#allocation87_spill] sm:$0xff] %v5875_v59  ;;  %v7006_v8 = vld [vmem:[#allocation63_spill] sm:$0xff] }
 0x61b   :  { %v5788_v41 = vadd.f32 %v2316_v58, %v2315_v51  ;;  %2411 = vmatpush1.bf16.msra.mxu0 %v5450_v17  ;;  %2452 = vmatpush1.bf16.msra.mxu1 %v5453_v18  ;;  %v5819_v17 = vld [vmem:[#allocation8] ss:$16 sps:$4 sm:$0xff]   ;;  %v5822_v18 = vld [vmem:[#allocation8 + $0x8] ss:$16 sps:$4 sm:$0xff]  }
 0x61c   :  { %2412 = vmatprep.subr.bf16.mxu0 %v5456_v19  ;;  %2453 = vmatprep.subr.bf16.mxu1 %v5459_v20  ;;  %v4082_v42 = vpop.eup %4081  ;;  %v5825_v19 = vld [vmem:[#allocation8 + $0x24] ss:$16 sps:$4 sm:$0xff]   ;;  %v5828_v20 = vld [vmem:[#allocation8 + $0x2c] ss:$16 sps:$4 sm:$0xff]  }
 0x61d   :  { %4083 = vtanh.f32 %v5788_v41  ;;  %v7008_v58 = vld [vmem:[#allocation65_spill] sm:$0xff]  ;;  %v7010_v51 = vld [vmem:[#allocation67_spill] sm:$0xff] }
 0x61f   :  { %2413 = vmatpush1.bf16.msra.mxu0 %v5463_v49  ;;  %2454 = vmatpush1.bf16.msra.mxu1 %v5466_v33  ;;  %v5833_v49 = vld [vmem:[#allocation8 + $0x20] ss:$16 sps:$4 sm:$0xff]   ;;  %v5836_v33 = vld [vmem:[#allocation8 + $0x28] ss:$16 sps:$4 sm:$0xff]  }
 0x620   :  { %2414 = vmatprep.subr.bf16.mxu0 %v5469_v22  ;;  %2455 = vmatprep.subr.bf16.mxu1 %v5472_v23  ;;  %v5839_v22 = vld [vmem:[#allocation8 + $0x44] ss:$16 sps:$4 sm:$0xff]   ;;  %v5842_v23 = vld [vmem:[#allocation8 + $0x4c] ss:$16 sps:$4 sm:$0xff]  }
 0x623   :  { %2415 = vmatpush1.bf16.msra.mxu0 %v5475_v30  ;;  %2456 = vmatpush1.bf16.msra.mxu1 %v5478_v31  ;;  %v5845_v30 = vld [vmem:[#allocation8 + $0x40] ss:$16 sps:$4 sm:$0xff]   ;;  %v5848_v31 = vld [vmem:[#allocation8 + $0x48] ss:$16 sps:$4 sm:$0xff]  }
 0x624   :  { %2416 = vmatprep.subr.bf16.mxu0 %v5481_v34  ;;  %2457 = vmatprep.subr.bf16.mxu1 %v5484_v35  ;;  %v5851_v34 = vld [vmem:[#allocation8 + $0x64] ss:$16 sps:$4 sm:$0xff]   ;;  %v5854_v35 = vld [vmem:[#allocation8 + $0x6c] ss:$16 sps:$4 sm:$0xff]  }
 0x627   :  { %v4084_v43 = vpop.eup %4083  ;;  %2417 = vmatpush1.bf16.msra.mxu0 %v5487_v39  ;;  %2458 = vmatpush1.bf16.msra.mxu1 %v5490_v40  ;;  %v5857_v39 = vld [vmem:[#allocation8 + $0x60] ss:$16 sps:$4 sm:$0xff]   ;;  %v5860_v40 = vld [vmem:[#allocation8 + $0x68] ss:$16 sps:$4 sm:$0xff]  }
 0x628   :  { %2418 = vmatprep.subr.bf16.mxu0 %v5493_v44  ;;  %2459 = vmatprep.subr.bf16.mxu1 %v5496_v45  ;;  %v2319_v47 = vmul.f32 %v4084_v43, %v4082_v42  ;;  %6972 = vst [vmem:[#allocation81_spill] sm:$0xff] %v5857_v39  ;;  %6973 = vst [vmem:[#allocation82_spill] sm:$0xff] %v5860_v40  ;;  %v5863_v44 = vld [vmem:[#allocation8 + $0x84] ss:$16 sps:$4 sm:$0xff]   ;;  %v5866_v45 = vld [vmem:[#allocation8 + $0x8c] ss:$16 sps:$4 sm:$0xff]  }
 0x629   :  { %6974 = vst [vmem:[#allocation83_spill] sm:$0xff] %v5863_v44  ;;  %6975 = vst [vmem:[#allocation84_spill] sm:$0xff] %v5866_v45  ;;  %v7011_v42 = vld [vmem:[#allocation68_spill] sm:$0xff]  ;;  %v7012_v43 = vld [vmem:[#allocation69_spill] sm:$0xff] }
 0x62a   :  { %v5807_v48 = vpack.c.bf16 %v2319_v47, %v2319_v47  ;;  %v7013_v47 = vld [vmem:[#allocation70_spill] sm:$0xff] }
 0x62b   :  { %2419 = vmatpush1.bf16.msra.mxu0 %v5499_v9  ;;  %2460 = vmatpush1.bf16.msra.mxu1 %v5502_v10  ;;  %v5869_v9 = vld [vmem:[#allocation8 + $0x80] ss:$16 sps:$4 sm:$0xff]   ;;  %v5872_v10 = vld [vmem:[#allocation8 + $0x88] ss:$16 sps:$4 sm:$0xff]  }
 0x62c   :  { %2514 = vmatprep.subr.bf16.mxu0 %v5811_v12  ;;  %2555 = vmatprep.subr.bf16.mxu1 %v5814_v13  ;;  %6976 = vst [vmem:[#allocation85_spill] sm:$0xff] %v5869_v9  ;;  %6977 = vst [vmem:[#allocation86_spill] sm:$0xff] %v5872_v10 }
 0x62e   :  { %2437 = vmatmul.mubr.bf16.vlgmr.msra.gmra.mrb[72].mxu0 %v5807_v48  ;;  %2478 = vmatmul.mubr.bf16.vlgmr.msra.gmra.mrb[72].mxu1 %v5807_v48 }
 0x62f   :  { %2515 = vmatpush1.bf16.msra.mxu0 %v5819_v17  ;;  %2556 = vmatpush1.bf16.msra.mxu1 %v5822_v18 }
 0x630   :  { %2516 = vmatprep.subr.bf16.mxu0 %v5825_v19  ;;  %2557 = vmatprep.subr.bf16.mxu1 %v5828_v20 }
 0x631   :  { %2546 = vmatprep.mubr.bf16.mxu0 %v6703_v5  ;;  %2587 = vmatprep.mubr.bf16.mxu1 %v6703_v5 }
 0x633   :  { %2517 = vmatpush1.bf16.msra.mxu0 %v5833_v49  ;;  %2558 = vmatpush1.bf16.msra.mxu1 %v5836_v33 }
 0x634   :  { %2518 = vmatprep.subr.bf16.mxu0 %v5839_v22  ;;  %2559 = vmatprep.subr.bf16.mxu1 %v5842_v23 }
 0x637   :  { %2519 = vmatpush1.bf16.msra.mxu0 %v5845_v30  ;;  %2560 = vmatpush1.bf16.msra.mxu1 %v5848_v31 }
 0x638   :  { %2520 = vmatprep.subr.bf16.mxu0 %v5851_v34  ;;  %2561 = vmatprep.subr.bf16.mxu1 %v5854_v35 }
 0x63b   :  { %2521 = vmatpush1.bf16.msra.mxu0 %v5857_v39  ;;  %2562 = vmatpush1.bf16.msra.mxu1 %v5860_v40 }
 0x63c   :  { %2522 = vmatprep.subr.bf16.mxu0 %v5863_v44  ;;  %2563 = vmatprep.subr.bf16.mxu1 %v5866_v45 }
 0x63f   :  { %2523 = vmatpush1.bf16.msra.mxu0 %v5869_v9  ;;  %2564 = vmatpush1.bf16.msra.mxu1 %v5872_v10 }
 0x640   :  { %2524 = vmatprep.subr.bf16.mxu0 %v5875_v59  ;;  %2565 = vmatprep.subr.bf16.mxu1 %v5878_v28 }
 0x643   :  { %2525 = vmatpush1.bf16.msra.mxu0 %v5881_v38  ;;  %2566 = vmatpush1.bf16.msra.mxu1 %v5884_v62 }
 0x644   :  { %2526 = vmatprep.subr.bf16.mxu0 %v5887_v53  ;;  %2567 = vmatprep.subr.bf16.mxu1 %v5890_v21 }
 0x647   :  { %2527 = vmatpush1.bf16.msra.mxu0 %v5893_v25  ;;  %2568 = vmatpush1.bf16.msra.mxu1 %v5896_v37 }
 0x648   :  { %2528 = vmatprep.subr.bf16.mxu0 %v5899_v26  ;;  %2569 = vmatprep.subr.bf16.mxu1 %v5902_v63 }
 0x64b   :  { %2529 = vmatpush1.bf16.msra.mxu0 %v5905_v60  ;;  %2570 = vmatpush1.bf16.msra.mxu1 %v5908_v54 }
 0x64c   :  { %2629 = vmatprep.subr.bf16.mxu0 %v6934_v32  ;;  %2670 = vmatprep.subr.bf16.mxu1 %v6935_v2  ;;  %v6992_v32 = vld [vmem:[#allocation49_spill] sm:$0xff]  ;;  %v6993_v2 = vld [vmem:[#allocation50_spill] sm:$0xff] }
 0x64e   :  { %2547 = vmatmul.mubr.bf16.vlgmr.msra.gmra.mrb[76].mxu0 %v5807_v48  ;;  %2588 = vmatmul.mubr.bf16.vlgmr.msra.gmra.mrb[76].mxu1 %v5807_v48  ;;  %v7014_v48 = vld [vmem:[#allocation71_spill] sm:$0xff] }
 0x64f   :  { %2630 = vmatpush1.bf16.msra.mxu0 %v6936_v0  ;;  %2671 = vmatpush1.bf16.msra.mxu1 %v6937_v50  ;;  %v6996_v0 = vld [vmem:[#allocation53_spill] sm:$0xff]  ;;  %v6997_v50 = vld [vmem:[#allocation54_spill] sm:$0xff] }
 0x650   :  { %2631 = vmatprep.subr.bf16.mxu0 %v6938_v61  ;;  %2672 = vmatprep.subr.bf16.mxu1 %v6990_v15  ;;  %v6998_v61 = vld [vmem:[#allocation55_spill] sm:$0xff]  ;;  %v7015_v15 = vld [vmem:[#allocation72_spill] sm:$0xff] }
 0x651   :  { %2661 = vmatprep.mubr.bf16.mxu0 %v6703_v5  ;;  %2702 = vmatprep.mubr.bf16.mxu1 %v6703_v5 }
 0x653   :  { %2632 = vmatpush1.bf16.msra.mxu0 %v6991_v24  ;;  %2673 = vmatpush1.bf16.msra.mxu1 %v6992_v32  ;;  %v7016_v24 = vld [vmem:[#allocation73_spill] sm:$0xff]  ;;  %v7017_v32 = vld [vmem:[#allocation74_spill] sm:$0xff] }
 0x654   :  { %2633 = vmatprep.subr.bf16.mxu0 %v6993_v2  ;;  %2674 = vmatprep.subr.bf16.mxu1 %v6994_v7  ;;  %v7018_v2 = vld [vmem:[#allocation75_spill] sm:$0xff] }
 0x657   :  { %2634 = vmatpush1.bf16.msra.mxu0 %v6995_v52  ;;  %2675 = vmatpush1.bf16.msra.mxu1 %v6996_v0 }
 0x658   :  { %2635 = vmatprep.subr.bf16.mxu0 %v6997_v50  ;;  %2676 = vmatprep.subr.bf16.mxu1 %v6998_v61 }
 0x65b   :  { %2636 = vmatpush1.bf16.msra.mxu0 %v6999_v55  ;;  %2677 = vmatpush1.bf16.msra.mxu1 %v7000_v16 }
 0x65c   :  { %2637 = vmatprep.subr.bf16.mxu0 %v7001_v3  ;;  %2678 = vmatprep.subr.bf16.mxu1 %v7002_v1 }
 0x65f   :  { %2638 = vmatpush1.bf16.msra.mxu0 %v7003_v11  ;;  %2679 = vmatpush1.bf16.msra.mxu1 %v7004_v29 }
 0x660   :  { %2639 = vmatprep.subr.bf16.mxu0 %v7005_v56  ;;  %2680 = vmatprep.subr.bf16.mxu1 %v7006_v8 }
 0x663   :  { %2640 = vmatpush1.bf16.msra.mxu0 %v7007_v4  ;;  %2681 = vmatpush1.bf16.msra.mxu1 %v7008_v58 }
 0x664   :  { %2641 = vmatprep.subr.bf16.mxu0 %v7009_v57  ;;  %2682 = vmatprep.subr.bf16.mxu1 %v7010_v51 }
 0x667   :  { %2642 = vmatpush1.bf16.msra.mxu0 %v7011_v42  ;;  %2683 = vmatpush1.bf16.msra.mxu1 %v7012_v43 }
 0x668   :  { %2643 = vmatprep.subr.bf16.mxu0 %v7013_v47  ;;  %2684 = vmatprep.subr.bf16.mxu1 %v7014_v48 }
 0x66b   :  { %2644 = vmatpush1.bf16.msra.mxu0 %v7015_v15  ;;  %2685 = vmatpush1.bf16.msra.mxu1 %v7016_v24 }
 0x66c   :  { %2712 = vmatprep.subr.bf16.mxu0 %v7017_v32  ;;  %2753 = vmatprep.subr.bf16.mxu1 %v7018_v2 }
 0x6e1   :  { %v2355_v7 = vpop.f32.mrb[68].mxu0  ;;  %v2396_v52 = vpop.f32.mrb[68].mxu1 }
 0x6e2   :  { %v2357_v0 = vpop.f32.mrb[69].mxu0  ;;  %v2398_v50 = vpop.f32.mrb[69].mxu1 }
 0x6e3   :  { %v2359_v61 = vpop.f32.mrb[70].mxu0  ;;  %v2400_v55 = vpop.f32.mrb[70].mxu1 }
 0x6e4   :  { %v2360_v16 = vpop.f32.mrb[71].mxu0  ;;  %v2401_v3 = vpop.f32.mrb[71].mxu1 }
 0x701   :  { %v2438_v1 = vpop.f32.mrb[72].mxu0  ;;  %v2479_v11 = vpop.f32.mrb[72].mxu1 }
 0x702   :  { %v2439_v29 = vadd.f32 %v2438_v1, %v2355_v7  ;;  %v2480_v56 = vadd.f32 %v2479_v11, %v2396_v52  ;;  %v2440_v8 = vpop.f32.mrb[73].mxu0  ;;  %v2481_v4 = vpop.f32.mrb[73].mxu1 }
 0x703   :  { %v2441_v58 = vadd.f32 %v2440_v8, %v2357_v0  ;;  %v2482_v57 = vadd.f32 %v2481_v4, %v2398_v50  ;;  %v2442_v51 = vpop.f32.mrb[74].mxu0  ;;  %v2483_v42 = vpop.f32.mrb[74].mxu1 }
 0x704   :  { %v2486_v43 = vadd.f32 %v2439_v29, %v5196_v14  ;;  %v2443_v47 = vpop.f32.mrb[75].mxu0  ;;  %v2484_v48 = vpop.f32.mrb[75].mxu1  ;;  %v2488_v52 = vadd.f32 %v2480_v56, %v5211_v27  ;;  %v7019_v51 = vld [vmem:[#allocation93_spill] sm:$0xff]  ;;  %v7020_v42 = vld [vmem:[#allocation94_spill] sm:$0xff] }
 0x705   :  { %v2487_v15 = vadd.f32 %v2441_v58, %v5200_v6  ;;  %v2489_v2 = vadd.f32 %v2482_v57, %v5206_v36 }
 0x706   :  { %v3708_v24 = vmul.f32 -1.442695, %v2486_v43 }
 0x707   :  { %v3709_v32 = vmul.f32 -1.442695, %v2487_v15  ;;  %v3710_v7 = vmul.f32 -1.442695, %v2489_v2  ;;  %v7022_v2 = vld [vmem:[#allocation96_spill] sm:$0xff] }
 0x708   :  { %4085 = vpow2.f32 %v3708_v24  ;;  %v7021_v24 = vld [vmem:[#allocation95_spill] sm:$0xff] }
 0x709   :  { %4087 = vpow2.f32 %v3709_v32 }
 0x70a   :  { %4089 = vpow2.f32 %v3710_v7 }
 0x70b   :  { %4091 = vtanh.f32 %v2488_v52 }
 0x712   :  { %v4086_v61 = vpop.eup %4085 }
 0x713   :  { %v4088_v0 = vpop.eup %4087  ;;  %v2493_v50 = vadd.f32 1.0, %v4086_v61 }
 0x714   :  { %v2499_v55 = vadd.f32 1.0, %v4088_v0  ;;  %v4090_v16 = vpop.eup %4089 }
 0x715   :  { %4093 = vrcp.f32 %v2493_v50  ;;  %v4092_v3 = vpop.eup %4091  ;;  %v2506_v8 = vadd.f32 1.0, %v4090_v16 }
 0x716   :  { %4095 = vrcp.f32 %v2499_v55 }
 0x717   :  { %4097 = vrcp.f32 %v2506_v8  ;;  %v5961_v8 = vld [vmem:[#allocation9] ss:$16 sps:$4 sm:$0xff]  }
 0x71f   :  { %v4094_v1 = vpop.eup %4093 }
 0x720   :  { %v4096_v11 = vpop.eup %4095  ;;  %v2510_v29 = vmul.f32 %v4094_v1, %v4092_v3 }
 0x721   :  { %v2509_v4 = vmul.f32 %v4096_v11, %v5768_v46  ;;  %v2548_v58 = vpop.f32.mrb[76].mxu0  ;;  %v2589_v57 = vpop.f32.mrb[76].mxu1 }
 0x722   :  { %v2600_v56 = vadd.f32 %v2548_v58, %v7019_v51  ;;  %v2602_v43 = vadd.f32 %v2589_v57, %v7020_v42  ;;  %v2550_v47 = vpop.f32.mrb[77].mxu0  ;;  %v2591_v48 = vpop.f32.mrb[77].mxu1  ;;  %v5967_v42 = vld [vmem:[#allocation9 + $0x24] ss:$16 sps:$4 sm:$0xff]  }
 0x723   :  { %v5956_v15 = vadd.f32 %v2510_v29, %v2509_v4  ;;  %v2601_v32 = vadd.f32 %v2550_v47, %v7021_v24  ;;  %v2603_v7 = vadd.f32 %v2591_v48, %v7022_v2  ;;  %v2552_v52 = vpop.f32.mrb[78].mxu0  ;;  %v2593_v61 = vpop.f32.mrb[78].mxu1  ;;  %v5970_v47 = vld [vmem:[#allocation9 + $0x2c] ss:$16 sps:$4 sm:$0xff]   ;;  %v5978_v48 = vld [vmem:[#allocation9 + $0x28] ss:$16 sps:$4 sm:$0xff]  }
 0x724   :  { %v3711_v0 = vmul.f32 -1.442695, %v2600_v56  ;;  %v2553_v50 = vpop.f32.mrb[79].mxu0  ;;  %v2594_v46 = vpop.f32.mrb[79].mxu1  ;;  %v5964_v56 = vld [vmem:[#allocation9 + $0x8] ss:$16 sps:$4 sm:$0xff]  }
 0x725   :  { %v3712_v55 = vmul.f32 -1.442695, %v2601_v32  ;;  %4099 = vtanh.f32 %v5956_v15  ;;  %v3713_v16 = vmul.f32 -1.442695, %v2603_v7  ;;  %v4098_v3 = vpop.eup %4097  ;;  %v5981_v24 = vld [vmem:[#allocation9 + $0x44] ss:$16 sps:$4 sm:$0xff]  }
 0x726   :  { %4101 = vpow2.f32 %v3711_v0  ;;  %v5984_v32 = vld [vmem:[#allocation9 + $0x4c] ss:$16 sps:$4 sm:$0xff]   ;;  %v5987_v61 = vld [vmem:[#allocation9 + $0x40] ss:$16 sps:$4 sm:$0xff]   ;;  %v5990_v0 = vld [vmem:[#allocation9 + $0x48] ss:$16 sps:$4 sm:$0xff]  }
 0x727   :  { %4103 = vpow2.f32 %v3712_v55 }
 0x728   :  { %4105 = vpow2.f32 %v3713_v16  ;;  %v5993_v16 = vld [vmem:[#allocation9 + $0x64] ss:$16 sps:$4 sm:$0xff]  }
 0x729   :  { %4107 = vtanh.f32 %v2602_v43  ;;  %v5975_v43 = vld [vmem:[#allocation9 + $0x20] ss:$16 sps:$4 sm:$0xff]  }
 0x72f   :  { %v4100_v1 = vpop.eup %4099 }
 0x730   :  { %v4102_v11 = vpop.eup %4101  ;;  %v2513_v29 = vmul.f32 %v4100_v1, %v4098_v3  ;;  %v5996_v3 = vld [vmem:[#allocation9 + $0x6c] ss:$16 sps:$4 sm:$0xff]  }
 0x731   :  { %v4104_v4 = vpop.eup %4103  ;;  %v2607_v58 = vadd.f32 1.0, %v4102_v11 }
 0x732   :  { %v2613_v57 = vadd.f32 1.0, %v4104_v4  ;;  %v2628_v51 = vpack.c.bf16 %v2513_v29, %v2513_v29  ;;  %v4106_v2 = vpop.eup %4105  ;;  %v6002_v29 = vld [vmem:[#allocation9 + $0x60] ss:$16 sps:$4 sm:$0xff]   ;;  %v6005_v4 = vld [vmem:[#allocation9 + $0x68] ss:$16 sps:$4 sm:$0xff]  }
 0x733   :  { %4109 = vrcp.f32 %v2607_v58  ;;  %v4108_v7 = vpop.eup %4107  ;;  %v2620_v55 = vadd.f32 1.0, %v4106_v2  ;;  %v6008_v58 = vld [vmem:[#allocation9 + $0x84] ss:$16 sps:$4 sm:$0xff]  }
 0x734   :  { %4111 = vrcp.f32 %v2613_v57  ;;  %2662 = vmatmul.mubr.bf16.vlgmr.msra.gmra.mrb[80].mxu0 %v2628_v51  ;;  %2703 = vmatmul.mubr.bf16.vlgmr.msra.gmra.mrb[80].mxu1 %v2628_v51  ;;  %v6011_v57 = vld [vmem:[#allocation9 + $0x8c] ss:$16 sps:$4 sm:$0xff]   ;;  %v6018_v51 = vld [vmem:[#allocation9 + $0x88] ss:$16 sps:$4 sm:$0xff]   ;;  %v6021_v2 = vld [vmem:[#allocation9 + $0xa4] ss:$16 sps:$4 sm:$0xff]  }
 0x735   :  { %2713 = vmatpush1.bf16.msra.mxu0 %v5961_v8  ;;  %2754 = vmatpush1.bf16.msra.mxu1 %v5964_v56  ;;  %4113 = vrcp.f32 %v2620_v55  ;;  %7023 = vst [vmem:[#allocation30_spill] sm:$0xff] %v6011_v57  ;;  %7025 = vst [vmem:[#allocation32_spill] sm:$0xff] %v6018_v51  ;;  %v6036_v55 = vld [vmem:[#allocation9 + $0xcc] ss:$16 sps:$4 sm:$0xff]  }
 0x736   :  { %2714 = vmatprep.subr.bf16.mxu0 %v5967_v42  ;;  %2755 = vmatprep.subr.bf16.mxu1 %v5970_v47  ;;  %7026 = vst [vmem:[#allocation33_spill] sm:$0xff] %v6021_v2  ;;  %7031 = vst [vmem:[#allocation38_spill] sm:$0xff] %v6036_v55 }
 0x737   :  { %2744 = vmatprep.mubr.bf16.mxu0 %v6703_v5  ;;  %2785 = vmatprep.mubr.bf16.mxu1 %v6703_v5 }
 0x739   :  { %2715 = vmatpush1.bf16.msra.mxu0 %v5975_v43  ;;  %2756 = vmatpush1.bf16.msra.mxu1 %v5978_v48 }
 0x73a   :  { %2716 = vmatprep.subr.bf16.mxu0 %v5981_v24  ;;  %2757 = vmatprep.subr.bf16.mxu1 %v5984_v32 }
 0x73d   :  { %v4110_v52 = vpop.eup %4109  ;;  %2717 = vmatpush1.bf16.msra.mxu0 %v5987_v61  ;;  %2758 = vmatpush1.bf16.msra.mxu1 %v5990_v0 }
 0x73e   :  { %v4112_v50 = vpop.eup %4111  ;;  %v2624_v46 = vmul.f32 %v4110_v52, %v4108_v7  ;;  %2718 = vmatprep.subr.bf16.mxu0 %v5993_v16  ;;  %2759 = vmatprep.subr.bf16.mxu1 %v5996_v3  ;;  %v6024_v7 = vld [vmem:[#allocation9 + $0xac] ss:$16 sps:$4 sm:$0xff]   ;;  %v6027_v52 = vld [vmem:[#allocation9 + $0xa0] ss:$16 sps:$4 sm:$0xff]  }
 0x73f   :  { %v2623_v1 = vmul.f32 %v4112_v50, %v5788_v41  ;;  %v6015_v41 = vld [vmem:[#allocation9 + $0x80] ss:$16 sps:$4 sm:$0xff]   ;;  %7027 = vst [vmem:[#allocation34_spill] sm:$0xff] %v6024_v7  ;;  %7028 = vst [vmem:[#allocation35_spill] sm:$0xff] %v6027_v52  ;;  %v6030_v50 = vld [vmem:[#allocation9 + $0xa8] ss:$16 sps:$4 sm:$0xff]  }
 0x740   :  { %7024 = vst [vmem:[#allocation31_spill] sm:$0xff] %v6015_v41  ;;  %7029 = vst [vmem:[#allocation36_spill] sm:$0xff] %v6030_v50 }
 0x741   :  { %v6000_v11 = vadd.f32 %v2624_v46, %v2623_v1  ;;  %2719 = vmatpush1.bf16.msra.mxu0 %v6002_v29  ;;  %2760 = vmatpush1.bf16.msra.mxu1 %v6005_v4  ;;  %v6033_v46 = vld [vmem:[#allocation9 + $0xc4] ss:$16 sps:$4 sm:$0xff]   ;;  %v4114_v1 = vpop.eup %4113 }
 0x742   :  { %2720 = vmatprep.subr.bf16.mxu0 %v6008_v58  ;;  %2761 = vmatprep.subr.bf16.mxu1 %v6011_v57  ;;  %7030 = vst [vmem:[#allocation37_spill] sm:$0xff] %v6033_v46  ;;  %v6054_v57 = vld [vmem:[#allocation9 + $0xe8] ss:$16 sps:$4 sm:$0xff]  }
 0x743   :  { %4115 = vtanh.f32 %v6000_v11 }
 0x745   :  { %2721 = vmatpush1.bf16.msra.mxu0 %v6015_v41  ;;  %2762 = vmatpush1.bf16.msra.mxu1 %v6018_v51  ;;  %v6039_v51 = vld [vmem:[#allocation9 + $0xc0] ss:$16 sps:$4 sm:$0xff]  }
 0x746   :  { %2722 = vmatprep.subr.bf16.mxu0 %v6021_v2  ;;  %2763 = vmatprep.subr.bf16.mxu1 %v6024_v7  ;;  %v6042_v7 = vld [vmem:[#allocation9 + $0xc8] ss:$16 sps:$4 sm:$0xff]   ;;  %v6051_v41 = vld [vmem:[#allocation9 + $0xe0] ss:$16 sps:$4 sm:$0xff]  }
 0x749   :  { %2723 = vmatpush1.bf16.msra.mxu0 %v6027_v52  ;;  %2764 = vmatpush1.bf16.msra.mxu1 %v6030_v50  ;;  %v6045_v52 = vld [vmem:[#allocation9 + $0xe4] ss:$16 sps:$4 sm:$0xff]   ;;  %v6048_v50 = vld [vmem:[#allocation9 + $0xec] ss:$16 sps:$4 sm:$0xff]  }
 0x74a   :  { %2724 = vmatprep.subr.bf16.mxu0 %v6033_v46  ;;  %2765 = vmatprep.subr.bf16.mxu1 %v6036_v55 }
 0x74d   :  { %v4116_v2 = vpop.eup %4115  ;;  %2725 = vmatpush1.bf16.msra.mxu0 %v6039_v51  ;;  %2766 = vmatpush1.bf16.msra.mxu1 %v6042_v7 }
 0x74e   :  { %2726 = vmatprep.subr.bf16.mxu0 %v6045_v52  ;;  %2767 = vmatprep.subr.bf16.mxu1 %v6048_v50  ;;  %v2627_v46 = vmul.f32 %v4116_v2, %v4114_v1  ;;  %v6091_v2 = vld [vmem:[#allocation11 + $0x4] ss:$16 sps:$4 sm:$0xff]   ;;  %v6097_v1 = vld [vmem:[#allocation11] ss:$16 sps:$4 sm:$0xff]  }
 0x74f   :  { %7032 = vst [vmem:[#allocation39_spill] sm:$0xff] %v6091_v2  ;;  %7034 = vst [vmem:[#allocation41_spill] sm:$0xff] %v6097_v1 }
 0x750   :  { %v2711_v55 = vpack.c.bf16 %v2627_v46, %v2627_v46  ;;  %v6094_v46 = vld [vmem:[#allocation11 + $0xc] ss:$16 sps:$4 sm:$0xff]  }
 0x751   :  { %2727 = vmatpush1.bf16.msra.mxu0 %v6051_v41  ;;  %2768 = vmatpush1.bf16.msra.mxu1 %v6054_v57  ;;  %7033 = vst [vmem:[#allocation40_spill] sm:$0xff] %v6094_v46 }
 0x752   :  { %2822 = vmatprep.subr.bf16.mxu0 %v5811_v12  ;;  %2863 = vmatprep.subr.bf16.mxu1 %v5814_v13 }
 0x754   :  { %2745 = vmatmul.mubr.bf16.vlgmr.msra.gmra.mrb[84].mxu0 %v2711_v55  ;;  %2786 = vmatmul.mubr.bf16.vlgmr.msra.gmra.mrb[84].mxu1 %v2711_v55 }
 0x755   :  { %2823 = vmatpush1.bf16.msra.mxu0 %v5819_v17  ;;  %2864 = vmatpush1.bf16.msra.mxu1 %v5822_v18 }
 0x756   :  { %2824 = vmatprep.subr.bf16.mxu0 %v5825_v19  ;;  %2865 = vmatprep.subr.bf16.mxu1 %v5828_v20 }
 0x757   :  { %2854 = vmatprep.mubr.bf16.mxu0 %v6703_v5  ;;  %2895 = vmatprep.mubr.bf16.mxu1 %v6703_v5 }
 0x759   :  { %2825 = vmatpush1.bf16.msra.mxu0 %v5833_v49  ;;  %2866 = vmatpush1.bf16.msra.mxu1 %v5836_v33 }
 0x75a   :  { %2826 = vmatprep.subr.bf16.mxu0 %v5839_v22  ;;  %2867 = vmatprep.subr.bf16.mxu1 %v5842_v23 }
 0x75d   :  { %2827 = vmatpush1.bf16.msra.mxu0 %v5845_v30  ;;  %2868 = vmatpush1.bf16.msra.mxu1 %v5848_v31 }
 0x75e   :  { %2828 = vmatprep.subr.bf16.mxu0 %v5851_v34  ;;  %2869 = vmatprep.subr.bf16.mxu1 %v5854_v35 }
 0x761   :  { %2829 = vmatpush1.bf16.msra.mxu0 %v5857_v39  ;;  %2870 = vmatpush1.bf16.msra.mxu1 %v5860_v40 }
 0x762   :  { %2830 = vmatprep.subr.bf16.mxu0 %v5863_v44  ;;  %2871 = vmatprep.subr.bf16.mxu1 %v5866_v45 }
 0x765   :  { %2831 = vmatpush1.bf16.msra.mxu0 %v5869_v9  ;;  %2872 = vmatpush1.bf16.msra.mxu1 %v5872_v10 }
 0x766   :  { %2832 = vmatprep.subr.bf16.mxu0 %v5875_v59  ;;  %2873 = vmatprep.subr.bf16.mxu1 %v5878_v28 }
 0x769   :  { %2833 = vmatpush1.bf16.msra.mxu0 %v5881_v38  ;;  %2874 = vmatpush1.bf16.msra.mxu1 %v5884_v62 }
 0x76a   :  { %2834 = vmatprep.subr.bf16.mxu0 %v5887_v53  ;;  %2875 = vmatprep.subr.bf16.mxu1 %v5890_v21 }
 0x76d   :  { %2835 = vmatpush1.bf16.msra.mxu0 %v5893_v25  ;;  %2876 = vmatpush1.bf16.msra.mxu1 %v5896_v37 }
 0x76e   :  { %2836 = vmatprep.subr.bf16.mxu0 %v5899_v26  ;;  %2877 = vmatprep.subr.bf16.mxu1 %v5902_v63  ;;  %v6100_v26 = vld [vmem:[#allocation11 + $0x8] ss:$16 sps:$4 sm:$0xff]  }
 0x76f   :  { %7035 = vst [vmem:[#allocation42_spill] sm:$0xff] %v6100_v26 }
 0x771   :  { %2837 = vmatpush1.bf16.msra.mxu0 %v5905_v60  ;;  %2878 = vmatpush1.bf16.msra.mxu1 %v5908_v54  ;;  %v6103_v60 = vld [vmem:[#allocation11 + $0x24] ss:$16 sps:$4 sm:$0xff]   ;;  %v6106_v54 = vld [vmem:[#allocation11 + $0x2c] ss:$16 sps:$4 sm:$0xff]  }
 0x772   :  { %2937 = vmatprep.subr.bf16.mxu0 %v6091_v2  ;;  %2978 = vmatprep.subr.bf16.mxu1 %v6094_v46  ;;  %7036 = vst [vmem:[#allocation43_spill] sm:$0xff] %v6103_v60  ;;  %7037 = vst [vmem:[#allocation44_spill] sm:$0xff] %v6106_v54  ;;  %v6126_v46 = vld [vmem:[#allocation11 + $0x48] ss:$16 sps:$4 sm:$0xff]  }
 0x773   :  { %7043 = vst [vmem:[#allocation80_spill] sm:$0xff] %v6126_v46 }
 0x774   :  { %2855 = vmatmul.mubr.bf16.vlgmr.msra.gmra.mrb[88].mxu0 %v2711_v55  ;;  %2896 = vmatmul.mubr.bf16.vlgmr.msra.gmra.mrb[88].mxu1 %v2711_v55  ;;  %v6111_v55 = vld [vmem:[#allocation11 + $0x20] ss:$16 sps:$4 sm:$0xff]  }
 0x775   :  { %2938 = vmatpush1.bf16.msra.mxu0 %v6097_v1  ;;  %2979 = vmatpush1.bf16.msra.mxu1 %v6100_v26  ;;  %7038 = vst [vmem:[#allocation45_spill] sm:$0xff] %v6111_v55  ;;  %v6114_v1 = vld [vmem:[#allocation11 + $0x28] ss:$16 sps:$4 sm:$0xff]   ;;  %v6117_v26 = vld [vmem:[#allocation11 + $0x44] ss:$16 sps:$4 sm:$0xff]  }
 0x776   :  { %2939 = vmatprep.subr.bf16.mxu0 %v6103_v60  ;;  %2980 = vmatprep.subr.bf16.mxu1 %v6106_v54  ;;  %7039 = vst [vmem:[#allocation76_spill] sm:$0xff] %v6114_v1  ;;  %7040 = vst [vmem:[#allocation77_spill] sm:$0xff] %v6117_v26  ;;  %v6120_v60 = vld [vmem:[#allocation11 + $0x4c] ss:$16 sps:$4 sm:$0xff]   ;;  %v6123_v54 = vld [vmem:[#allocation11 + $0x40] ss:$16 sps:$4 sm:$0xff]  }
 0x777   :  { %2969 = vmatprep.mubr.bf16.mxu0 %v6703_v5  ;;  %3010 = vmatprep.mubr.bf16.mxu1 %v6703_v5  ;;  %7041 = vst [vmem:[#allocation78_spill] sm:$0xff] %v6120_v60  ;;  %7042 = vst [vmem:[#allocation79_spill] sm:$0xff] %v6123_v54 }
 0x779   :  { %2940 = vmatpush1.bf16.msra.mxu0 %v6111_v55  ;;  %2981 = vmatpush1.bf16.msra.mxu1 %v6114_v1  ;;  %v6129_v55 = vld [vmem:[#allocation11 + $0x64] ss:$16 sps:$4 sm:$0xff]   ;;  %v6132_v1 = vld [vmem:[#allocation11 + $0x6c] ss:$16 sps:$4 sm:$0xff]  }
 0x77a   :  { %2941 = vmatprep.subr.bf16.mxu0 %v6117_v26  ;;  %2982 = vmatprep.subr.bf16.mxu1 %v6120_v60  ;;  %7044 = vst [vmem:[#allocation46_spill] sm:$0xff] %v6129_v55  ;;  %7045 = vst [vmem:[#allocation89_spill] sm:$0xff] %v6132_v1  ;;  %v6135_v26 = vld [vmem:[#allocation11 + $0x60] ss:$16 sps:$4 sm:$0xff]   ;;  %v6138_v60 = vld [vmem:[#allocation11 + $0x68] ss:$16 sps:$4 sm:$0xff]  }
 0x77b   :  { %7046 = vst [vmem:[#allocation90_spill] sm:$0xff] %v6135_v26  ;;  %7047 = vst [vmem:[#allocation91_spill] sm:$0xff] %v6138_v60 }
 0x77d   :  { %2942 = vmatpush1.bf16.msra.mxu0 %v6123_v54  ;;  %2983 = vmatpush1.bf16.msra.mxu1 %v6126_v46  ;;  %v6141_v54 = vld [vmem:[#allocation11 + $0x84] ss:$16 sps:$4 sm:$0xff]   ;;  %v6144_v46 = vld [vmem:[#allocation11 + $0x8c] ss:$16 sps:$4 sm:$0xff]  }
 0x77e   :  { %2943 = vmatprep.subr.bf16.mxu0 %v6129_v55  ;;  %2984 = vmatprep.subr.bf16.mxu1 %v6132_v1  ;;  %7048 = vst [vmem:[#allocation92_spill] sm:$0xff] %v6141_v54  ;;  %7049 = vst [vmem:[#allocation47_spill] sm:$0xff] %v6144_v46  ;;  %v6147_v55 = vld [vmem:[#allocation11 + $0x80] ss:$16 sps:$4 sm:$0xff]   ;;  %v6150_v1 = vld [vmem:[#allocation11 + $0x88] ss:$16 sps:$4 sm:$0xff]  }
 0x77f   :  { %7050 = vst [vmem:[#allocation48_spill] sm:$0xff] %v6147_v55  ;;  %7051 = vst [vmem:[#allocation49_spill] sm:$0xff] %v6150_v1 }
 0x781   :  { %2944 = vmatpush1.bf16.msra.mxu0 %v6135_v26  ;;  %2985 = vmatpush1.bf16.msra.mxu1 %v6138_v60  ;;  %v6153_v26 = vld [vmem:[#allocation11 + $0xa4] ss:$16 sps:$4 sm:$0xff]   ;;  %v6156_v60 = vld [vmem:[#allocation11 + $0xac] ss:$16 sps:$4 sm:$0xff]  }
 0x782   :  { %2945 = vmatprep.subr.bf16.mxu0 %v6141_v54  ;;  %2986 = vmatprep.subr.bf16.mxu1 %v6144_v46  ;;  %7052 = vst [vmem:[#allocation50_spill] sm:$0xff] %v6153_v26  ;;  %7053 = vst [vmem:[#allocation51_spill] sm:$0xff] %v6156_v60  ;;  %v6159_v54 = vld [vmem:[#allocation11 + $0xa0] ss:$16 sps:$4 sm:$0xff]   ;;  %v6162_v46 = vld [vmem:[#allocation11 + $0xa8] ss:$16 sps:$4 sm:$0xff]  }
 0x783   :  { %7054 = vst [vmem:[#allocation52_spill] sm:$0xff] %v6159_v54  ;;  %7055 = vst [vmem:[#allocation53_spill] sm:$0xff] %v6162_v46 }
 0x785   :  { %2946 = vmatpush1.bf16.msra.mxu0 %v6147_v55  ;;  %2987 = vmatpush1.bf16.msra.mxu1 %v6150_v1  ;;  %v6165_v55 = vld [vmem:[#allocation11 + $0xc4] ss:$16 sps:$4 sm:$0xff]   ;;  %v6168_v1 = vld [vmem:[#allocation11 + $0xcc] ss:$16 sps:$4 sm:$0xff]  }
 0x786   :  { %2947 = vmatprep.subr.bf16.mxu0 %v6153_v26  ;;  %2988 = vmatprep.subr.bf16.mxu1 %v6156_v60  ;;  %7056 = vst [vmem:[#allocation54_spill] sm:$0xff] %v6165_v55  ;;  %7057 = vst [vmem:[#allocation55_spill] sm:$0xff] %v6168_v1  ;;  %v6171_v26 = vld [vmem:[#allocation11 + $0xc0] ss:$16 sps:$4 sm:$0xff]   ;;  %v6174_v60 = vld [vmem:[#allocation11 + $0xc8] ss:$16 sps:$4 sm:$0xff]  }
 0x787   :  { %7058 = vst [vmem:[#allocation56_spill] sm:$0xff] %v6171_v26  ;;  %7059 = vst [vmem:[#allocation57_spill] sm:$0xff] %v6174_v60 }
 0x789   :  { %2948 = vmatpush1.bf16.msra.mxu0 %v6159_v54  ;;  %2989 = vmatpush1.bf16.msra.mxu1 %v6162_v46  ;;  %v6177_v54 = vld [vmem:[#allocation11 + $0xe4] ss:$16 sps:$4 sm:$0xff]   ;;  %v6180_v46 = vld [vmem:[#allocation11 + $0xec] ss:$16 sps:$4 sm:$0xff]  }
 0x78a   :  { %2949 = vmatprep.subr.bf16.mxu0 %v6165_v55  ;;  %2990 = vmatprep.subr.bf16.mxu1 %v6168_v1  ;;  %7060 = vst [vmem:[#allocation58_spill] sm:$0xff] %v6177_v54  ;;  %7061 = vst [vmem:[#allocation59_spill] sm:$0xff] %v6180_v46  ;;  %v6183_v55 = vld [vmem:[#allocation11 + $0xe0] ss:$16 sps:$4 sm:$0xff]   ;;  %v6186_v1 = vld [vmem:[#allocation11 + $0xe8] ss:$16 sps:$4 sm:$0xff]  }
 0x78b   :  { %7062 = vst [vmem:[#allocation60_spill] sm:$0xff] %v6183_v55  ;;  %7063 = vst [vmem:[#allocation61_spill] sm:$0xff] %v6186_v1 }
 0x78d   :  { %2950 = vmatpush1.bf16.msra.mxu0 %v6171_v26  ;;  %2991 = vmatpush1.bf16.msra.mxu1 %v6174_v60  ;;  %v6189_v26 = vld [vmem:[#allocation9 + $0x4] ss:$16 sps:$4 sm:$0xff]   ;;  %v6192_v60 = vld [vmem:[#allocation9 + $0xc] ss:$16 sps:$4 sm:$0xff]  }
 0x78e   :  { %2951 = vmatprep.subr.bf16.mxu0 %v6177_v54  ;;  %2992 = vmatprep.subr.bf16.mxu1 %v6180_v46  ;;  %7064 = vst [vmem:[#allocation62_spill] sm:$0xff] %v6189_v26  ;;  %7065 = vst [vmem:[#allocation63_spill] sm:$0xff] %v6192_v60 }
 0x791   :  { %2952 = vmatpush1.bf16.msra.mxu0 %v6183_v55  ;;  %2993 = vmatpush1.bf16.msra.mxu1 %v6186_v1 }
 0x792   :  { %3020 = vmatprep.subr.bf16.mxu0 %v6189_v26  ;;  %3061 = vmatprep.subr.bf16.mxu1 %v6192_v60 }
 0x807   :  { %v2663_v54 = vpop.f32.mrb[80].mxu0  ;;  %v2704_v2 = vpop.f32.mrb[80].mxu1 }
 0x808   :  { %v2665_v63 = vpop.f32.mrb[81].mxu0  ;;  %v2706_v46 = vpop.f32.mrb[81].mxu1 }
 0x809   :  { %v2667_v37 = vpop.f32.mrb[82].mxu0  ;;  %v2708_v25 = vpop.f32.mrb[82].mxu1 }
 0x80a   :  { %v2668_v21 = vpop.f32.mrb[83].mxu0  ;;  %v2709_v55 = vpop.f32.mrb[83].mxu1 }
 0x827   :  { %v2746_v53 = vpop.f32.mrb[84].mxu0  ;;  %v2787_v62 = vpop.f32.mrb[84].mxu1 }
 0x828   :  { %v2747_v38 = vadd.f32 %v2746_v53, %v2663_v54  ;;  %v2788_v1 = vadd.f32 %v2787_v62, %v2704_v2  ;;  %v2748_v28 = vpop.f32.mrb[85].mxu0  ;;  %v2789_v59 = vpop.f32.mrb[85].mxu1  ;;  %v7066_v2 = vld [vmem:[#allocation97_spill] sm:$0xff] }
 0x829   :  { %v2749_v10 = vadd.f32 %v2748_v28, %v2665_v63  ;;  %v2790_v26 = vadd.f32 %v2789_v59, %v2706_v46  ;;  %v2750_v9 = vpop.f32.mrb[86].mxu0  ;;  %v2791_v45 = vpop.f32.mrb[86].mxu1 }
 0x82a   :  { %v2794_v60 = vadd.f32 %v2747_v38, %v5196_v14  ;;  %v2751_v44 = vpop.f32.mrb[87].mxu0  ;;  %v2792_v40 = vpop.f32.mrb[87].mxu1  ;;  %v2796_v62 = vadd.f32 %v2788_v1, %v5211_v27  ;;  %v7067_v1 = vld [vmem:[#allocation98_spill] sm:$0xff] }
 0x82b   :  { %v2795_v39 = vadd.f32 %v2749_v10, %v5200_v6  ;;  %v2797_v21 = vadd.f32 %v2790_v26, %v5206_v36 }
 0x82c   :  { %v3714_v37 = vmul.f32 -1.442695, %v2794_v60 }
 0x82d   :  { %v3715_v25 = vmul.f32 -1.442695, %v2795_v39  ;;  %v3716_v53 = vmul.f32 -1.442695, %v2797_v21 }
 0x82e   :  { %4117 = vpow2.f32 %v3714_v37 }
 0x82f   :  { %4119 = vpow2.f32 %v3715_v25 }
 0x830   :  { %4121 = vpow2.f32 %v3716_v53  ;;  %v7068_v53 = vld [vmem:[#allocation99_spill] sm:$0xff] }
 0x831   :  { %4123 = vtanh.f32 %v2796_v62 }
 0x838   :  { %v4118_v54 = vpop.eup %4117 }
 0x839   :  { %v4120_v28 = vpop.eup %4119  ;;  %v2801_v59 = vadd.f32 1.0, %v4118_v54  ;;  %v7069_v54 = vld [vmem:[#allocation100_spill] sm:$0xff] }
 0x83a   :  { %v2807_v45 = vadd.f32 1.0, %v4120_v28  ;;  %v4122_v40 = vpop.eup %4121 }
 0x83b   :  { %4125 = vrcp.f32 %v2801_v59  ;;  %v4124_v44 = vpop.eup %4123  ;;  %v2814_v38 = vadd.f32 1.0, %v4122_v40 }
 0x83c   :  { %4127 = vrcp.f32 %v2807_v45 }
 0x83d   :  { %4129 = vrcp.f32 %v2814_v38 }
 0x845   :  { %v4126_v9 = vpop.eup %4125 }
 0x846   :  { %v4128_v10 = vpop.eup %4127  ;;  %v2818_v39 = vmul.f32 %v4126_v9, %v4124_v44 }
 0x847   :  { %v2817_v63 = vmul.f32 %v4128_v10, %v5956_v15  ;;  %v2856_v26 = vpop.f32.mrb[88].mxu0  ;;  %v2897_v60 = vpop.f32.mrb[88].mxu1 }
 0x848   :  { %v2908_v46 = vadd.f32 %v2856_v26, %v7066_v2  ;;  %v2910_v55 = vadd.f32 %v2897_v60, %v7067_v1  ;;  %v2858_v37 = vpop.f32.mrb[89].mxu0  ;;  %v2899_v25 = vpop.f32.mrb[89].mxu1 }
 0x849   :  { %v6202_v21 = vadd.f32 %v2818_v39, %v2817_v63  ;;  %v2909_v62 = vadd.f32 %v2858_v37, %v7068_v53  ;;  %v2911_v28 = vadd.f32 %v2899_v25, %v7069_v54  ;;  %v2860_v59 = vpop.f32.mrb[90].mxu0  ;;  %v2901_v45 = vpop.f32.mrb[90].mxu1 }
 0x84a   :  { %v3717_v40 = vmul.f32 -1.442695, %v2908_v46  ;;  %v2861_v44 = vpop.f32.mrb[91].mxu0  ;;  %v2902_v15 = vpop.f32.mrb[91].mxu1  ;;  %v7070_v45 = vld [vmem:[#allocation30_spill] sm:$0xff] }
 0x84b   :  { %v3718_v9 = vmul.f32 -1.442695, %v2909_v62  ;;  %4131 = vtanh.f32 %v6202_v21  ;;  %v3719_v10 = vmul.f32 -1.442695, %v2911_v28  ;;  %v4130_v26 = vpop.eup %4129  ;;  %v7072_v44 = vld [vmem:[#allocation32_spill] sm:$0xff]  ;;  %v7073_v15 = vld [vmem:[#allocation33_spill] sm:$0xff] }
 0x84c   :  { %4133 = vpow2.f32 %v3717_v40  ;;  %v7071_v40 = vld [vmem:[#allocation31_spill] sm:$0xff] }
 0x84d   :  { %4135 = vpow2.f32 %v3718_v9  ;;  %v7075_v9 = vld [vmem:[#allocation35_spill] sm:$0xff] }
 0x84e   :  { %4137 = vpow2.f32 %v3719_v10  ;;  %v7076_v10 = vld [vmem:[#allocation36_spill] sm:$0xff] }
 0x84f   :  { %4139 = vtanh.f32 %v2910_v55 }
 0x855   :  { %v4132_v60 = vpop.eup %4131 }
 0x856   :  { %v4134_v39 = vpop.eup %4133  ;;  %v2821_v63 = vmul.f32 %v4132_v60, %v4130_v26  ;;  %v7077_v26 = vld [vmem:[#allocation37_spill] sm:$0xff]  ;;  %v7078_v60 = vld [vmem:[#allocation38_spill] sm:$0xff] }
 0x857   :  { %v4136_v2 = vpop.eup %4135  ;;  %v2915_v1 = vadd.f32 1.0, %v4134_v39 }
 0x858   :  { %v2921_v37 = vadd.f32 1.0, %v4136_v2  ;;  %v2936_v25 = vpack.c.bf16 %v2821_v63, %v2821_v63  ;;  %v4138_v38 = vpop.eup %4137 }
 0x859   :  { %4141 = vrcp.f32 %v2915_v1  ;;  %v4140_v46 = vpop.eup %4139  ;;  %v2928_v54 = vadd.f32 1.0, %v4138_v38  ;;  %v7095_v38 = vld [vmem:[#allocation28_spill] sm:$0xff] }
 0x85a   :  { %4143 = vrcp.f32 %v2921_v37  ;;  %2970 = vmatmul.mubr.bf16.vlgmr.msra.gmra.mrb[92].mxu0 %v2936_v25  ;;  %3011 = vmatmul.mubr.bf16.vlgmr.msra.gmra.mrb[92].mxu1 %v2936_v25  ;;  %v7093_v37 = vld [vmem:[#allocation26_spill] sm:$0xff]  ;;  %v7094_v25 = vld [vmem:[#allocation27_spill] sm:$0xff] }
 0x85b   :  { %3021 = vmatpush1.bf16.msra.mxu0 %v5961_v8  ;;  %3062 = vmatpush1.bf16.msra.mxu1 %v5964_v56  ;;  %4145 = vrcp.f32 %v2928_v54  ;;  %v7100_v54 = vld [vmem:[#allocation42_spill] sm:$0xff] }
 0x85c   :  { %3022 = vmatprep.subr.bf16.mxu0 %v5967_v42  ;;  %3063 = vmatprep.subr.bf16.mxu1 %v5970_v47 }
 0x85d   :  { %3052 = vmatprep.mubr.bf16.mxu0 %v6703_v5  ;;  %3093 = vmatprep.mubr.bf16.mxu1 %v6703_v5 }
 0x85f   :  { %3023 = vmatpush1.bf16.msra.mxu0 %v5975_v43  ;;  %3064 = vmatpush1.bf16.msra.mxu1 %v5978_v48 }
 0x860   :  { %3024 = vmatprep.subr.bf16.mxu0 %v5981_v24  ;;  %3065 = vmatprep.subr.bf16.mxu1 %v5984_v32 }
 0x863   :  { %v4142_v55 = vpop.eup %4141  ;;  %3025 = vmatpush1.bf16.msra.mxu0 %v5987_v61  ;;  %3066 = vmatpush1.bf16.msra.mxu1 %v5990_v0 }
 0x864   :  { %v4144_v53 = vpop.eup %4143  ;;  %v2932_v62 = vmul.f32 %v4142_v55, %v4140_v46  ;;  %3026 = vmatprep.subr.bf16.mxu0 %v5993_v16  ;;  %3067 = vmatprep.subr.bf16.mxu1 %v5996_v3  ;;  %v7096_v46 = vld [vmem:[#allocation29_spill] sm:$0xff]  ;;  %v7097_v55 = vld [vmem:[#allocation39_spill] sm:$0xff] }
 0x865   :  { %v2931_v28 = vmul.f32 %v4144_v53, %v6000_v11  ;;  %v7074_v11 = vld [vmem:[#allocation34_spill] sm:$0xff]  ;;  %v4146_v39 = vpop.eup %4145  ;;  %v7098_v53 = vld [vmem:[#allocation40_spill] sm:$0xff] }
 0x867   :  { %v6222_v59 = vadd.f32 %v2932_v62, %v2931_v28  ;;  %3027 = vmatpush1.bf16.msra.mxu0 %v6002_v29  ;;  %3068 = vmatpush1.bf16.msra.mxu1 %v6005_v4  ;;  %v7099_v62 = vld [vmem:[#allocation41_spill] sm:$0xff]  ;;  %v7101_v28 = vld [vmem:[#allocation43_spill] sm:$0xff] }
 0x868   :  { %3028 = vmatprep.subr.bf16.mxu0 %v6008_v58  ;;  %3069 = vmatprep.subr.bf16.mxu1 %v7070_v45 }
 0x869   :  { %4147 = vtanh.f32 %v6222_v59 }
 0x86b   :  { %3029 = vmatpush1.bf16.msra.mxu0 %v7071_v40  ;;  %3070 = vmatpush1.bf16.msra.mxu1 %v7072_v44 }
 0x86c   :  { %3030 = vmatprep.subr.bf16.mxu0 %v7073_v15  ;;  %3071 = vmatprep.subr.bf16.mxu1 %v7074_v11 }
 0x86f   :  { %3031 = vmatpush1.bf16.msra.mxu0 %v7075_v9  ;;  %3072 = vmatpush1.bf16.msra.mxu1 %v7076_v10 }
 0x870   :  { %3032 = vmatprep.subr.bf16.mxu0 %v7077_v26  ;;  %3073 = vmatprep.subr.bf16.mxu1 %v7078_v60 }
 0x873   :  { %v4148_v63 = vpop.eup %4147  ;;  %3033 = vmatpush1.bf16.msra.mxu0 %v6039_v51  ;;  %3074 = vmatpush1.bf16.msra.mxu1 %v6042_v7 }
 0x874   :  { %3034 = vmatprep.subr.bf16.mxu0 %v6045_v52  ;;  %3075 = vmatprep.subr.bf16.mxu1 %v6048_v50  ;;  %v2935_v2 = vmul.f32 %v4148_v63, %v4146_v39  ;;  %v7102_v39 = vld [vmem:[#allocation44_spill] sm:$0xff]  ;;  %v7103_v63 = vld [vmem:[#allocation45_spill] sm:$0xff] }
 0x876   :  { %v3019_v1 = vpack.c.bf16 %v2935_v2, %v2935_v2  ;;  %v7104_v2 = vld [vmem:[#allocation76_spill] sm:$0xff] }
 0x877   :  { %3035 = vmatpush1.bf16.msra.mxu0 %v6051_v41  ;;  %3076 = vmatpush1.bf16.msra.mxu1 %v6054_v57 }
 0x878   :  { %3130 = vmatprep.subr.bf16.mxu0 %v5811_v12  ;;  %3171 = vmatprep.subr.bf16.mxu1 %v5814_v13  ;;  %v7079_v12 = vld [vmem:[#allocation81_spill] sm:$0xff]  ;;  %v7080_v13 = vld [vmem:[#allocation82_spill] sm:$0xff] }
 0x87a   :  { %3053 = vmatmul.mubr.bf16.vlgmr.msra.gmra.mrb[96].mxu0 %v3019_v1  ;;  %3094 = vmatmul.mubr.bf16.vlgmr.msra.gmra.mrb[96].mxu1 %v3019_v1 }
 0x87b   :  { %3131 = vmatpush1.bf16.msra.mxu0 %v5819_v17  ;;  %3172 = vmatpush1.bf16.msra.mxu1 %v5822_v18  ;;  %v7081_v17 = vld [vmem:[#allocation83_spill] sm:$0xff]  ;;  %v7082_v18 = vld [vmem:[#allocation84_spill] sm:$0xff] }
 0x87c   :  { %3132 = vmatprep.subr.bf16.mxu0 %v5825_v19  ;;  %3173 = vmatprep.subr.bf16.mxu1 %v5828_v20  ;;  %v7083_v19 = vld [vmem:[#allocation85_spill] sm:$0xff]  ;;  %v7084_v20 = vld [vmem:[#allocation86_spill] sm:$0xff] }
 0x87d   :  { %3162 = vmatprep.mubr.bf16.mxu0 %v6703_v5  ;;  %3203 = vmatprep.mubr.bf16.mxu1 %v6703_v5 }
 0x87f   :  { %3133 = vmatpush1.bf16.msra.mxu0 %v5833_v49  ;;  %3174 = vmatpush1.bf16.msra.mxu1 %v5836_v33  ;;  %v7085_v49 = vld [vmem:[#allocation87_spill] sm:$0xff]  ;;  %v7086_v33 = vld [vmem:[#allocation88_spill] sm:$0xff] }
 0x880   :  { %3134 = vmatprep.subr.bf16.mxu0 %v5839_v22  ;;  %3175 = vmatprep.subr.bf16.mxu1 %v5842_v23  ;;  %v7087_v22 = vld [vmem:[#allocation20_spill] sm:$0xff]  ;;  %v7088_v23 = vld [vmem:[#allocation21_spill] sm:$0xff] }
 0x883   :  { %3135 = vmatpush1.bf16.msra.mxu0 %v5845_v30  ;;  %3176 = vmatpush1.bf16.msra.mxu1 %v5848_v31  ;;  %v7089_v30 = vld [vmem:[#allocation22_spill] sm:$0xff]  ;;  %v7090_v31 = vld [vmem:[#allocation23_spill] sm:$0xff] }
 0x884   :  { %3136 = vmatprep.subr.bf16.mxu0 %v5851_v34  ;;  %3177 = vmatprep.subr.bf16.mxu1 %v5854_v35  ;;  %v7091_v34 = vld [vmem:[#allocation24_spill] sm:$0xff]  ;;  %v7092_v35 = vld [vmem:[#allocation25_spill] sm:$0xff] }
 0x887   :  { %3137 = vmatpush1.bf16.msra.mxu0 %v7079_v12  ;;  %3178 = vmatpush1.bf16.msra.mxu1 %v7080_v13  ;;  %v7105_v12 = vld [vmem:[#allocation77_spill] sm:$0xff]  ;;  %v7106_v13 = vld [vmem:[#allocation78_spill] sm:$0xff] }
 0x888   :  { %3138 = vmatprep.subr.bf16.mxu0 %v7081_v17  ;;  %3179 = vmatprep.subr.bf16.mxu1 %v7082_v18  ;;  %v7108_v17 = vld [vmem:[#allocation80_spill] sm:$0xff]  ;;  %v7109_v18 = vld [vmem:[#allocation46_spill] sm:$0xff] }
 0x88b   :  { %3139 = vmatpush1.bf16.msra.mxu0 %v7083_v19  ;;  %3180 = vmatpush1.bf16.msra.mxu1 %v7084_v20  ;;  %v7110_v19 = vld [vmem:[#allocation89_spill] sm:$0xff]  ;;  %v7111_v20 = vld [vmem:[#allocation90_spill] sm:$0xff] }
 0x88c   :  { %3140 = vmatprep.subr.bf16.mxu0 %v7085_v49  ;;  %3181 = vmatprep.subr.bf16.mxu1 %v7086_v33  ;;  %v7112_v49 = vld [vmem:[#allocation91_spill] sm:$0xff]  ;;  %v7113_v33 = vld [vmem:[#allocation92_spill] sm:$0xff] }
 0x88f   :  { %3141 = vmatpush1.bf16.msra.mxu0 %v7087_v22  ;;  %3182 = vmatpush1.bf16.msra.mxu1 %v7088_v23  ;;  %v7114_v22 = vld [vmem:[#allocation47_spill] sm:$0xff]  ;;  %v7115_v23 = vld [vmem:[#allocation48_spill] sm:$0xff] }
 0x890   :  { %3142 = vmatprep.subr.bf16.mxu0 %v7089_v30  ;;  %3183 = vmatprep.subr.bf16.mxu1 %v7090_v31  ;;  %v7116_v30 = vld [vmem:[#allocation49_spill] sm:$0xff]  ;;  %v7117_v31 = vld [vmem:[#allocation50_spill] sm:$0xff] }
 0x893   :  { %3143 = vmatpush1.bf16.msra.mxu0 %v7091_v34  ;;  %3184 = vmatpush1.bf16.msra.mxu1 %v7092_v35  ;;  %v7118_v34 = vld [vmem:[#allocation51_spill] sm:$0xff]  ;;  %v7119_v35 = vld [vmem:[#allocation52_spill] sm:$0xff] }
 0x894   :  { %3144 = vmatprep.subr.bf16.mxu0 %v7093_v37  ;;  %3185 = vmatprep.subr.bf16.mxu1 %v7094_v25  ;;  %v7120_v37 = vld [vmem:[#allocation53_spill] sm:$0xff]  ;;  %v7121_v25 = vld [vmem:[#allocation54_spill] sm:$0xff] }
 0x897   :  { %3145 = vmatpush1.bf16.msra.mxu0 %v7095_v38  ;;  %3186 = vmatpush1.bf16.msra.mxu1 %v7096_v46  ;;  %v7122_v38 = vld [vmem:[#allocation55_spill] sm:$0xff]  ;;  %v7123_v46 = vld [vmem:[#allocation56_spill] sm:$0xff] }
 0x898   :  { %3245 = vmatprep.subr.bf16.mxu0 %v7097_v55  ;;  %3286 = vmatprep.subr.bf16.mxu1 %v7098_v53  ;;  %v7124_v55 = vld [vmem:[#allocation57_spill] sm:$0xff]  ;;  %v7125_v53 = vld [vmem:[#allocation58_spill] sm:$0xff] }
 0x89a   :  { %3163 = vmatmul.mubr.bf16.vlgmr.msra.gmra.mrb[100].mxu0 %v3019_v1  ;;  %3204 = vmatmul.mubr.bf16.vlgmr.msra.gmra.mrb[100].mxu1 %v3019_v1  ;;  %v7107_v1 = vld [vmem:[#allocation79_spill] sm:$0xff] }
 0x89b   :  { %3246 = vmatpush1.bf16.msra.mxu0 %v7099_v62  ;;  %3287 = vmatpush1.bf16.msra.mxu1 %v7100_v54  ;;  %v7126_v62 = vld [vmem:[#allocation59_spill] sm:$0xff]  ;;  %v7127_v54 = vld [vmem:[#allocation60_spill] sm:$0xff] }
 0x89c   :  { %3247 = vmatprep.subr.bf16.mxu0 %v7101_v28  ;;  %3288 = vmatprep.subr.bf16.mxu1 %v7102_v39  ;;  %v7128_v28 = vld [vmem:[#allocation61_spill] sm:$0xff]  ;;  %v7129_v39 = vld [vmem:[#allocation62_spill] sm:$0xff] }
 0x89d   :  { %3277 = vmatprep.mubr.bf16.mxu0 %v6703_v5  ;;  %3318 = vmatprep.mubr.bf16.mxu1 %v6703_v5 }
 0x89f   :  { %3248 = vmatpush1.bf16.msra.mxu0 %v7103_v63  ;;  %3289 = vmatpush1.bf16.msra.mxu1 %v7104_v2  ;;  %v7130_v63 = vld [vmem:[#allocation63_spill] sm:$0xff] }
 0x8a0   :  { %3249 = vmatprep.subr.bf16.mxu0 %v7105_v12  ;;  %3290 = vmatprep.subr.bf16.mxu1 %v7106_v13 }
 0x8a3   :  { %3250 = vmatpush1.bf16.msra.mxu0 %v7107_v1  ;;  %3291 = vmatpush1.bf16.msra.mxu1 %v7108_v17 }
 0x8a4   :  { %3251 = vmatprep.subr.bf16.mxu0 %v7109_v18  ;;  %3292 = vmatprep.subr.bf16.mxu1 %v7110_v19 }
 0x8a7   :  { %3252 = vmatpush1.bf16.msra.mxu0 %v7111_v20  ;;  %3293 = vmatpush1.bf16.msra.mxu1 %v7112_v49 }
 0x8a8   :  { %3253 = vmatprep.subr.bf16.mxu0 %v7113_v33  ;;  %3294 = vmatprep.subr.bf16.mxu1 %v7114_v22 }
 0x8ab   :  { %3254 = vmatpush1.bf16.msra.mxu0 %v7115_v23  ;;  %3295 = vmatpush1.bf16.msra.mxu1 %v7116_v30 }
 0x8ac   :  { %3255 = vmatprep.subr.bf16.mxu0 %v7117_v31  ;;  %3296 = vmatprep.subr.bf16.mxu1 %v7118_v34 }
 0x8af   :  { %3256 = vmatpush1.bf16.msra.mxu0 %v7119_v35  ;;  %3297 = vmatpush1.bf16.msra.mxu1 %v7120_v37 }
 0x8b0   :  { %3257 = vmatprep.subr.bf16.mxu0 %v7121_v25  ;;  %3298 = vmatprep.subr.bf16.mxu1 %v7122_v38 }
 0x8b3   :  { %3258 = vmatpush1.bf16.msra.mxu0 %v7123_v46  ;;  %3299 = vmatpush1.bf16.msra.mxu1 %v7124_v55 }
 0x8b4   :  { %3259 = vmatprep.subr.bf16.mxu0 %v7125_v53  ;;  %3300 = vmatprep.subr.bf16.mxu1 %v7126_v62 }
 0x8b7   :  { %3260 = vmatpush1.bf16.msra.mxu0 %v7127_v54  ;;  %3301 = vmatpush1.bf16.msra.mxu1 %v7128_v28 }
 0x8b8   :  { %3328 = vmatprep.subr.bf16.mxu0 %v7129_v39  ;;  %3369 = vmatprep.subr.bf16.mxu1 %v7130_v63 }
 0x92d   :  { %v2971_v2 = vpop.f32.mrb[92].mxu0  ;;  %v3012_v12 = vpop.f32.mrb[92].mxu1 }
 0x92e   :  { %v2973_v13 = vpop.f32.mrb[93].mxu0  ;;  %v3014_v1 = vpop.f32.mrb[93].mxu1 }
 0x92f   :  { %v2975_v17 = vpop.f32.mrb[94].mxu0  ;;  %v3016_v18 = vpop.f32.mrb[94].mxu1 }
 0x930   :  { %v2976_v19 = vpop.f32.mrb[95].mxu0  ;;  %v3017_v20 = vpop.f32.mrb[95].mxu1 }
 0x94d   :  { %v3054_v49 = vpop.f32.mrb[96].mxu0  ;;  %v3095_v33 = vpop.f32.mrb[96].mxu1 }
 0x94e   :  { %v3055_v22 = vadd.f32 %v3054_v49, %v2971_v2  ;;  %v3096_v23 = vadd.f32 %v3095_v33, %v3012_v12  ;;  %v3056_v30 = vpop.f32.mrb[97].mxu0  ;;  %v3097_v31 = vpop.f32.mrb[97].mxu1 }
 0x94f   :  { %v3057_v34 = vadd.f32 %v3056_v30, %v2973_v13  ;;  %v3098_v35 = vadd.f32 %v3097_v31, %v3014_v1  ;;  %v3058_v37 = vpop.f32.mrb[98].mxu0  ;;  %v3099_v25 = vpop.f32.mrb[98].mxu1 }
 0x950   :  { %v3102_v38 = vadd.f32 %v3055_v22, %v5196_v14  ;;  %v3059_v46 = vpop.f32.mrb[99].mxu0  ;;  %v3100_v55 = vpop.f32.mrb[99].mxu1  ;;  %v3104_v63 = vadd.f32 %v3096_v23, %v5211_v27 }
 0x951   :  { %v3103_v53 = vadd.f32 %v3057_v34, %v5200_v6  ;;  %v3105_v28 = vadd.f32 %v3098_v35, %v5206_v36  ;;  %v7131_v34 = vld [vmem:[#allocation101_spill] sm:$0xff]  ;;  %v7132_v35 = vld [vmem:[#allocation102_spill] sm:$0xff]  ;;  %v7133_v55 = vld [vmem:[#allocation103_spill] sm:$0xff] }
 0x952   :  { %v3720_v62 = vmul.f32 -1.442695, %v3102_v38 }
 0x953   :  { %v3721_v54 = vmul.f32 -1.442695, %v3103_v53  ;;  %v3722_v39 = vmul.f32 -1.442695, %v3105_v28 }
 0x954   :  { %4149 = vpow2.f32 %v3720_v62  ;;  %v7134_v62 = vld [vmem:[#allocation104_spill] sm:$0xff] }
 0x955   :  { %4151 = vpow2.f32 %v3721_v54 }
 0x956   :  { %4153 = vpow2.f32 %v3722_v39 }
 0x957   :  { %4155 = vtanh.f32 %v3104_v63 }
 0x95e   :  { %v4150_v2 = vpop.eup %4149 }
 0x95f   :  { %v4152_v12 = vpop.eup %4151  ;;  %v3109_v13 = vadd.f32 1.0, %v4150_v2 }
 0x960   :  { %v3115_v1 = vadd.f32 1.0, %v4152_v12  ;;  %v4154_v17 = vpop.eup %4153 }
 0x961   :  { %4157 = vrcp.f32 %v3109_v13  ;;  %v4156_v18 = vpop.eup %4155  ;;  %v3122_v33 = vadd.f32 1.0, %v4154_v17 }
 0x962   :  { %4159 = vrcp.f32 %v3115_v1 }
 0x963   :  { %4161 = vrcp.f32 %v3122_v33 }
 0x96b   :  { %v4158_v19 = vpop.eup %4157 }
 0x96c   :  { %v4160_v20 = vpop.eup %4159  ;;  %v3126_v49 = vmul.f32 %v4158_v19, %v4156_v18 }
 0x96d   :  { %v3125_v22 = vmul.f32 %v4160_v20, %v6202_v21  ;;  %v3164_v30 = vpop.f32.mrb[100].mxu0  ;;  %v3205_v31 = vpop.f32.mrb[100].mxu1 }
 0x96e   :  { %v3216_v23 = vadd.f32 %v3164_v30, %v7131_v34  ;;  %v3218_v37 = vadd.f32 %v3205_v31, %v7132_v35  ;;  %v3166_v25 = vpop.f32.mrb[101].mxu0  ;;  %v3207_v38 = vpop.f32.mrb[101].mxu1 }
 0x96f   :  { %v6320_v46 = vadd.f32 %v3126_v49, %v3125_v22  ;;  %v3217_v53 = vadd.f32 %v3166_v25, %v7133_v55  ;;  %v3219_v54 = vadd.f32 %v3207_v38, %v7134_v62  ;;  %v3168_v28 = vpop.f32.mrb[102].mxu0  ;;  %v3209_v39 = vpop.f32.mrb[102].mxu1 }
 0x970   :  { %v3723_v63 = vmul.f32 -1.442695, %v3216_v23  ;;  %v3169_v2 = vpop.f32.mrb[103].mxu0  ;;  %v3210_v21 = vpop.f32.mrb[103].mxu1 }
 0x971   :  { %v3724_v12 = vmul.f32 -1.442695, %v3217_v53  ;;  %4163 = vtanh.f32 %v6320_v46  ;;  %v3725_v13 = vmul.f32 -1.442695, %v3219_v54  ;;  %v4162_v1 = vpop.eup %4161 }
 0x972   :  { %4165 = vpow2.f32 %v3723_v63 }
 0x973   :  { %4167 = vpow2.f32 %v3724_v12 }
 0x974   :  { %4169 = vpow2.f32 %v3725_v13 }
 0x975   :  { %4171 = vtanh.f32 %v3218_v37 }
 0x97b   :  { %v4164_v17 = vpop.eup %4163 }
 0x97c   :  { %v4166_v18 = vpop.eup %4165  ;;  %v3129_v19 = vmul.f32 %v4164_v17, %v4162_v1 }
 0x97d   :  { %v4168_v20 = vpop.eup %4167  ;;  %v3223_v49 = vadd.f32 1.0, %v4166_v18 }
 0x97e   :  { %v3229_v22 = vadd.f32 1.0, %v4168_v20  ;;  %v3244_v30 = vpack.c.bf16 %v3129_v19, %v3129_v19  ;;  %v4170_v33 = vpop.eup %4169 }
 0x97f   :  { %4173 = vrcp.f32 %v3223_v49 }
 0x980   :  { %4175 = vrcp.f32 %v3229_v22  ;;  %3278 = vmatmul.mubr.bf16.vlgmr.msra.gmra.mrb[104].mxu0 %v3244_v30  ;;  %3319 = vmatmul.mubr.bf16.vlgmr.msra.gmra.mrb[104].mxu1 %v3244_v30 }
 0x981   :  { %3329 = vmatpush1.bf16.msra.mxu0 %v5961_v8  ;;  %3370 = vmatpush1.bf16.msra.mxu1 %v5964_v56  ;;  %v4172_v8 = vpop.eup %4171 }
 0x982   :  { %3330 = vmatprep.subr.bf16.mxu0 %v5967_v42  ;;  %3371 = vmatprep.subr.bf16.mxu1 %v5970_v47  ;;  %v3236_v47 = vadd.f32 1.0, %v4170_v33 }
 0x983   :  { %3360 = vmatprep.mubr.bf16.mxu0 %v6703_v5  ;;  %3401 = vmatprep.mubr.bf16.mxu1 %v6703_v5 }
 0x984   :  { %4177 = vrcp.f32 %v3236_v47 }
 0x985   :  { %3331 = vmatpush1.bf16.msra.mxu0 %v5975_v43  ;;  %3372 = vmatpush1.bf16.msra.mxu1 %v5978_v48 }
 0x986   :  { %3332 = vmatprep.subr.bf16.mxu0 %v5981_v24  ;;  %3373 = vmatprep.subr.bf16.mxu1 %v5984_v32 }
 0x989   :  { %v4174_v31 = vpop.eup %4173  ;;  %3333 = vmatpush1.bf16.msra.mxu0 %v5987_v61  ;;  %3374 = vmatpush1.bf16.msra.mxu1 %v5990_v0  ;;  %v3933_v0 = vld [vmem:[%s6409_s7] sm:$0xff]  }
 0x98a   :  { %v4176_v56 = vpop.eup %4175  ;;  %v3240_v42 = vmul.f32 %v4174_v31, %v4172_v8  ;;  %3334 = vmatprep.subr.bf16.mxu0 %v5993_v16  ;;  %3375 = vmatprep.subr.bf16.mxu1 %v5996_v3  ;;  %v4562_v16 = vmov 0.0   ;;  %v3934_v3 = vld [vmem:[%s6409_s7 + $0x8] sm:$0xff]   ;;  %v3729_v8 = vld [vmem:[%s6410_s8] ss:$0 sm:$0xff] }
 0x98b   :  { %v3239_v5 = vmul.f32 %v4176_v56, %v6222_v59 }
 0x98d   :  { %v3241_v43 = vadd.f32 %v3240_v42, %v3239_v5  ;;  %3335 = vmatpush1.bf16.msra.mxu0 %v6002_v29  ;;  %3376 = vmatpush1.bf16.msra.mxu1 %v6005_v4  ;;  %v3935_v29 = vld [vmem:[%s6409_s7 + $0x10] sm:$0xff]   ;;  %v3936_v4 = vld [vmem:[%s6409_s7 + $0x18] sm:$0xff]  }
 0x98e   :  { %3336 = vmatprep.subr.bf16.mxu0 %v6008_v58  ;;  %3377 = vmatprep.subr.bf16.mxu1 %v7070_v45  ;;  %v4178_v48 = vpop.eup %4177  ;;  %v3937_v58 = vld [vmem:[%s6409_s7 + $0x20] sm:$0xff]  }
 0x98f   :  { %4179 = vtanh.f32 %v3241_v43 }
 0x991   :  { %3337 = vmatpush1.bf16.msra.mxu0 %v7071_v40  ;;  %3378 = vmatpush1.bf16.msra.mxu1 %v7072_v44 }
 0x992   :  { %3338 = vmatprep.subr.bf16.mxu0 %v7073_v15  ;;  %3379 = vmatprep.subr.bf16.mxu1 %v7074_v11 }
 0x995   :  { %3339 = vmatpush1.bf16.msra.mxu0 %v7075_v9  ;;  %3380 = vmatpush1.bf16.msra.mxu1 %v7076_v10 }
 0x996   :  { %3340 = vmatprep.subr.bf16.mxu0 %v7077_v26  ;;  %3381 = vmatprep.subr.bf16.mxu1 %v7078_v60 }
 0x999   :  { %v4180_v24 = vpop.eup %4179  ;;  %3341 = vmatpush1.bf16.msra.mxu0 %v6039_v51  ;;  %3382 = vmatpush1.bf16.msra.mxu1 %v6042_v7  ;;  %v3940_v51 = vld [vmem:[%s6409_s7 + $0x38] sm:$0xff]  }
 0x99a   :  { %3342 = vmatprep.subr.bf16.mxu0 %v6045_v52  ;;  %3383 = vmatprep.subr.bf16.mxu1 %v6048_v50  ;;  %v3243_v32 = vmul.f32 %v4180_v24, %v4178_v48 }
 0x99c   :  { %v3327_v61 = vpack.c.bf16 %v3243_v32, %v3243_v32 }
 0x99d   :  { %3343 = vmatpush1.bf16.msra.mxu0 %v6051_v41  ;;  %3384 = vmatpush1.bf16.msra.mxu1 %v6054_v57  ;;  %v3938_v57 = vld [vmem:[%s6409_s7 + $0x28] sm:$0xff]   ;;  %v3939_v41 = vld [vmem:[%s6409_s7 + $0x30] sm:$0xff]  }
 0x99e   :  { %3747 = vmatprep.subr.bf16.mxu0 %v4562_v16 }
 0x9a0   :  { %3361 = vmatmul.mubr.bf16.vlgmr.msra.gmra.mrb[108].mxu0 %v3327_v61  ;;  %3402 = vmatmul.mubr.bf16.vlgmr.msra.gmra.mrb[108].mxu1 %v3327_v61 }
 0x9a1   :  { %3748 = vmatpush3.bf16.msra.mxu0 %v3933_v0  ;;  %3763 = vmatprep.mubr.msk.bf16.mxu0 %vm4563_vm1, %v4562_v16 }
 0x9a2   :  { %3749 = vmatprep.subr.bf16.mxu0 %v4562_v16 }
 0x9a5   :  { %3750 = vmatpush3.bf16.msra.mxu0 %v3934_v3 }
 0x9a6   :  { %3751 = vmatprep.subr.bf16.mxu0 %v4562_v16 }
 0x9a9   :  { %3752 = vmatpush3.bf16.msra.mxu0 %v3935_v29 }
 0x9aa   :  { %3753 = vmatprep.subr.bf16.mxu0 %v4562_v16 }
 0x9ad   :  { %3754 = vmatpush3.bf16.msra.mxu0 %v3936_v4 }
 0x9ae   :  { %3755 = vmatprep.subr.bf16.mxu0 %v4562_v16 }
 0x9b1   :  { %3756 = vmatpush3.bf16.msra.mxu0 %v3937_v58 }
 0x9b2   :  { %3757 = vmatprep.subr.bf16.mxu0 %v4562_v16 }
 0x9b5   :  { %3758 = vmatpush3.bf16.msra.mxu0 %v3938_v57 }
 0x9b6   :  { %3759 = vmatprep.subr.bf16.mxu0 %v4562_v16 }
 0x9b9   :  { %3760 = vmatpush3.bf16.msra.mxu0 %v3939_v41 }
 0x9ba   :  { %3761 = vmatprep.subr.bf16.mxu0 %v4562_v16 }
 0x9bd   :  { %3762 = vmatpush3.bf16.msra.mxu0 %v3940_v51 }
 0xa53   :  { %v3279_v7 = vpop.f32.mrb[104].mxu0  ;;  %v3320_v52 = vpop.f32.mrb[104].mxu1 }
 0xa54   :  { %v3281_v50 = vpop.f32.mrb[105].mxu0  ;;  %v3322_v59 = vpop.f32.mrb[105].mxu1 }
 0xa55   :  { %v3283_v45 = vpop.f32.mrb[106].mxu0  ;;  %v3324_v40 = vpop.f32.mrb[106].mxu1 }
 0xa56   :  { %v3284_v44 = vpop.f32.mrb[107].mxu0  ;;  %v3325_v15 = vpop.f32.mrb[107].mxu1 }
 0xa73   :  { %v3362_v11 = vpop.f32.mrb[108].mxu0  ;;  %v3403_v9 = vpop.f32.mrb[108].mxu1 }
 0xa74   :  { %v3363_v10 = vadd.f32 %v3362_v11, %v3279_v7  ;;  %v3404_v26 = vadd.f32 %v3403_v9, %v3320_v52  ;;  %v3364_v60 = vpop.f32.mrb[109].mxu0  ;;  %v3405_v34 = vpop.f32.mrb[109].mxu1 }
 0xa75   :  { %v3365_v23 = vadd.f32 %v3364_v60, %v3281_v50  ;;  %v3406_v35 = vadd.f32 %v3405_v34, %v3322_v59  ;;  %v3366_v37 = vpop.f32.mrb[110].mxu0  ;;  %v3407_v25 = vpop.f32.mrb[110].mxu1 }
 0xa76   :  { %v3410_v38 = vadd.f32 %v3363_v10, %v5196_v14  ;;  %v3367_v55 = vpop.f32.mrb[111].mxu0  ;;  %v3408_v53 = vpop.f32.mrb[111].mxu1  ;;  %v3412_v2 = vadd.f32 %v3404_v26, %v5211_v27 }
 0xa77   :  { %v3411_v62 = vadd.f32 %v3365_v23, %v5200_v6  ;;  %v3413_v39 = vadd.f32 %v3406_v35, %v5206_v36 }
 0xa78   :  { %v3726_v54 = vmul.f32 -1.442695, %v3410_v38 }
 0xa79   :  { %v3727_v28 = vmul.f32 -1.442695, %v3411_v62  ;;  %v3728_v63 = vmul.f32 -1.442695, %v3413_v39 }
 0xa7a   :  { %4181 = vpow2.f32 %v3726_v54 }
 0xa7b   :  { %4183 = vpow2.f32 %v3727_v28 }
 0xa7c   :  { %4185 = vpow2.f32 %v3728_v63 }
 0xa7d   :  { %4187 = vtanh.f32 %v3412_v2 }
 0xa84   :  { %v4182_v21 = vpop.eup %4181 }
 0xa85   :  { %v4184_v12 = vpop.eup %4183  ;;  %v3417_v13 = vadd.f32 1.0, %v4182_v21 }
 0xa86   :  { %v3423_v1 = vadd.f32 1.0, %v4184_v12  ;;  %v4186_v14 = vpop.eup %4185 }
 0xa87   :  { %4189 = vrcp.f32 %v3417_v13  ;;  %v4188_v17 = vpop.eup %4187  ;;  %v3430_v20 = vadd.f32 1.0, %v4186_v14 }
 0xa88   :  { %4191 = vrcp.f32 %v3423_v1 }
 0xa89   :  { %4193 = vrcp.f32 %v3430_v20 }
 0xa91   :  { %v4190_v6 = vpop.eup %4189 }
 0xa92   :  { %v4192_v18 = vpop.eup %4191  ;;  %v3434_v19 = vmul.f32 %v4190_v6, %v4188_v17 }
 0xa93   :  { %v3433_v49 = vmul.f32 %v4192_v18, %v6320_v46  ;;  %v4194_v27 = vpop.eup %4193 }
 0xa95   :  { %v3435_v36 = vadd.f32 %v3434_v19, %v3433_v49 }
 0xa97   :  { %4195 = vtanh.f32 %v3435_v36 }
 0xaa1   :  { %v4196_v22 = vpop.eup %4195 }
 0xaa2   :  { %v3437_v30 = vmul.f32 %v4196_v22, %v4194_v27 }
 0xaa4   :  { %v3438_v33 = vpack.c.bf16 %v3437_v30, %v3437_v30 }
 0xaa6   :  { %3764 = vmatmul.mubr.bf16.vlgmr.msra.gmra.mrb[112].mxu0 %v3438_v33 }
 0xb79   :  { %v3544_v31 = vpop.f32.mrb[112].mxu0 }
 0xb7a   :  { %v3545_v56 = vadd.f32 %v3729_v8, %v3544_v31  ;;  %v3765_v42 = vpop.f32.mrb[113].mxu0 }
 0xb7b   :  { %v3547_v47 = vpop.f32.mrb[114].mxu0 }
 0xb7c   :  { %3550 = vst [vmem:[#allocation14] sm:$0xff] %v3545_v56  ;;  %v3766_v46 = vpop.f32.mrb[115].mxu0 }
 0xb7d   :  { %4532 = shalt.err (!%p4529_p10)
}
 0xb7e   :  { %s4533_s8 = scalar_lea.hbm %s6411_s9, 128 }
 0xb7f   :  { %p4534_p11 = scmp.ne.s32.totalorder %s6411_s9, %s4533_s8  ;;  %p4537_p12 = scmp.lt.u32.totalorder %s4533_s8, %s6411_s9 }
 0xb81   :  { %p4539_p13 = pnand %p4537_p12, %p4534_p11 }
 0xb83   :  { %4542 = shalt.err (!%p4539_p13)
}
 0xb84   :  { %3560 = dma.vmem_to_hbm [thread:$0]  %s3558_s5, 128, %s6411_s9, [#allocation5]  }
 0xb85   :  { %4551 = dma.done.wait [#allocation5], 128  }
 0xb86   :  { %4552 = vsyncadd [#allocation5], 4294967168 }
 0xb87   :  { %3564 = vsyncpa [#allocation4], 1 }
 0xb88   :  { %3565 = vsyncpa [#allocation7], 1 }
 0xb89   :  { %3566 = vsyncpa [#allocation10], 1 }
 0xb8a   :  { %3567 = vsyncpa [#allocation13], 1 }
 0xb8b   :  { %3568 = vsyncpa [#allocation5], 1 }

</bundles_post_ra>
